<compile_context>
chip_gen: v5e
topology: v5e:2x2
jax: 0.10.0
libtpu: 0.0.40
codegen_flags: <defaults>
</compile_context>

<pallas_src>
import jax
import jax.numpy as jnp
from jax.experimental import pallas as pl
from jax.experimental.pallas import tpu as pltpu

EPS = 1e-5      # nn.BatchNorm2d default eps
LANE = 128      # TPU lane width


def _round_up(x, m):
    return (x + m - 1) // m * m


def _pick_tile_h(hp, wp, cin, fp):
    """Largest divisor of Hp whose row strip keeps the per-strip matmul
    accumulator / im2col patch buffer around a few MiB, so every pass's
    working set stays well inside a 48 MiB VMEM budget on all chips."""
    budget = 4 * 1024 * 1024
    best = 1
    for th in range(1, hp + 1):
        if hp % th:
            continue
        if hp >= 32 and th > hp // 2:        # keep >=2 strips for big images
            continue
        rows = th * wp
        acc_bytes = rows * fp * 4
        patch_bytes = rows * (9 * cin if cin <= 128 else cin) * 2
        if th == 1 or max(acc_bytes, patch_bytes) <= budget:
            best = th
    return best


def _compiler_params(sem):
    try:
        cap = int(pltpu.get_tpu_info().vmem_capacity_bytes)
    except Exception:
        cap = 64 * 1024 * 1024
    # Clamp to 48 MiB: valid even if the query reports per-chip (not per-TC)
    # capacity on a 2-TC v7x chip, and leaves headroom for Mosaic-internal
    # scratch + double-buffered I/O blocks (strip-tiled working set ~25 MiB).
    limit = max(32 * 1024 * 1024, min(cap * 3 // 4, 48 * 1024 * 1024))
    limit = min(limit, cap)
    return pltpu.CompilerParams(dimension_semantics=sem,
                                vmem_limit_bytes=limit)


# ---------------------------------------------------------------------------
# Shared helper: stage one zero-padded row strip (with 3x3 halo) into VMEM.
# ---------------------------------------------------------------------------
def _stage_padded_strip(src_ref, dst_ref, t, th, n_strips, transform):
    """Write transform(rows [t*th-1, t*th+th+1) of src_ref) into the interior
    of dst_ref (shape (th+2, wp+2, c)).  The scratch is fully zeroed once per
    image (t == 0); afterwards only the interior and the two halo rows are
    rewritten per strip, so the side columns stay zero for free.  Requires the
    strip grid axis to be 'arbitrary' (strips of an image run in order)."""
    wp = dst_ref.shape[1] - 2
    dt = dst_ref.dtype

    @pl.when(t == 0)
    def _():
        dst_ref[...] = jnp.zeros_like(dst_ref)

    if n_strips > 1:
        # Halo rows may hold the previous strip's data; re-zero them (two
        # cheap full-width row stores) before the conditional halo copies.
        zrow = jnp.zeros((1,) + tuple(dst_ref.shape[1:]), dt)
        dst_ref[pl.ds(0, 1), :, :] = zrow
        dst_ref[pl.ds(th + 1, 1), :, :] = zrow

    # Interior rows of this strip.
    dst_ref[pl.ds(1, th), pl.ds(1, wp), :] = transform(
        src_ref[pl.ds(t * th, th), :, :]).astype(dt)

    # Halo rows from the neighbouring strips (image interior only).
    @pl.when(t > 0)
    def _():
        dst_ref[pl.ds(0, 1), pl.ds(1, wp), :] = transform(
            src_ref[pl.ds(t * th - 1, 1), :, :]).astype(dt)

    @pl.when(t < n_strips - 1)
    def _():
        dst_ref[pl.ds(th + 1, 1), pl.ds(1, wp), :] = transform(
            src_ref[pl.ds((t + 1) * th, 1), :, :]).astype(dt)


def _sum_sumsq(v):
    """Per-channel [sum, sum_sq] of a (rows, F) f32 tensor -> (2, F)."""
    return jnp.concatenate([jnp.sum(v, axis=0, keepdims=True),
                            jnp.sum(v * v, axis=0, keepdims=True)], axis=0)


# ---------------------------------------------------------------------------
# Pass 1: conv1(3x3) + residual conv(1x1) + BN partial statistics (per strip)
# ---------------------------------------------------------------------------
def _make_pass1_im2col(th, ns, cin, fp):
    """Small-Cin path: one MXU matmul per strip (K=9*Cin, N=2*Fp) against an
    in-VMEM im2col patch; the 1x1 residual conv rides along as the second Fp
    output columns (wr packed into the center-tap rows of the weight)."""
    def kernel(x_ref, w1r_ref, y1_ref, s1_ref, sr_ref, xs_ref):
        # x_ref  : (Hp, Wp, Cin) bf16 full pooled image   w1r_ref: (9Cin, 2Fp)
        # y1_ref : (TH, Wp, Fp)  bf16 raw conv1 strip     s1/sr  : (2, Fp) f32
        # xs_ref : (TH+2, Wp+2, Cin) bf16 padded-strip scratch
        t = pl.program_id(1)
        _stage_padded_strip(x_ref, xs_ref, t, th, ns, lambda v: v)
        wp = y1_ref.shape[1]

        cols = [xs_ref[pl.ds(dy, th), pl.ds(dx, wp), :]
                for dy in range(3) for dx in range(3)]
        patches = jnp.concatenate(cols, axis=-1).reshape(th * wp, 9 * cin)
        acc = jnp.dot(patches, w1r_ref[...],
                      preferred_element_type=jnp.float32)       # (rows, 2*Fp)
        y1 = acc[:, :fp]
        res = acc[:, fp:]

        y1_ref[...] = y1.reshape(th, wp, fp).astype(y1_ref.dtype)
        s1_ref[...] = _sum_sumsq(y1)
        sr_ref[...] = _sum_sumsq(res)
    return kernel


def _make_pass1_taps(th, ns, cin, fp):
    """Large-Cin fallback: 9 accumulated matmuls (K=Cin already fills the MXU)
    + a separate 1x1 residual matmul."""
    def kernel(x_ref, w1_ref, wr_ref, y1_ref, s1_ref, sr_ref, xs_ref):
        t = pl.program_id(1)
        _stage_padded_strip(x_ref, xs_ref, t, th, ns, lambda v: v)
        wp = y1_ref.shape[1]

        acc = jnp.zeros((th * wp, fp), jnp.float32)
        for dy in range(3):
            for dx in range(3):
                patch = xs_ref[pl.ds(dy, th), pl.ds(dx, wp), :].reshape(
                    th * wp, cin)
                acc = acc + jnp.dot(patch, w1_ref[dy, dx],
                                    preferred_element_type=jnp.float32)
        center = xs_ref[pl.ds(1, th), pl.ds(1, wp), :].reshape(th * wp, cin)
        res = jnp.dot(center, wr_ref[...], preferred_element_type=jnp.float32)

        y1_ref[...] = acc.reshape(th, wp, fp).astype(y1_ref.dtype)
        s1_ref[...] = _sum_sumsq(acc)
        sr_ref[...] = _sum_sumsq(res)
    return kernel


# ---------------------------------------------------------------------------
# Pass 2: BN1 + SiLU (f32, VMEM-resident) -> conv2(3x3) + BN2 partials
# ---------------------------------------------------------------------------
def _make_pass2(th, ns, fp):
    def kernel(y1_ref, sc1_ref, sh1_ref, w2_ref, y2_ref, s2_ref, hs_ref):
        # y1_ref: (Hp, Wp, Fp) bf16 full image    sc1/sh1: (1, Fp) f32
        # w2_ref: (3, 3, Fp, Fp) bf16             y2_ref : (TH, Wp, Fp) bf16
        # s2_ref: (2, Fp) f32                     hs_ref : (TH+2, Wp+2, Fp)
        t = pl.program_id(1)

        def bn1_silu(v):
            h = v.astype(jnp.float32) * sc1_ref[...] + sh1_ref[...]
            return h * jax.nn.sigmoid(h)

        _stage_padded_strip(y1_ref, hs_ref, t, th, ns, bn1_silu)
        wp = y2_ref.shape[1]

        acc = jnp.zeros((th * wp, fp), jnp.float32)
        for dy in range(3):
            for dx in range(3):
                patch = hs_ref[pl.ds(dy, th), pl.ds(dx, wp), :].reshape(
                    th * wp, fp)
                acc = acc + jnp.dot(patch, w2_ref[dy, dx],
                                    preferred_element_type=jnp.float32)

        y2_ref[...] = acc.reshape(th, wp, fp).astype(y2_ref.dtype)
        s2_ref[...] = _sum_sumsq(acc)
    return kernel


# ---------------------------------------------------------------------------
# Pass 3: BN2 + (1x1 residual conv -> BN_res) + add + final SiLU (bf16 out)
# ---------------------------------------------------------------------------
def _make_pass3(cin, fp):
    def kernel(y2_ref, x_ref, wr_ref, sc2_ref, sh2_ref, scr_ref, shr_ref,
               o_ref):
        th, wp, _ = o_ref.shape
        y2n = y2_ref[...].astype(jnp.float32) * sc2_ref[...] + sh2_ref[...]
        # Recompute the cheap 1x1 residual conv (Cin << Fp: cheaper than an
        # HBM round-trip of an Fp-channel tensor).
        x2d = x_ref[...].reshape(th * wp, cin)
        res = jnp.dot(x2d, wr_ref[...],
                      preferred_element_type=jnp.float32).reshape(th, wp, fp)
        rn = res * scr_ref[...] + shr_ref[...]
        s = y2n + rn
        o_ref[...] = (s * jax.nn.sigmoid(s)).astype(o_ref.dtype)
    return kernel


# ------------------------------- JAX glue ----------------------------------
def _bn_scale_shift(stats, gamma, beta, count):
    """Reduce per-(image, strip) [sum, sum_sq] partials into a fused BN affine
    (training mode: biased batch statistics). Returns (scale, shift) (1, Fp)."""
    tot = jnp.sum(stats.astype(jnp.float32), axis=(0, 1))      # (2, Fp)
    mean = tot[0] / count
    var = jnp.maximum(tot[1] / count - mean * mean, 0.0)
    scale = gamma * jax.lax.rsqrt(var + EPS)
    shift = beta - mean * scale
    return scale[None, :], shift[None, :]


def init_params(key, in_channels, out_channels):
    """Random weights in PyTorch layouts (Conv2d: (Cout, Cin, kh, kw))."""
    k1, k2, k3 = jax.random.split(key, 3)
    w1 = jax.random.normal(k1, (out_channels, in_channels, 3, 3), jnp.float32) * 0.1
    w2 = jax.random.normal(k2, (out_channels, out_channels, 3, 3), jnp.float32) * 0.1
    wr = jax.random.normal(k3, (out_channels, in_channels, 1, 1), jnp.float32) * 0.1
    return dict(
        w1=w1, w2=w2, wr=wr,
        g1=jnp.ones((out_channels,), jnp.float32), b1=jnp.zeros((out_channels,), jnp.float32),
        g2=jnp.ones((out_channels,), jnp.float32), b2=jnp.zeros((out_channels,), jnp.float32),
        gr=jnp.ones((out_channels,), jnp.float32), br=jnp.zeros((out_channels,), jnp.float32))


def _pack_params(params, fp):
    """Repack PyTorch-layout weights for the kernels: (kh, kw, Cin, Fp) bf16,
    output-channel axis zero-padded to Fp (lane-dense stores).  Also builds
    the fused conv1+residual matrix w1r (9*Cin, 2*Fp) for the im2col path."""
    cout, cin = params["w1"].shape[0], params["w1"].shape[1]
    po = fp - cout
    w1 = jnp.pad(jnp.transpose(params["w1"], (2, 3, 1, 0)),
                 ((0, 0), (0, 0), (0, 0), (0, po)))                 # (3,3,Cin,Fp)
    w2 = jnp.pad(jnp.transpose(params["w2"], (2, 3, 1, 0)),
                 ((0, 0), (0, 0), (0, po), (0, po)))                # (3,3,Fp,Fp)
    wr = jnp.pad(jnp.transpose(params["wr"][:, :, 0, 0], (1, 0)),
                 ((0, 0), (0, po)))                                 # (Cin,Fp)
    w1r = jnp.zeros((9 * cin, 2 * fp), jnp.float32)
    w1r = w1r.at[:, :fp].set(w1.reshape(9 * cin, fp))
    w1r = w1r.at[4 * cin:5 * cin, fp:].set(wr)                      # center tap
    padc = lambda v: jnp.pad(v, (0, po))
    return dict(
        w1=w1.astype(jnp.bfloat16), w2=w2.astype(jnp.bfloat16),
        wr=wr.astype(jnp.bfloat16), w1r=w1r.astype(jnp.bfloat16),
        g1=padc(params["g1"]), b1=padc(params["b1"]),
        g2=padc(params["g2"]), b2=padc(params["b2"]),
        gr=padc(params["gr"]), br=padc(params["br"]))


def downsampling_forward(x_nchw, params):
    """DownSampling.forward. Input/output are NCHW f32 to match PyTorch."""
    N, Cin, H, W = x_nchw.shape
    # TODO(synk): odd H/W (floor-mode pooling) not supported by this tiling.
    assert H % 2 == 0 and W % 2 == 0, "MaxPool2d(2) kernel assumes even H, W"
    Cout = params["w1"].shape[0]
    Fp = _round_up(Cout, LANE)
    kp = _pack_params(params, Fp)

    x = jnp.transpose(x_nchw, (0, 2, 3, 1)).astype(jnp.float32)     # NHWC

    # MaxPool2d(2,2) as reshape+max in the wrapper (XLA fuses it).  No padded
    # HBM copy is made: zero padding is staged in VMEM inside the kernels.
    Hp, Wp = H // 2, W // 2
    pooled = jnp.max(x.reshape(N, Hp, 2, Wp, 2, Cin), axis=(2, 4))
    pooled = pooled.astype(jnp.bfloat16)                            # MXU dtype

    TH = _pick_tile_h(Hp, Wp, Cin, Fp)
    NS = Hp // TH
    count = float(N * Hp * Wp)
    use_im2col = Cin <= 128

    cp_halo = _compiler_params(("parallel", "arbitrary"))   # strips need order
    cp_elem = _compiler_params(("parallel", "parallel"))    # pass 3: no halo

    # ---- pass 1: conv1 (+fused residual) raw outputs + BN partials ----
    x_spec = pl.BlockSpec((None, Hp, Wp, Cin), lambda n, t: (n, 0, 0, 0))
    out_shape1 = (jax.ShapeDtypeStruct((N, Hp, Wp, Fp), jnp.bfloat16),
                  jax.ShapeDtypeStruct((N, NS, 2, Fp), jnp.float32),
                  jax.ShapeDtypeStruct((N, NS, 2, Fp), jnp.float32))
    out_specs1 = [pl.BlockSpec((None, TH, Wp, Fp), lambda n, t: (n, t, 0, 0)),
                  pl.BlockSpec((None, None, 2, Fp), lambda n, t: (n, t, 0, 0)),
                  pl.BlockSpec((None, None, 2, Fp), lambda n, t: (n, t, 0, 0))]
    if use_im2col:
        kern1 = _make_pass1_im2col(TH, NS, Cin, Fp)
        in_specs1 = [x_spec,
                     pl.BlockSpec((9 * Cin, 2 * Fp), lambda n, t: (0, 0))]
        args1 = (pooled, kp["w1r"])
    else:
        kern1 = _make_pass1_taps(TH, NS, Cin, Fp)
        in_specs1 = [x_spec,
                     pl.BlockSpec((3, 3, Cin, Fp), lambda n, t: (0, 0, 0, 0)),
                     pl.BlockSpec((Cin, Fp), lambda n, t: (0, 0))]
        args1 = (pooled, kp["w1"], kp["wr"])

    y1, s1, sr = pl.pallas_call(
        kern1,
        out_shape=out_shape1,
        grid_spec=pltpu.PrefetchScalarGridSpec(
            num_scalar_prefetch=0, grid=(N, NS),
            in_specs=in_specs1, out_specs=out_specs1,
            scratch_shapes=[pltpu.VMEM((TH + 2, Wp + 2, Cin), jnp.bfloat16)]),
        compiler_params=cp_halo,
    )(*args1)

    sc1, sh1 = _bn_scale_shift(s1, kp["g1"], kp["b1"], count)
    scr, shr = _bn_scale_shift(sr, kp["gr"], kp["br"], count)

    # ---- pass 2: BN1 + SiLU + conv2 (h1 stays in VMEM) + BN2 partials ----
    y2, s2 = pl.pallas_call(
        _make_pass2(TH, NS, Fp),
        out_shape=(jax.ShapeDtypeStruct((N, Hp, Wp, Fp), jnp.bfloat16),
                   jax.ShapeDtypeStruct((N, NS, 2, Fp), jnp.float32)),
        grid_spec=pltpu.PrefetchScalarGridSpec(
            num_scalar_prefetch=0, grid=(N, NS),
            in_specs=[
                pl.BlockSpec((None, Hp, Wp, Fp), lambda n, t: (n, 0, 0, 0)),
                pl.BlockSpec((1, Fp), lambda n, t: (0, 0)),
                pl.BlockSpec((1, Fp), lambda n, t: (0, 0)),
                pl.BlockSpec((3, 3, Fp, Fp), lambda n, t: (0, 0, 0, 0)),
            ],
            out_specs=[
                pl.BlockSpec((None, TH, Wp, Fp), lambda n, t: (n, t, 0, 0)),
                pl.BlockSpec((None, None, 2, Fp), lambda n, t: (n, t, 0, 0)),
            ],
            scratch_shapes=[pltpu.VMEM((TH + 2, Wp + 2, Fp), jnp.bfloat16)]),
        compiler_params=cp_halo,
    )(y1, sc1, sh1, kp["w2"])

    sc2, sh2 = _bn_scale_shift(s2, kp["g2"], kp["b2"], count)

    # ---- pass 3: BN2 + residual (recomputed) + BN_res + add + SiLU ----
    out_p = pl.pallas_call(
        _make_pass3(Cin, Fp),
        out_shape=jax.ShapeDtypeStruct((N, Hp, Wp, Fp), jnp.bfloat16),
        grid_spec=pltpu.PrefetchScalarGridSpec(
            num_scalar_prefetch=0, grid=(N, NS),
            in_specs=[
                pl.BlockSpec((None, TH, Wp, Fp), lambda n, t: (n, t, 0, 0)),
                pl.BlockSpec((None, TH, Wp, Cin), lambda n, t: (n, t, 0, 0)),
                pl.BlockSpec((Cin, Fp), lambda n, t: (0, 0)),
                pl.BlockSpec((1, Fp), lambda n, t: (0, 0)),
                pl.BlockSpec((1, Fp), lambda n, t: (0, 0)),
                pl.BlockSpec((1, Fp), lambda n, t: (0, 0)),
                pl.BlockSpec((1, Fp), lambda n, t: (0, 0)),
            ],
            out_specs=pl.BlockSpec((None, TH, Wp, Fp),
                                   lambda n, t: (n, t, 0, 0))),
        compiler_params=cp_elem,
    )(y2, pooled, kp["wr"], sc2, sh2, scr, shr)

    # Drop lane padding; restore the PyTorch NCHW / f32 contract (the kernel's
    # HBM write stays bf16; this cast fuses into the transpose copy in XLA).
    out = out_p[..., :Cout].astype(jnp.float32)
    return jnp.transpose(out, (0, 3, 1, 2))


def _reference_forward(x_nchw, params):
    """Pure-JAX f32 reference of the PyTorch module (tolerance check)."""
    N, Cin, H, W = x_nchw.shape
    xp = jnp.max(x_nchw.reshape(N, Cin, H // 2, 2, W // 2, 2), axis=(3, 5))

    def conv(h, w):
        pad = (w.shape[-1] - 1) // 2
        return jax.lax.conv_general_dilated(
            h, w, (1, 1), [(pad, pad), (pad, pad)],
            dimension_numbers=("NCHW", "OIHW", "NCHW"))

    def bn(h, g, b):
        mean = jnp.mean(h, axis=(0, 2, 3), keepdims=True)
        var = jnp.mean((h - mean) ** 2, axis=(0, 2, 3), keepdims=True)
        return ((h - mean) * jax.lax.rsqrt(var + EPS) * g[None, :, None, None]
                + b[None, :, None, None])

    silu = lambda t: t * jax.nn.sigmoid(t)
    h1 = silu(bn(conv(xp, params["w1"]), params["g1"], params["b1"]))
    y2 = bn(conv(h1, params["w2"]), params["g2"], params["b2"])
    r = bn(conv(xp, params["wr"]), params["gr"], params["br"])
    return silu(y2 + r)


if __name__ == "__main__":
    key = jax.random.PRNGKey(0)
    kx, kw = jax.random.split(key)

    N, Cin, H, W = 2, 4, 16, 16
    Cout = 8
    x = jax.random.normal(kx, (N, Cin, H, W), jnp.float32)
    params = init_params(kw, Cin, Cout)

    y = jax.jit(downsampling_forward)(x, params)
    y = jax.block_until_ready(y)

    assert y.shape == (N, Cout, H // 2, W // 2), y.shape
    assert bool(jnp.all(jnp.isfinite(y)))

    # bf16 matmuls/output + two-pass E[x^2]-E[x]^2 BatchNorm vs f32 reference.
    y_ref = _reference_forward(x, params)
    assert bool(jnp.allclose(y, y_ref, atol=1e-1, rtol=1e-1)), float(
        jnp.max(jnp.abs(y - y_ref)))

    print("KERNEL_OK")
</pallas_src>

<mosaic_0001>
module attributes {stable_mosaic.version = 11 : i64} {
  func.func @kernel(%arg0: i32, %arg1: i32, %arg2: memref<1x8x8x4xbf16, #tpu.memory_space<vmem>>, %arg3: memref<36x256xbf16, #tpu.memory_space<vmem>>, %arg4: memref<1x8x8x128xbf16, #tpu.memory_space<vmem>>, %arg5: memref<1x1x2x128xf32, #tpu.memory_space<vmem>>, %arg6: memref<1x1x2x128xf32, #tpu.memory_space<vmem>>, %arg7: memref<10x10x4xbf16, #tpu.memory_space<vmem>>) attributes {dimension_semantics = [#tpu.dimension_semantics<parallel>, #tpu.dimension_semantics<arbitrary>], iteration_bounds = array<i64: 2, 1>, scalar_prefetch = 0 : i64, scratch_operands = 1 : i64, tpu.core_type = #tpu.core_type<tc>, window_params = [{transform_indices = @transform_0, window_bounds = array<i64: 1, 8, 8, 4>}, {pipeline_mode = #tpu.pipeline_mode<synchronous>, transform_indices = @transform_1, window_bounds = array<i64: 36, 256>}, {transform_indices = @transform_2, window_bounds = array<i64: 1, 8, 8, 128>}, {transform_indices = @transform_3, window_bounds = array<i64: 1, 1, 2, 128>}, {transform_indices = @transform_4, window_bounds = array<i64: 1, 1, 2, 128>}]} {
    %c0_i32 = arith.constant 0 : i32
    %0 = arith.cmpi eq, %arg1, %c0_i32 : i32
    %1 = arith.extui %0 : i1 to i32
    %c0_i32_0 = arith.constant 0 : i32
    %2 = arith.cmpi ne, %1, %c0_i32_0 : i32
    scf.if %2 {
      %cst_53 = arith.constant 0.000000e+00 : bf16
      %52 = vector.broadcast %cst_53 : bf16 to vector<10x10x4xbf16>
      %c0_54 = arith.constant 0 : index
      %c0_55 = arith.constant 0 : index
      %c0_56 = arith.constant 0 : index
      %53 = vector.load %arg7[%c0_54, %c0_55, %c0_56] : memref<10x10x4xbf16, #tpu.memory_space<vmem>>, vector<10x10x4xbf16>
      tpu.vector_store %arg7[%c0_54, %c0_55, %c0_56], %52 {strides = array<i32>} : memref<10x10x4xbf16, #tpu.memory_space<vmem>>, vector<10x10x4xbf16>,
    } else {
    }
    %c8_i32 = arith.constant 8 : i32
    %3 = arith.muli %arg1, %c8_i32 : i32
    %c0 = arith.constant 0 : index
    %4 = arith.index_cast %3 : i32 to index
    %c0_1 = arith.constant 0 : index
    %c0_2 = arith.constant 0 : index
    %5 = vector.load %arg2[%c0, %4, %c0_1, %c0_2] : memref<1x8x8x4xbf16, #tpu.memory_space<vmem>>, vector<1x8x8x4xbf16>
    %6 = vector.shape_cast %5 : vector<1x8x8x4xbf16> to vector<8x8x4xbf16>
    %c1 = arith.constant 1 : index
    %c1_3 = arith.constant 1 : index
    %c0_4 = arith.constant 0 : index
    %7 = vector.load %arg7[%c1, %c1_3, %c0_4] : memref<10x10x4xbf16, #tpu.memory_space<vmem>>, vector<8x8x4xbf16>
    tpu.vector_store %arg7[%c1, %c1_3, %c0_4], %6 {strides = array<i32>} : memref<10x10x4xbf16, #tpu.memory_space<vmem>>, vector<8x8x4xbf16>,
    %c0_i32_5 = arith.constant 0 : i32
    %8 = arith.cmpi sgt, %arg1, %c0_i32_5 : i32
    %9 = arith.extui %8 : i1 to i32
    %c0_i32_6 = arith.constant 0 : i32
    %10 = arith.cmpi ne, %9, %c0_i32_6 : i32
    scf.if %10 {
      %c8_i32_53 = arith.constant 8 : i32
      %52 = arith.muli %arg1, %c8_i32_53 : i32
      %c1_i32 = arith.constant 1 : i32
      %53 = arith.subi %52, %c1_i32 : i32
      %c0_54 = arith.constant 0 : index
      %54 = arith.index_cast %53 : i32 to index
      %c0_55 = arith.constant 0 : index
      %c0_56 = arith.constant 0 : index
      %55 = vector.load %arg2[%c0_54, %54, %c0_55, %c0_56] : memref<1x8x8x4xbf16, #tpu.memory_space<vmem>>, vector<1x1x8x4xbf16>
      %56 = vector.shape_cast %55 : vector<1x1x8x4xbf16> to vector<1x8x4xbf16>
      %c0_57 = arith.constant 0 : index
      %c1_58 = arith.constant 1 : index
      %c0_59 = arith.constant 0 : index
      %57 = vector.load %arg7[%c0_57, %c1_58, %c0_59] : memref<10x10x4xbf16, #tpu.memory_space<vmem>>, vector<1x8x4xbf16>
      tpu.vector_store %arg7[%c0_57, %c1_58, %c0_59], %56 {strides = array<i32>} : memref<10x10x4xbf16, #tpu.memory_space<vmem>>, vector<1x8x4xbf16>,
    } else {
    }
    %c0_i32_7 = arith.constant 0 : i32
    %11 = arith.cmpi slt, %arg1, %c0_i32_7 : i32
    %12 = arith.extui %11 : i1 to i32
    %c0_i32_8 = arith.constant 0 : i32
    %13 = arith.cmpi ne, %12, %c0_i32_8 : i32
    scf.if %13 {
      %c1_i32 = arith.constant 1 : i32
      %52 = arith.addi %arg1, %c1_i32 : i32
      %c8_i32_53 = arith.constant 8 : i32
      %53 = arith.muli %52, %c8_i32_53 : i32
      %c0_54 = arith.constant 0 : index
      %54 = arith.index_cast %53 : i32 to index
      %c0_55 = arith.constant 0 : index
      %c0_56 = arith.constant 0 : index
      %55 = vector.load %arg2[%c0_54, %54, %c0_55, %c0_56] : memref<1x8x8x4xbf16, #tpu.memory_space<vmem>>, vector<1x1x8x4xbf16>
      %56 = vector.shape_cast %55 : vector<1x1x8x4xbf16> to vector<1x8x4xbf16>
      %c9 = arith.constant 9 : index
      %c1_57 = arith.constant 1 : index
      %c0_58 = arith.constant 0 : index
      %57 = vector.load %arg7[%c9, %c1_57, %c0_58] : memref<10x10x4xbf16, #tpu.memory_space<vmem>>, vector<1x8x4xbf16>
      tpu.vector_store %arg7[%c9, %c1_57, %c0_58], %56 {strides = array<i32>} : memref<10x10x4xbf16, #tpu.memory_space<vmem>>, vector<1x8x4xbf16>,
    } else {
    }
    %c0_9 = arith.constant 0 : index
    %c0_10 = arith.constant 0 : index
    %c0_11 = arith.constant 0 : index
    %14 = vector.load %arg7[%c0_9, %c0_10, %c0_11] : memref<10x10x4xbf16, #tpu.memory_space<vmem>>, vector<8x8x4xbf16>
    %c0_12 = arith.constant 0 : index
    %c1_13 = arith.constant 1 : index
    %c0_14 = arith.constant 0 : index
    %15 = vector.load %arg7[%c0_12, %c1_13, %c0_14] : memref<10x10x4xbf16, #tpu.memory_space<vmem>>, vector<8x8x4xbf16>
    %c0_15 = arith.constant 0 : index
    %c2 = arith.constant 2 : index
    %c0_16 = arith.constant 0 : index
    %16 = vector.load %arg7[%c0_15, %c2, %c0_16] : memref<10x10x4xbf16, #tpu.memory_space<vmem>>, vector<8x8x4xbf16>
    %c1_17 = arith.constant 1 : index
    %c0_18 = arith.constant 0 : index
    %c0_19 = arith.constant 0 : index
    %17 = vector.load %arg7[%c1_17, %c0_18, %c0_19] : memref<10x10x4xbf16, #tpu.memory_space<vmem>>, vector<8x8x4xbf16>
    %c1_20 = arith.constant 1 : index
    %c1_21 = arith.constant 1 : index
    %c0_22 = arith.constant 0 : index
    %18 = vector.load %arg7[%c1_20, %c1_21, %c0_22] : memref<10x10x4xbf16, #tpu.memory_space<vmem>>, vector<8x8x4xbf16>
    %c1_23 = arith.constant 1 : index
    %c2_24 = arith.constant 2 : index
    %c0_25 = arith.constant 0 : index
    %19 = vector.load %arg7[%c1_23, %c2_24, %c0_25] : memref<10x10x4xbf16, #tpu.memory_space<vmem>>, vector<8x8x4xbf16>
    %c2_26 = arith.constant 2 : index
    %c0_27 = arith.constant 0 : index
    %c0_28 = arith.constant 0 : index
    %20 = vector.load %arg7[%c2_26, %c0_27, %c0_28] : memref<10x10x4xbf16, #tpu.memory_space<vmem>>, vector<8x8x4xbf16>
    %c2_29 = arith.constant 2 : index
    %c1_30 = arith.constant 1 : index
    %c0_31 = arith.constant 0 : index
    %21 = vector.load %arg7[%c2_29, %c1_30, %c0_31] : memref<10x10x4xbf16, #tpu.memory_space<vmem>>, vector<8x8x4xbf16>
    %c2_32 = arith.constant 2 : index
    %c2_33 = arith.constant 2 : index
    %c0_34 = arith.constant 0 : index
    %22 = vector.load %arg7[%c2_32, %c2_33, %c0_34] : memref<10x10x4xbf16, #tpu.memory_space<vmem>>, vector<8x8x4xbf16>
    %23 = tpu.concatenate %14, %15, %16, %17, %18, %19, %20, %21, %22 in 2 : vector<8x8x4xbf16>, vector<8x8x4xbf16>, vector<8x8x4xbf16>, vector<8x8x4xbf16>, vector<8x8x4xbf16>, vector<8x8x4xbf16>, vector<8x8x4xbf16>, vector<8x8x4xbf16>, vector<8x8x4xbf16> -> vector<8x8x36xbf16>
    %24 = vector.shape_cast %23 : vector<8x8x36xbf16> to vector<64x36xbf16>
    %c0_35 = arith.constant 0 : index
    %c0_36 = arith.constant 0 : index
    %25 = vector.load %arg3[%c0_35, %c0_36] : memref<36x256xbf16, #tpu.memory_space<vmem>>, vector<36x256xbf16>
    %cst = arith.constant dense<0.000000e+00> : vector<64x256xf32>
    %26 = tpu.matmul %24, %25, %cst {dimension_numbers = #tpu.dot_dimension_numbers<[1], [0], [0], [1], [0, 0, 1, 1], [], []>} : vector<64x36xbf16>, vector<36x256xbf16>, vector<64x256xf32> -> vector<64x256xf32>
    %27 = vector.extract_strided_slice %26 {offsets = [0, 0], sizes = [64, 128], strides = [1, 1]} : vector<64x256xf32> to vector<64x128xf32>
    %28 = vector.extract_strided_slice %26 {offsets = [0, 128], sizes = [64, 128], strides = [1, 1]} : vector<64x256xf32> to vector<64x128xf32>
    %29 = vector.shape_cast %27 : vector<64x128xf32> to vector<8x8x128xf32>
    %30 = arith.truncf %29 : vector<8x8x128xf32> to vector<8x8x128xbf16>
    %c0_37 = arith.constant 0 : index
    %c0_38 = arith.constant 0 : index
    %c0_39 = arith.constant 0 : index
    %c0_40 = arith.constant 0 : index
    %31 = vector.load %arg4[%c0_37, %c0_38, %c0_39, %c0_40] : memref<1x8x8x128xbf16, #tpu.memory_space<vmem>>, vector<1x8x8x128xbf16>
    %32 = vector.shape_cast %31 : vector<1x8x8x128xbf16> to vector<8x8x128xbf16>
    %33 = vector.shape_cast %30 : vector<8x8x128xbf16> to vector<1x8x8x128xbf16>
    tpu.vector_store %arg4[%c0_37, %c0_38, %c0_39, %c0_40], %33 {strides = array<i32>} : memref<1x8x8x128xbf16, #tpu.memory_space<vmem>>, vector<1x8x8x128xbf16>,
    %cst_41 = arith.constant dense<0.000000e+00> : vector<128xf32>
    %34 = vector.multi_reduction <add>, %27, %cst_41 [0] : vector<64x128xf32> to vector<128xf32>
    %35 = vector.shape_cast %34 : vector<128xf32> to vector<1x128xf32>
    %36 = arith.mulf %27, %27 : vector<64x128xf32>
    %cst_42 = arith.constant dense<0.000000e+00> : vector<128xf32>
    %37 = vector.multi_reduction <add>, %36, %cst_42 [0] : vector<64x128xf32> to vector<128xf32>
    %38 = vector.shape_cast %37 : vector<128xf32> to vector<1x128xf32>
    %39 = tpu.concatenate %35, %38 in 0 : vector<1x128xf32>, vector<1x128xf32> -> vector<2x128xf32>
    %c0_43 = arith.constant 0 : index
    %c0_44 = arith.constant 0 : index
    %c0_45 = arith.constant 0 : index
    %c0_46 = arith.constant 0 : index
    %40 = vector.load %arg5[%c0_43, %c0_44, %c0_45, %c0_46] : memref<1x1x2x128xf32, #tpu.memory_space<vmem>>, vector<1x1x2x128xf32>
    %41 = vector.shape_cast %40 : vector<1x1x2x128xf32> to vector<2x128xf32>
    %42 = vector.shape_cast %39 : vector<2x128xf32> to vector<1x1x2x128xf32>
    tpu.vector_store %arg5[%c0_43, %c0_44, %c0_45, %c0_46], %42 {strides = array<i32>} : memref<1x1x2x128xf32, #tpu.memory_space<vmem>>, vector<1x1x2x128xf32>,
    %cst_47 = arith.constant dense<0.000000e+00> : vector<128xf32>
    %43 = vector.multi_reduction <add>, %28, %cst_47 [0] : vector<64x128xf32> to vector<128xf32>
    %44 = vector.shape_cast %43 : vector<128xf32> to vector<1x128xf32>
    %45 = arith.mulf %28, %28 : vector<64x128xf32>
    %cst_48 = arith.constant dense<0.000000e+00> : vector<128xf32>
    %46 = vector.multi_reduction <add>, %45, %cst_48 [0] : vector<64x128xf32> to vector<128xf32>
    %47 = vector.shape_cast %46 : vector<128xf32> to vector<1x128xf32>
    %48 = tpu.concatenate %44, %47 in 0 : vector<1x128xf32>, vector<1x128xf32> -> vector<2x128xf32>
    %c0_49 = arith.constant 0 : index
    %c0_50 = arith.constant 0 : index
    %c0_51 = arith.constant 0 : index
    %c0_52 = arith.constant 0 : index
    %49 = vector.load %arg6[%c0_49, %c0_50, %c0_51, %c0_52] : memref<1x1x2x128xf32, #tpu.memory_space<vmem>>, vector<1x1x2x128xf32>
    %50 = vector.shape_cast %49 : vector<1x1x2x128xf32> to vector<2x128xf32>
    %51 = vector.shape_cast %48 : vector<2x128xf32> to vector<1x1x2x128xf32>
    tpu.vector_store %arg6[%c0_49, %c0_50, %c0_51, %c0_52], %51 {strides = array<i32>} : memref<1x1x2x128xf32, #tpu.memory_space<vmem>>, vector<1x1x2x128xf32>,
    return
  }
  func.func @transform_0(%arg0: i32, %arg1: i32) -> (i32, i32, i32, i32) {
    %c0_i32 = arith.constant 0 : i32
    %c0_i32_0 = arith.constant 0 : i32
    %c0_i32_1 = arith.constant 0 : i32
    %c0_i32_2 = arith.constant 0 : i32
    return %arg0, %c0_i32, %c0_i32_0, %c0_i32_1 : i32, i32, i32, i32
  }
  func.func @transform_1(%arg0: i32, %arg1: i32) -> (i32, i32) {
    %c0_i32 = arith.constant 0 : i32
    %c0_i32_0 = arith.constant 0 : i32
    %c0_i32_1 = arith.constant 0 : i32
    return %c0_i32, %c0_i32_0 : i32, i32
  }
  func.func @transform_2(%arg0: i32, %arg1: i32) -> (i32, i32, i32, i32) {
    %c0_i32 = arith.constant 0 : i32
    %c0_i32_0 = arith.constant 0 : i32
    %c0_i32_1 = arith.constant 0 : i32
    return %arg0, %arg1, %c0_i32, %c0_i32_0 : i32, i32, i32, i32
  }
  func.func @transform_3(%arg0: i32, %arg1: i32) -> (i32, i32, i32, i32) {
    %c0_i32 = arith.constant 0 : i32
    %c0_i32_0 = arith.constant 0 : i32
    %c0_i32_1 = arith.constant 0 : i32
    return %arg0, %arg1, %c0_i32, %c0_i32_0 : i32, i32, i32, i32
  }
  func.func @transform_4(%arg0: i32, %arg1: i32) -> (i32, i32, i32, i32) {
    %c0_i32 = arith.constant 0 : i32
    %c0_i32_0 = arith.constant 0 : i32
    %c0_i32_1 = arith.constant 0 : i32
    return %arg0, %arg1, %c0_i32, %c0_i32_0 : i32, i32, i32, i32
  }
}

module attributes {stable_mosaic.version = 11 : i64} {
  func.func @kernel(%arg0: i32, %arg1: i32, %arg2: memref<1x8x8x128xbf16, #tpu.memory_space<vmem>>, %arg3: memref<1x128xf32, #tpu.memory_space<vmem>>, %arg4: memref<1x128xf32, #tpu.memory_space<vmem>>, %arg5: memref<3x3x128x128xbf16, #tpu.memory_space<vmem>>, %arg6: memref<1x8x8x128xbf16, #tpu.memory_space<vmem>>, %arg7: memref<1x1x2x128xf32, #tpu.memory_space<vmem>>, %arg8: memref<10x10x128xbf16, #tpu.memory_space<vmem>>) attributes {dimension_semantics = [#tpu.dimension_semantics<parallel>, #tpu.dimension_semantics<arbitrary>], iteration_bounds = array<i64: 2, 1>, scalar_prefetch = 0 : i64, scratch_operands = 1 : i64, tpu.core_type = #tpu.core_type<tc>, window_params = [{transform_indices = @transform_0, window_bounds = array<i64: 1, 8, 8, 128>}, {pipeline_mode = #tpu.pipeline_mode<synchronous>, transform_indices = @transform_1, window_bounds = array<i64: 1, 128>}, {pipeline_mode = #tpu.pipeline_mode<synchronous>, transform_indices = @transform_2, window_bounds = array<i64: 1, 128>}, {pipeline_mode = #tpu.pipeline_mode<synchronous>, transform_indices = @transform_3, window_bounds = array<i64: 3, 3, 128, 128>}, {transform_indices = @transform_4, window_bounds = array<i64: 1, 8, 8, 128>}, {transform_indices = @transform_5, window_bounds = array<i64: 1, 1, 2, 128>}]} {
    %c0_i32 = arith.constant 0 : i32
    %0 = arith.cmpi eq, %arg1, %c0_i32 : i32
    %1 = arith.extui %0 : i1 to i32
    %c0_i32_0 = arith.constant 0 : i32
    %2 = arith.cmpi ne, %1, %c0_i32_0 : i32
    scf.if %2 {
      %cst_95 = arith.constant 0.000000e+00 : bf16
      %99 = vector.broadcast %cst_95 : bf16 to vector<10x10x128xbf16>
      %c0_96 = arith.constant 0 : index
      %c0_97 = arith.constant 0 : index
      %c0_98 = arith.constant 0 : index
      %100 = vector.load %arg8[%c0_96, %c0_97, %c0_98] : memref<10x10x128xbf16, #tpu.memory_space<vmem>>, vector<10x10x128xbf16>
      tpu.vector_store %arg8[%c0_96, %c0_97, %c0_98], %99 {strides = array<i32>} : memref<10x10x128xbf16, #tpu.memory_space<vmem>>, vector<10x10x128xbf16>,
    } else {
    }
    %c8_i32 = arith.constant 8 : i32
    %3 = arith.muli %arg1, %c8_i32 : i32
    %c0 = arith.constant 0 : index
    %4 = arith.index_cast %3 : i32 to index
    %c0_1 = arith.constant 0 : index
    %c0_2 = arith.constant 0 : index
    %5 = vector.load %arg2[%c0, %4, %c0_1, %c0_2] : memref<1x8x8x128xbf16, #tpu.memory_space<vmem>>, vector<1x8x8x128xbf16>
    %6 = vector.shape_cast %5 : vector<1x8x8x128xbf16> to vector<8x8x128xbf16>
    %7 = arith.extf %6 : vector<8x8x128xbf16> to vector<8x8x128xf32>
    %c0_3 = arith.constant 0 : index
    %c0_4 = arith.constant 0 : index
    %8 = vector.load %arg3[%c0_3, %c0_4] : memref<1x128xf32, #tpu.memory_space<vmem>>, vector<1x128xf32>
    %9 = vector.shape_cast %8 : vector<1x128xf32> to vector<1x1x128xf32>
    %10 = vector.broadcast %9 : vector<1x1x128xf32> to vector<8x8x128xf32>
    %11 = arith.mulf %7, %10 : vector<8x8x128xf32>
    %c0_5 = arith.constant 0 : index
    %c0_6 = arith.constant 0 : index
    %12 = vector.load %arg4[%c0_5, %c0_6] : memref<1x128xf32, #tpu.memory_space<vmem>>, vector<1x128xf32>
    %13 = vector.shape_cast %12 : vector<1x128xf32> to vector<1x1x128xf32>
    %14 = vector.broadcast %13 : vector<1x1x128xf32> to vector<8x8x128xf32>
    %15 = arith.addf %11, %14 : vector<8x8x128xf32>
    %16 = arith.negf %15 : vector<8x8x128xf32>
    %17 = math.exp %16 : vector<8x8x128xf32>
    %cst = arith.constant 1.000000e+00 : f32
    %18 = vector.broadcast %cst : f32 to vector<8x8x128xf32>
    %19 = arith.addf %18, %17 : vector<8x8x128xf32>
    %20 = arith.divf %18, %19 : vector<8x8x128xf32>
    %21 = arith.mulf %15, %20 : vector<8x8x128xf32>
    %22 = arith.truncf %21 : vector<8x8x128xf32> to vector<8x8x128xbf16>
    %c1 = arith.constant 1 : index
    %c1_7 = arith.constant 1 : index
    %c0_8 = arith.constant 0 : index
    %23 = vector.load %arg8[%c1, %c1_7, %c0_8] : memref<10x10x128xbf16, #tpu.memory_space<vmem>>, vector<8x8x128xbf16>
    tpu.vector_store %arg8[%c1, %c1_7, %c0_8], %22 {strides = array<i32>} : memref<10x10x128xbf16, #tpu.memory_space<vmem>>, vector<8x8x128xbf16>,
    %c0_i32_9 = arith.constant 0 : i32
    %24 = arith.cmpi sgt, %arg1, %c0_i32_9 : i32
    %25 = arith.extui %24 : i1 to i32
    %c0_i32_10 = arith.constant 0 : i32
    %26 = arith.cmpi ne, %25, %c0_i32_10 : i32
    scf.if %26 {
      %c8_i32_95 = arith.constant 8 : i32
      %99 = arith.muli %arg1, %c8_i32_95 : i32
      %c1_i32 = arith.constant 1 : i32
      %100 = arith.subi %99, %c1_i32 : i32
      %c0_96 = arith.constant 0 : index
      %101 = arith.index_cast %100 : i32 to index
      %c0_97 = arith.constant 0 : index
      %c0_98 = arith.constant 0 : index
      %102 = vector.load %arg2[%c0_96, %101, %c0_97, %c0_98] : memref<1x8x8x128xbf16, #tpu.memory_space<vmem>>, vector<1x1x8x128xbf16>
      %103 = vector.shape_cast %102 : vector<1x1x8x128xbf16> to vector<1x8x128xbf16>
      %104 = arith.extf %103 : vector<1x8x128xbf16> to vector<1x8x128xf32>
      %c0_99 = arith.constant 0 : index
      %c0_100 = arith.constant 0 : index
      %105 = vector.load %arg3[%c0_99, %c0_100] : memref<1x128xf32, #tpu.memory_space<vmem>>, vector<1x128xf32>
      %106 = vector.shape_cast %105 : vector<1x128xf32> to vector<1x1x128xf32>
      %107 = vector.broadcast %106 : vector<1x1x128xf32> to vector<1x8x128xf32>
      %108 = arith.mulf %104, %107 : vector<1x8x128xf32>
      %c0_101 = arith.constant 0 : index
      %c0_102 = arith.constant 0 : index
      %109 = vector.load %arg4[%c0_101, %c0_102] : memref<1x128xf32, #tpu.memory_space<vmem>>, vector<1x128xf32>
      %110 = vector.shape_cast %109 : vector<1x128xf32> to vector<1x1x128xf32>
      %111 = vector.broadcast %110 : vector<1x1x128xf32> to vector<1x8x128xf32>
      %112 = arith.addf %108, %111 : vector<1x8x128xf32>
      %113 = arith.negf %112 : vector<1x8x128xf32>
      %114 = math.exp %113 : vector<1x8x128xf32>
      %cst_103 = arith.constant 1.000000e+00 : f32
      %115 = vector.broadcast %cst_103 : f32 to vector<1x8x128xf32>
      %116 = arith.addf %115, %114 : vector<1x8x128xf32>
      %117 = arith.divf %115, %116 : vector<1x8x128xf32>
      %118 = arith.mulf %112, %117 : vector<1x8x128xf32>
      %119 = arith.truncf %118 : vector<1x8x128xf32> to vector<1x8x128xbf16>
      %c0_104 = arith.constant 0 : index
      %c1_105 = arith.constant 1 : index
      %c0_106 = arith.constant 0 : index
      %120 = vector.load %arg8[%c0_104, %c1_105, %c0_106] : memref<10x10x128xbf16, #tpu.memory_space<vmem>>, vector<1x8x128xbf16>
      tpu.vector_store %arg8[%c0_104, %c1_105, %c0_106], %119 {strides = array<i32>} : memref<10x10x128xbf16, #tpu.memory_space<vmem>>, vector<1x8x128xbf16>,
    } else {
    }
    %c0_i32_11 = arith.constant 0 : i32
    %27 = arith.cmpi slt, %arg1, %c0_i32_11 : i32
    %28 = arith.extui %27 : i1 to i32
    %c0_i32_12 = arith.constant 0 : i32
    %29 = arith.cmpi ne, %28, %c0_i32_12 : i32
    scf.if %29 {
      %c1_i32 = arith.constant 1 : i32
      %99 = arith.addi %arg1, %c1_i32 : i32
      %c8_i32_95 = arith.constant 8 : i32
      %100 = arith.muli %99, %c8_i32_95 : i32
      %c0_96 = arith.constant 0 : index
      %101 = arith.index_cast %100 : i32 to index
      %c0_97 = arith.constant 0 : index
      %c0_98 = arith.constant 0 : index
      %102 = vector.load %arg2[%c0_96, %101, %c0_97, %c0_98] : memref<1x8x8x128xbf16, #tpu.memory_space<vmem>>, vector<1x1x8x128xbf16>
      %103 = vector.shape_cast %102 : vector<1x1x8x128xbf16> to vector<1x8x128xbf16>
      %104 = arith.extf %103 : vector<1x8x128xbf16> to vector<1x8x128xf32>
      %c0_99 = arith.constant 0 : index
      %c0_100 = arith.constant 0 : index
      %105 = vector.load %arg3[%c0_99, %c0_100] : memref<1x128xf32, #tpu.memory_space<vmem>>, vector<1x128xf32>
      %106 = vector.shape_cast %105 : vector<1x128xf32> to vector<1x1x128xf32>
      %107 = vector.broadcast %106 : vector<1x1x128xf32> to vector<1x8x128xf32>
      %108 = arith.mulf %104, %107 : vector<1x8x128xf32>
      %c0_101 = arith.constant 0 : index
      %c0_102 = arith.constant 0 : index
      %109 = vector.load %arg4[%c0_101, %c0_102] : memref<1x128xf32, #tpu.memory_space<vmem>>, vector<1x128xf32>
      %110 = vector.shape_cast %109 : vector<1x128xf32> to vector<1x1x128xf32>
      %111 = vector.broadcast %110 : vector<1x1x128xf32> to vector<1x8x128xf32>
      %112 = arith.addf %108, %111 : vector<1x8x128xf32>
      %113 = arith.negf %112 : vector<1x8x128xf32>
      %114 = math.exp %113 : vector<1x8x128xf32>
      %cst_103 = arith.constant 1.000000e+00 : f32
      %115 = vector.broadcast %cst_103 : f32 to vector<1x8x128xf32>
      %116 = arith.addf %115, %114 : vector<1x8x128xf32>
      %117 = arith.divf %115, %116 : vector<1x8x128xf32>
      %118 = arith.mulf %112, %117 : vector<1x8x128xf32>
      %119 = arith.truncf %118 : vector<1x8x128xf32> to vector<1x8x128xbf16>
      %c9 = arith.constant 9 : index
      %c1_104 = arith.constant 1 : index
      %c0_105 = arith.constant 0 : index
      %120 = vector.load %arg8[%c9, %c1_104, %c0_105] : memref<10x10x128xbf16, #tpu.memory_space<vmem>>, vector<1x8x128xbf16>
      tpu.vector_store %arg8[%c9, %c1_104, %c0_105], %119 {strides = array<i32>} : memref<10x10x128xbf16, #tpu.memory_space<vmem>>, vector<1x8x128xbf16>,
    } else {
    }
    %cst_13 = arith.constant 0.000000e+00 : f32
    %30 = vector.broadcast %cst_13 : f32 to vector<64x128xf32>
    %c0_14 = arith.constant 0 : index
    %c0_15 = arith.constant 0 : index
    %c0_16 = arith.constant 0 : index
    %31 = vector.load %arg8[%c0_14, %c0_15, %c0_16] : memref<10x10x128xbf16, #tpu.memory_space<vmem>>, vector<8x8x128xbf16>
    %32 = vector.shape_cast %31 : vector<8x8x128xbf16> to vector<64x128xbf16>
    %c0_17 = arith.constant 0 : index
    %c0_18 = arith.constant 0 : index
    %c0_19 = arith.constant 0 : index
    %c0_20 = arith.constant 0 : index
    %33 = vector.load %arg5[%c0_17, %c0_18, %c0_19, %c0_20] : memref<3x3x128x128xbf16, #tpu.memory_space<vmem>>, vector<1x1x128x128xbf16>
    %34 = vector.shape_cast %33 : vector<1x1x128x128xbf16> to vector<128x128xbf16>
    %cst_21 = arith.constant dense<0.000000e+00> : vector<64x128xf32>
    %35 = tpu.matmul %32, %34, %cst_21 {dimension_numbers = #tpu.dot_dimension_numbers<[1], [0], [0], [1], [0, 0, 1, 1], [], []>} : vector<64x128xbf16>, vector<128x128xbf16>, vector<64x128xf32> -> vector<64x128xf32>
    %36 = arith.addf %30, %35 : vector<64x128xf32>
    %c0_22 = arith.constant 0 : index
    %c1_23 = arith.constant 1 : index
    %c0_24 = arith.constant 0 : index
    %37 = vector.load %arg8[%c0_22, %c1_23, %c0_24] : memref<10x10x128xbf16, #tpu.memory_space<vmem>>, vector<8x8x128xbf16>
    %38 = vector.shape_cast %37 : vector<8x8x128xbf16> to vector<64x128xbf16>
    %c0_25 = arith.constant 0 : index
    %c1_26 = arith.constant 1 : index
    %c0_27 = arith.constant 0 : index
    %c0_28 = arith.constant 0 : index
    %39 = vector.load %arg5[%c0_25, %c1_26, %c0_27, %c0_28] : memref<3x3x128x128xbf16, #tpu.memory_space<vmem>>, vector<1x1x128x128xbf16>
    %40 = vector.shape_cast %39 : vector<1x1x128x128xbf16> to vector<128x128xbf16>
    %cst_29 = arith.constant dense<0.000000e+00> : vector<64x128xf32>
    %41 = tpu.matmul %38, %40, %cst_29 {dimension_numbers = #tpu.dot_dimension_numbers<[1], [0], [0], [1], [0, 0, 1, 1], [], []>} : vector<64x128xbf16>, vector<128x128xbf16>, vector<64x128xf32> -> vector<64x128xf32>
    %42 = arith.addf %36, %41 : vector<64x128xf32>
    %c0_30 = arith.constant 0 : index
    %c2 = arith.constant 2 : index
    %c0_31 = arith.constant 0 : index
    %43 = vector.load %arg8[%c0_30, %c2, %c0_31] : memref<10x10x128xbf16, #tpu.memory_space<vmem>>, vector<8x8x128xbf16>
    %44 = vector.shape_cast %43 : vector<8x8x128xbf16> to vector<64x128xbf16>
    %c0_32 = arith.constant 0 : index
    %c2_33 = arith.constant 2 : index
    %c0_34 = arith.constant 0 : index
    %c0_35 = arith.constant 0 : index
    %45 = vector.load %arg5[%c0_32, %c2_33, %c0_34, %c0_35] : memref<3x3x128x128xbf16, #tpu.memory_space<vmem>>, vector<1x1x128x128xbf16>
    %46 = vector.shape_cast %45 : vector<1x1x128x128xbf16> to vector<128x128xbf16>
    %cst_36 = arith.constant dense<0.000000e+00> : vector<64x128xf32>
    %47 = tpu.matmul %44, %46, %cst_36 {dimension_numbers = #tpu.dot_dimension_numbers<[1], [0], [0], [1], [0, 0, 1, 1], [], []>} : vector<64x128xbf16>, vector<128x128xbf16>, vector<64x128xf32> -> vector<64x128xf32>
    %48 = arith.addf %42, %47 : vector<64x128xf32>
    %c1_37 = arith.constant 1 : index
    %c0_38 = arith.constant 0 : index
    %c0_39 = arith.constant 0 : index
    %49 = vector.load %arg8[%c1_37, %c0_38, %c0_39] : memref<10x10x128xbf16, #tpu.memory_space<vmem>>, vector<8x8x128xbf16>
    %50 = vector.shape_cast %49 : vector<8x8x128xbf16> to vector<64x128xbf16>
    %c1_40 = arith.constant 1 : index
    %c0_41 = arith.constant 0 : index
    %c0_42 = arith.constant 0 : index
    %c0_43 = arith.constant 0 : index
    %51 = vector.load %arg5[%c1_40, %c0_41, %c0_42, %c0_43] : memref<3x3x128x128xbf16, #tpu.memory_space<vmem>>, vector<1x1x128x128xbf16>
    %52 = vector.shape_cast %51 : vector<1x1x128x128xbf16> to vector<128x128xbf16>
    %cst_44 = arith.constant dense<0.000000e+00> : vector<64x128xf32>
    %53 = tpu.matmul %50, %52, %cst_44 {dimension_numbers = #tpu.dot_dimension_numbers<[1], [0], [0], [1], [0, 0, 1, 1], [], []>} : vector<64x128xbf16>, vector<128x128xbf16>, vector<64x128xf32> -> vector<64x128xf32>
    %54 = arith.addf %48, %53 : vector<64x128xf32>
    %c1_45 = arith.constant 1 : index
    %c1_46 = arith.constant 1 : index
    %c0_47 = arith.constant 0 : index
    %55 = vector.load %arg8[%c1_45, %c1_46, %c0_47] : memref<10x10x128xbf16, #tpu.memory_space<vmem>>, vector<8x8x128xbf16>
    %56 = vector.shape_cast %55 : vector<8x8x128xbf16> to vector<64x128xbf16>
    %c1_48 = arith.constant 1 : index
    %c1_49 = arith.constant 1 : index
    %c0_50 = arith.constant 0 : index
    %c0_51 = arith.constant 0 : index
    %57 = vector.load %arg5[%c1_48, %c1_49, %c0_50, %c0_51] : memref<3x3x128x128xbf16, #tpu.memory_space<vmem>>, vector<1x1x128x128xbf16>
    %58 = vector.shape_cast %57 : vector<1x1x128x128xbf16> to vector<128x128xbf16>
    %cst_52 = arith.constant dense<0.000000e+00> : vector<64x128xf32>
    %59 = tpu.matmul %56, %58, %cst_52 {dimension_numbers = #tpu.dot_dimension_numbers<[1], [0], [0], [1], [0, 0, 1, 1], [], []>} : vector<64x128xbf16>, vector<128x128xbf16>, vector<64x128xf32> -> vector<64x128xf32>
    %60 = arith.addf %54, %59 : vector<64x128xf32>
    %c1_53 = arith.constant 1 : index
    %c2_54 = arith.constant 2 : index
    %c0_55 = arith.constant 0 : index
    %61 = vector.load %arg8[%c1_53, %c2_54, %c0_55] : memref<10x10x128xbf16, #tpu.memory_space<vmem>>, vector<8x8x128xbf16>
    %62 = vector.shape_cast %61 : vector<8x8x128xbf16> to vector<64x128xbf16>
    %c1_56 = arith.constant 1 : index
    %c2_57 = arith.constant 2 : index
    %c0_58 = arith.constant 0 : index
    %c0_59 = arith.constant 0 : index
    %63 = vector.load %arg5[%c1_56, %c2_57, %c0_58, %c0_59] : memref<3x3x128x128xbf16, #tpu.memory_space<vmem>>, vector<1x1x128x128xbf16>
    %64 = vector.shape_cast %63 : vector<1x1x128x128xbf16> to vector<128x128xbf16>
    %cst_60 = arith.constant dense<0.000000e+00> : vector<64x128xf32>
    %65 = tpu.matmul %62, %64, %cst_60 {dimension_numbers = #tpu.dot_dimension_numbers<[1], [0], [0], [1], [0, 0, 1, 1], [], []>} : vector<64x128xbf16>, vector<128x128xbf16>, vector<64x128xf32> -> vector<64x128xf32>
    %66 = arith.addf %60, %65 : vector<64x128xf32>
    %c2_61 = arith.constant 2 : index
    %c0_62 = arith.constant 0 : index
    %c0_63 = arith.constant 0 : index
    %67 = vector.load %arg8[%c2_61, %c0_62, %c0_63] : memref<10x10x128xbf16, #tpu.memory_space<vmem>>, vector<8x8x128xbf16>
    %68 = vector.shape_cast %67 : vector<8x8x128xbf16> to vector<64x128xbf16>
    %c2_64 = arith.constant 2 : index
    %c0_65 = arith.constant 0 : index
    %c0_66 = arith.constant 0 : index
    %c0_67 = arith.constant 0 : index
    %69 = vector.load %arg5[%c2_64, %c0_65, %c0_66, %c0_67] : memref<3x3x128x128xbf16, #tpu.memory_space<vmem>>, vector<1x1x128x128xbf16>
    %70 = vector.shape_cast %69 : vector<1x1x128x128xbf16> to vector<128x128xbf16>
    %cst_68 = arith.constant dense<0.000000e+00> : vector<64x128xf32>
    %71 = tpu.matmul %68, %70, %cst_68 {dimension_numbers = #tpu.dot_dimension_numbers<[1], [0], [0], [1], [0, 0, 1, 1], [], []>} : vector<64x128xbf16>, vector<128x128xbf16>, vector<64x128xf32> -> vector<64x128xf32>
    %72 = arith.addf %66, %71 : vector<64x128xf32>
    %c2_69 = arith.constant 2 : index
    %c1_70 = arith.constant 1 : index
    %c0_71 = arith.constant 0 : index
    %73 = vector.load %arg8[%c2_69, %c1_70, %c0_71] : memref<10x10x128xbf16, #tpu.memory_space<vmem>>, vector<8x8x128xbf16>
    %74 = vector.shape_cast %73 : vector<8x8x128xbf16> to vector<64x128xbf16>
    %c2_72 = arith.constant 2 : index
    %c1_73 = arith.constant 1 : index
    %c0_74 = arith.constant 0 : index
    %c0_75 = arith.constant 0 : index
    %75 = vector.load %arg5[%c2_72, %c1_73, %c0_74, %c0_75] : memref<3x3x128x128xbf16, #tpu.memory_space<vmem>>, vector<1x1x128x128xbf16>
    %76 = vector.shape_cast %75 : vector<1x1x128x128xbf16> to vector<128x128xbf16>
    %cst_76 = arith.constant dense<0.000000e+00> : vector<64x128xf32>
    %77 = tpu.matmul %74, %76, %cst_76 {dimension_numbers = #tpu.dot_dimension_numbers<[1], [0], [0], [1], [0, 0, 1, 1], [], []>} : vector<64x128xbf16>, vector<128x128xbf16>, vector<64x128xf32> -> vector<64x128xf32>
    %78 = arith.addf %72, %77 : vector<64x128xf32>
    %c2_77 = arith.constant 2 : index
    %c2_78 = arith.constant 2 : index
    %c0_79 = arith.constant 0 : index
    %79 = vector.load %arg8[%c2_77, %c2_78, %c0_79] : memref<10x10x128xbf16, #tpu.memory_space<vmem>>, vector<8x8x128xbf16>
    %80 = vector.shape_cast %79 : vector<8x8x128xbf16> to vector<64x128xbf16>
    %c2_80 = arith.constant 2 : index
    %c2_81 = arith.constant 2 : index
    %c0_82 = arith.constant 0 : index
    %c0_83 = arith.constant 0 : index
    %81 = vector.load %arg5[%c2_80, %c2_81, %c0_82, %c0_83] : memref<3x3x128x128xbf16, #tpu.memory_space<vmem>>, vector<1x1x128x128xbf16>
    %82 = vector.shape_cast %81 : vector<1x1x128x128xbf16> to vector<128x128xbf16>
    %cst_84 = arith.constant dense<0.000000e+00> : vector<64x128xf32>
    %83 = tpu.matmul %80, %82, %cst_84 {dimension_numbers = #tpu.dot_dimension_numbers<[1], [0], [0], [1], [0, 0, 1, 1], [], []>} : vector<64x128xbf16>, vector<128x128xbf16>, vector<64x128xf32> -> vector<64x128xf32>
    %84 = arith.addf %78, %83 : vector<64x128xf32>
    %85 = vector.shape_cast %84 : vector<64x128xf32> to vector<8x8x128xf32>
    %86 = arith.truncf %85 : vector<8x8x128xf32> to vector<8x8x128xbf16>
    %c0_85 = arith.constant 0 : index
    %c0_86 = arith.constant 0 : index
    %c0_87 = arith.constant 0 : index
    %c0_88 = arith.constant 0 : index
    %87 = vector.load %arg6[%c0_85, %c0_86, %c0_87, %c0_88] : memref<1x8x8x128xbf16, #tpu.memory_space<vmem>>, vector<1x8x8x128xbf16>
    %88 = vector.shape_cast %87 : vector<1x8x8x128xbf16> to vector<8x8x128xbf16>
    %89 = vector.shape_cast %86 : vector<8x8x128xbf16> to vector<1x8x8x128xbf16>
    tpu.vector_store %arg6[%c0_85, %c0_86, %c0_87, %c0_88], %89 {strides = array<i32>} : memref<1x8x8x128xbf16, #tpu.memory_space<vmem>>, vector<1x8x8x128xbf16>,
    %cst_89 = arith.constant dense<0.000000e+00> : vector<128xf32>
    %90 = vector.multi_reduction <add>, %84, %cst_89 [0] : vector<64x128xf32> to vector<128xf32>
    %91 = vector.shape_cast %90 : vector<128xf32> to vector<1x128xf32>
    %92 = arith.mulf %84, %84 : vector<64x128xf32>
    %cst_90 = arith.constant dense<0.000000e+00> : vector<128xf32>
    %93 = vector.multi_reduction <add>, %92, %cst_90 [0] : vector<64x128xf32> to vector<128xf32>
    %94 = vector.shape_cast %93 : vector<128xf32> to vector<1x128xf32>
    %95 = tpu.concatenate %91, %94 in 0 : vector<1x128xf32>, vector<1x128xf32> -> vector<2x128xf32>
    %c0_91 = arith.constant 0 : index
    %c0_92 = arith.constant 0 : index
    %c0_93 = arith.constant 0 : index
    %c0_94 = arith.constant 0 : index
    %96 = vector.load %arg7[%c0_91, %c0_92, %c0_93, %c0_94] : memref<1x1x2x128xf32, #tpu.memory_space<vmem>>, vector<1x1x2x128xf32>
    %97 = vector.shape_cast %96 : vector<1x1x2x128xf32> to vector<2x128xf32>
    %98 = vector.shape_cast %95 : vector<2x128xf32> to vector<1x1x2x128xf32>
    tpu.vector_store %arg7[%c0_91, %c0_92, %c0_93, %c0_94], %98 {strides = array<i32>} : memref<1x1x2x128xf32, #tpu.memory_space<vmem>>, vector<1x1x2x128xf32>,
    return
  }
  func.func @transform_0(%arg0: i32, %arg1: i32) -> (i32, i32, i32, i32) {
    %c0_i32 = arith.constant 0 : i32
    %c0_i32_0 = arith.constant 0 : i32
    %c0_i32_1 = arith.constant 0 : i32
    %c0_i32_2 = arith.constant 0 : i32
    return %arg0, %c0_i32, %c0_i32_0, %c0_i32_1 : i32, i32, i32, i32
  }
  func.func @transform_1(%arg0: i32, %arg1: i32) -> (i32, i32) {
    %c0_i32 = arith.constant 0 : i32
    %c0_i32_0 = arith.constant 0 : i32
    %c0_i32_1 = arith.constant 0 : i32
    return %c0_i32, %c0_i32_0 : i32, i32
  }
  func.func @transform_2(%arg0: i32, %arg1: i32) -> (i32, i32) {
    %c0_i32 = arith.constant 0 : i32
    %c0_i32_0 = arith.constant 0 : i32
    %c0_i32_1 = arith.constant 0 : i32
    return %c0_i32, %c0_i32_0 : i32, i32
  }
  func.func @transform_3(%arg0: i32, %arg1: i32) -> (i32, i32, i32, i32) {
    %c0_i32 = arith.constant 0 : i32
    %c0_i32_0 = arith.constant 0 : i32
    %c0_i32_1 = arith.constant 0 : i32
    %c0_i32_2 = arith.constant 0 : i32
    %c0_i32_3 = arith.constant 0 : i32
    return %c0_i32, %c0_i32_0, %c0_i32_1, %c0_i32_2 : i32, i32, i32, i32
  }
  func.func @transform_4(%arg0: i32, %arg1: i32) -> (i32, i32, i32, i32) {
    %c0_i32 = arith.constant 0 : i32
    %c0_i32_0 = arith.constant 0 : i32
    %c0_i32_1 = arith.constant 0 : i32
    return %arg0, %arg1, %c0_i32, %c0_i32_0 : i32, i32, i32, i32
  }
  func.func @transform_5(%arg0: i32, %arg1: i32) -> (i32, i32, i32, i32) {
    %c0_i32 = arith.constant 0 : i32
    %c0_i32_0 = arith.constant 0 : i32
    %c0_i32_1 = arith.constant 0 : i32
    return %arg0, %arg1, %c0_i32, %c0_i32_0 : i32, i32, i32, i32
  }
}

module attributes {stable_mosaic.version = 11 : i64} {
  func.func @kernel(%arg0: i32, %arg1: i32, %arg2: memref<1x8x8x128xbf16, #tpu.memory_space<vmem>>, %arg3: memref<1x8x8x4xbf16, #tpu.memory_space<vmem>>, %arg4: memref<4x128xbf16, #tpu.memory_space<vmem>>, %arg5: memref<1x128xf32, #tpu.memory_space<vmem>>, %arg6: memref<1x128xf32, #tpu.memory_space<vmem>>, %arg7: memref<1x128xf32, #tpu.memory_space<vmem>>, %arg8: memref<1x128xf32, #tpu.memory_space<vmem>>, %arg9: memref<1x8x8x128xbf16, #tpu.memory_space<vmem>>) attributes {dimension_semantics = [#tpu.dimension_semantics<parallel>, #tpu.dimension_semantics<parallel>], iteration_bounds = array<i64: 2, 1>, scalar_prefetch = 0 : i64, scratch_operands = 0 : i64, tpu.core_type = #tpu.core_type<tc>, window_params = [{transform_indices = @transform_0, window_bounds = array<i64: 1, 8, 8, 128>}, {transform_indices = @transform_1, window_bounds = array<i64: 1, 8, 8, 4>}, {pipeline_mode = #tpu.pipeline_mode<synchronous>, transform_indices = @transform_2, window_bounds = array<i64: 4, 128>}, {pipeline_mode = #tpu.pipeline_mode<synchronous>, transform_indices = @transform_3, window_bounds = array<i64: 1, 128>}, {pipeline_mode = #tpu.pipeline_mode<synchronous>, transform_indices = @transform_4, window_bounds = array<i64: 1, 128>}, {pipeline_mode = #tpu.pipeline_mode<synchronous>, transform_indices = @transform_5, window_bounds = array<i64: 1, 128>}, {pipeline_mode = #tpu.pipeline_mode<synchronous>, transform_indices = @transform_6, window_bounds = array<i64: 1, 128>}, {transform_indices = @transform_7, window_bounds = array<i64: 1, 8, 8, 128>}]} {
    %c0 = arith.constant 0 : index
    %c0_0 = arith.constant 0 : index
    %c0_1 = arith.constant 0 : index
    %c0_2 = arith.constant 0 : index
    %0 = vector.load %arg2[%c0, %c0_0, %c0_1, %c0_2] : memref<1x8x8x128xbf16, #tpu.memory_space<vmem>>, vector<1x8x8x128xbf16>
    %1 = vector.shape_cast %0 : vector<1x8x8x128xbf16> to vector<8x8x128xbf16>
    %2 = arith.extf %1 : vector<8x8x128xbf16> to vector<8x8x128xf32>
    %c0_3 = arith.constant 0 : index
    %c0_4 = arith.constant 0 : index
    %3 = vector.load %arg5[%c0_3, %c0_4] : memref<1x128xf32, #tpu.memory_space<vmem>>, vector<1x128xf32>
    %4 = vector.shape_cast %3 : vector<1x128xf32> to vector<1x1x128xf32>
    %5 = vector.broadcast %4 : vector<1x1x128xf32> to vector<8x8x128xf32>
    %6 = arith.mulf %2, %5 : vector<8x8x128xf32>
    %c0_5 = arith.constant 0 : index
    %c0_6 = arith.constant 0 : index
    %7 = vector.load %arg6[%c0_5, %c0_6] : memref<1x128xf32, #tpu.memory_space<vmem>>, vector<1x128xf32>
    %8 = vector.shape_cast %7 : vector<1x128xf32> to vector<1x1x128xf32>
    %9 = vector.broadcast %8 : vector<1x1x128xf32> to vector<8x8x128xf32>
    %10 = arith.addf %6, %9 : vector<8x8x128xf32>
    %c0_7 = arith.constant 0 : index
    %c0_8 = arith.constant 0 : index
    %c0_9 = arith.constant 0 : index
    %c0_10 = arith.constant 0 : index
    %11 = vector.load %arg3[%c0_7, %c0_8, %c0_9, %c0_10] : memref<1x8x8x4xbf16, #tpu.memory_space<vmem>>, vector<1x8x8x4xbf16>
    %12 = vector.shape_cast %11 : vector<1x8x8x4xbf16> to vector<8x8x4xbf16>
    %13 = vector.shape_cast %12 : vector<8x8x4xbf16> to vector<64x4xbf16>
    %c0_11 = arith.constant 0 : index
    %c0_12 = arith.constant 0 : index
    %14 = vector.load %arg4[%c0_11, %c0_12] : memref<4x128xbf16, #tpu.memory_space<vmem>>, vector<4x128xbf16>
    %cst = arith.constant dense<0.000000e+00> : vector<64x128xf32>
    %15 = tpu.matmul %13, %14, %cst {dimension_numbers = #tpu.dot_dimension_numbers<[1], [0], [0], [1], [0, 0, 1, 1], [], []>} : vector<64x4xbf16>, vector<4x128xbf16>, vector<64x128xf32> -> vector<64x128xf32>
    %16 = vector.shape_cast %15 : vector<64x128xf32> to vector<8x8x128xf32>
    %c0_13 = arith.constant 0 : index
    %c0_14 = arith.constant 0 : index
    %17 = vector.load %arg7[%c0_13, %c0_14] : memref<1x128xf32, #tpu.memory_space<vmem>>, vector<1x128xf32>
    %18 = vector.shape_cast %17 : vector<1x128xf32> to vector<1x1x128xf32>
    %19 = vector.broadcast %18 : vector<1x1x128xf32> to vector<8x8x128xf32>
    %20 = arith.mulf %16, %19 : vector<8x8x128xf32>
    %c0_15 = arith.constant 0 : index
    %c0_16 = arith.constant 0 : index
    %21 = vector.load %arg8[%c0_15, %c0_16] : memref<1x128xf32, #tpu.memory_space<vmem>>, vector<1x128xf32>
    %22 = vector.shape_cast %21 : vector<1x128xf32> to vector<1x1x128xf32>
    %23 = vector.broadcast %22 : vector<1x1x128xf32> to vector<8x8x128xf32>
    %24 = arith.addf %20, %23 : vector<8x8x128xf32>
    %25 = arith.addf %10, %24 : vector<8x8x128xf32>
    %26 = arith.negf %25 : vector<8x8x128xf32>
    %27 = math.exp %26 : vector<8x8x128xf32>
    %cst_17 = arith.constant 1.000000e+00 : f32
    %28 = vector.broadcast %cst_17 : f32 to vector<8x8x128xf32>
    %29 = arith.addf %28, %27 : vector<8x8x128xf32>
    %30 = arith.divf %28, %29 : vector<8x8x128xf32>
    %31 = arith.mulf %25, %30 : vector<8x8x128xf32>
    %32 = arith.truncf %31 : vector<8x8x128xf32> to vector<8x8x128xbf16>
    %c0_18 = arith.constant 0 : index
    %c0_19 = arith.constant 0 : index
    %c0_20 = arith.constant 0 : index
    %c0_21 = arith.constant 0 : index
    %33 = vector.load %arg9[%c0_18, %c0_19, %c0_20, %c0_21] : memref<1x8x8x128xbf16, #tpu.memory_space<vmem>>, vector<1x8x8x128xbf16>
    %34 = vector.shape_cast %33 : vector<1x8x8x128xbf16> to vector<8x8x128xbf16>
    %35 = vector.shape_cast %32 : vector<8x8x128xbf16> to vector<1x8x8x128xbf16>
    tpu.vector_store %arg9[%c0_18, %c0_19, %c0_20, %c0_21], %35 {strides = array<i32>} : memref<1x8x8x128xbf16, #tpu.memory_space<vmem>>, vector<1x8x8x128xbf16>,
    return
  }
  func.func @transform_0(%arg0: i32, %arg1: i32) -> (i32, i32, i32, i32) {
    %c0_i32 = arith.constant 0 : i32
    %c0_i32_0 = arith.constant 0 : i32
    %c0_i32_1 = arith.constant 0 : i32
    return %arg0, %arg1, %c0_i32, %c0_i32_0 : i32, i32, i32, i32
  }
  func.func @transform_1(%arg0: i32, %arg1: i32) -> (i32, i32, i32, i32) {
    %c0_i32 = arith.constant 0 : i32
    %c0_i32_0 = arith.constant 0 : i32
    %c0_i32_1 = arith.constant 0 : i32
    return %arg0, %arg1, %c0_i32, %c0_i32_0 : i32, i32, i32, i32
  }
  func.func @transform_2(%arg0: i32, %arg1: i32) -> (i32, i32) {
    %c0_i32 = arith.constant 0 : i32
    %c0_i32_0 = arith.constant 0 : i32
    %c0_i32_1 = arith.constant 0 : i32
    return %c0_i32, %c0_i32_0 : i32, i32
  }
  func.func @transform_3(%arg0: i32, %arg1: i32) -> (i32, i32) {
    %c0_i32 = arith.constant 0 : i32
    %c0_i32_0 = arith.constant 0 : i32
    %c0_i32_1 = arith.constant 0 : i32
    return %c0_i32, %c0_i32_0 : i32, i32
  }
  func.func @transform_4(%arg0: i32, %arg1: i32) -> (i32, i32) {
    %c0_i32 = arith.constant 0 : i32
    %c0_i32_0 = arith.constant 0 : i32
    %c0_i32_1 = arith.constant 0 : i32
    return %c0_i32, %c0_i32_0 : i32, i32
  }
  func.func @transform_5(%arg0: i32, %arg1: i32) -> (i32, i32) {
    %c0_i32 = arith.constant 0 : i32
    %c0_i32_0 = arith.constant 0 : i32
    %c0_i32_1 = arith.constant 0 : i32
    return %c0_i32, %c0_i32_0 : i32, i32
  }
  func.func @transform_6(%arg0: i32, %arg1: i32) -> (i32, i32) {
    %c0_i32 = arith.constant 0 : i32
    %c0_i32_0 = arith.constant 0 : i32
    %c0_i32_1 = arith.constant 0 : i32
    return %c0_i32, %c0_i32_0 : i32, i32
  }
  func.func @transform_7(%arg0: i32, %arg1: i32) -> (i32, i32, i32, i32) {
    %c0_i32 = arith.constant 0 : i32
    %c0_i32_0 = arith.constant 0 : i32
    %c0_i32_1 = arith.constant 0 : i32
    return %arg0, %arg1, %c0_i32, %c0_i32_0 : i32, i32, i32, i32
  }
}

</mosaic_0001>

<bundles_post_ra>
// kernel: downsampling_forward.5
= control target key start
LH: loop header
LB: loop body
LE: loop exit
PB: predicated region body
PF: predicated region fallthrough
CT: control target
= control target key end

     0   :  { %s1000_s24 = smov 0   ;;  %s1002_s25 = smov 0   ;;  %s1272_s0 = inlined_call_operand.vmem [shape: bf16[2,8,8,128], index: 0, kind: input, shape index: {}]   ;;  %s1273_s1 = inlined_call_operand.vmem [shape: bf16[2,8,8,4], index: 1, kind: input, shape index: {}]   ;;  %s1274_s2 = inlined_call_operand.vmem [shape: bf16[4,128], index: 2, kind: input, shape index: {}]   ;;  %s1275_s3 = inlined_call_operand.vmem [shape: f32[1,128], index: 3, kind: input, shape index: {}]   ;;  %s1276_s4 = inlined_call_operand.vmem [shape: f32[1,128], index: 4, kind: input, shape index: {}]   ;;  %s1277_s5 = inlined_call_operand.vmem [shape: f32[1,128], index: 5, kind: input, shape index: {}]   ;;  %s1278_s6 = inlined_call_operand.vmem [shape: f32[1,128], index: 6, kind: input, shape index: {}]   ;;  %s1279_s7 = inlined_call_operand.vmem [shape: bf16[2,8,8,128], index: 7, kind: output, shape index: {}]  }
   0x1   :  { %s1004_s26 = smov 0  }
   0x2 LB: > { %s29_s27 = sadd.s32 1, %s954_s25  ;;  %p787_p0 = scmp.ge.s32.totalorder %s958_s26, 1  ;;  %s958_s26 = sphi %s1004_s26, %s17_s26   ;;  %s954_s25 = sphi %s1002_s25, %s1295_s25   ;;  %s950_s24 = sphi %s1000_s24, %s1294_s24  }
   0x3   : > { %p31_p1 = scmp.ge.s32.totalorder %s29_s27, 2  ;;  %p275_p2 = scmp.lt.s32.totalorder %s958_s26, 3 }
   0x5   : > { %s1297_s27 = smov (%p31_p1, %s29_s27), 0  ;;  %p276_p3 = pnand %p787_p0, %p275_p2 }
   0x6   : > { %p325_p4 = scmp.lt.s32.totalorder (!%p276_p3), %s950_s24, 1 }
   0x7   : > { %279 = sbr.rel (%p276_p3) target bundleno = 204 (0xcc), region = 48 }
   0xc   : > { %v403_v0 = vld [vmem:[%s1274_s2] sm:$0x3]  ;;  %vm437_vm0 = vcmask 1041408   ;;  %s1299_s24 = smov (!%p325_p4, %s950_s24), 1  ;;  %vm424_vm1 = vcmask 31744  }
   0xd   : > { %v439_v1 = vsel %vm437_vm0, %v403_v0, 0  ;;  %s1021_s30 = sshll.u32 %s1299_s24, 5  ;;  %v1034_v9 = vld [vmem:[%s1275_s3] ss:$0 sm:$0xff] }
   0xe   : > { %448 = vmatpush.bf16.msra.mxu0 %v439_v1  ;;  %873 = vmatpush.bf16.msra.mxu1 %v439_v1  ;;  %s342_s10 = scalar_lea.vmem %s1273_s1, %s1021_s30  ;;  %s332_s13 = scalar_lea.vmem %s1272_s0, %s1021_s30  ;;  %v1040_v12 = vld [vmem:[%s1276_s4] ss:$0 sm:$0xff] }
   0xf   : > { %874 = vmatpush.bf16.msra.mxu2 %v439_v1  ;;  %875 = vmatpush.bf16.msra.mxu3 %v439_v1  ;;  %v827_v2 = vld [vmem:[%s342_s10] sm:$0xff]  ;;  %v828_v3 = vld [vmem:[%s342_s10 + $0x8] sm:$0xff]  ;;  %v829_v4 = vld [vmem:[%s342_s10 + $0x10] sm:$0xff]  ;;  %s1233_s24 = scalar_lea.vmem %s1279_s7, %s1021_s30 }
  0x10   : > { %v830_v5 = vld [vmem:[%s342_s10 + $0x18] sm:$0xff]  ;;  %v832_v6 = vld [vmem:[%s332_s13] sm:$0xff]   ;;  %v867_v7 = vld [vmem:[%s332_s13 + $0x8] sm:$0xff]  }
  0x11   : > { %810 = vmatmul.msk.bf16.vlgmr.msra.gmra.mxu0 %vm424_vm1, %v827_v2  ;;  %811 = vmatmul.msk.bf16.vlgmr.msra.gmra.mxu1 %vm424_vm1, %v828_v3  ;;  %v833_v8 = vunpack.c.l.bf16 %v832_v6  ;;  %v837_v10 = vunpack.c.l.bf16 %v867_v7  ;;  %v868_v13 = vld [vmem:[%s332_s13 + $0x10] sm:$0xff]   ;;  %v1045_v14 = vld [vmem:[%s1277_s5] ss:$0 sm:$0xff]  ;;  %v1048_v16 = vld [vmem:[%s332_s13 + $0x18] sm:$0xff]   ;;  %v834_v23 = vunpack.c.h.bf16 %v832_v6  ;;  %v838_v27 = vunpack.c.h.bf16 %v867_v7 }
  0x12   : > { %812 = vmatmul.msk.bf16.vlgmr.msra.gmra.mxu2 %vm424_vm1, %v829_v4  ;;  %813 = vmatmul.msk.bf16.vlgmr.msra.gmra.mxu3 %vm424_vm1, %v830_v5  ;;  %v1053_v17 = vld [vmem:[%s1278_s6] ss:$0 sm:$0xff]  ;;  %v841_v18 = vunpack.c.l.bf16 %v868_v13  ;;  %v845_v22 = vunpack.c.l.bf16 %v1048_v16  ;;  %v842_v52 = vunpack.c.h.bf16 %v868_v13  ;;  %v846_v0 = vunpack.c.h.bf16 %v1048_v16 }
  0x13   : > { %v375_v11 = vmul.f32 %v1034_v9, %v833_v8  ;;  %v377_v15 = vmul.f32 %v1034_v9, %v837_v10  ;;  %v376_v32 = vmul.f32 %v1034_v9, %v834_v23  ;;  %v378_v35 = vmul.f32 %v1034_v9, %v838_v27 }
  0x14   : > { %v379_v30 = vmul.f32 %v1034_v9, %v841_v18  ;;  %v381_v31 = vmul.f32 %v1034_v9, %v845_v22  ;;  %v380_v61 = vmul.f32 %v1034_v9, %v842_v52 }
  0x15   : > { %v387_v19 = vadd.f32 %v1040_v12, %v375_v11  ;;  %v389_v25 = vadd.f32 %v1040_v12, %v377_v15  ;;  %v388_v44 = vadd.f32 %v1040_v12, %v376_v32  ;;  %v390_v48 = vadd.f32 %v1040_v12, %v378_v35 }
  0x16   : > { %v391_v38 = vadd.f32 %v1040_v12, %v379_v30  ;;  %v393_v42 = vadd.f32 %v1040_v12, %v381_v31  ;;  %v392_v7 = vadd.f32 %v1040_v12, %v380_v61  ;;  %v382_v11 = vmul.f32 %v1034_v9, %v846_v0 }
  0x8e   : > { %v450_v20 = vpop.f32.mrf.mxu0  ;;  %v455_v21 = vpop.f32.mrf.mxu1 }
  0x8f   : > { %v474_v24 = vmul.f32 %v1045_v14, %v450_v20  ;;  %v476_v26 = vmul.f32 %v1045_v14, %v455_v21  ;;  %v394_v21 = vadd.f32 %v1040_v12, %v382_v11 }
  0x91   : > { %v486_v28 = vadd.f32 %v1053_v17, %v474_v24  ;;  %v488_v29 = vadd.f32 %v1053_v17, %v476_v26 }
  0x93   : > { %v1065_v33 = vadd.f32 %v486_v28, %v387_v19  ;;  %v1067_v34 = vadd.f32 %v488_v29, %v389_v25 }
  0x95   : > { %v814_v36 = vmul.f32 -1.442695, %v1065_v33  ;;  %v816_v37 = vmul.f32 -1.442695, %v1067_v34  ;;  %v460_v39 = vpop.f32.mrf.mxu2  ;;  %v465_v40 = vpop.f32.mrf.mxu3 }
  0x96   : > { %v478_v41 = vmul.f32 %v1045_v14, %v460_v39  ;;  %v480_v43 = vmul.f32 %v1045_v14, %v465_v40  ;;  %v452_v45 = vpop.f32.mrf.mxu0  ;;  %v457_v46 = vpop.f32.mrf.mxu1 }
  0x97   : > { %904 = vpow2.f32 %v814_v36  ;;  %v475_v47 = vmul.f32 %v1045_v14, %v452_v45  ;;  %v477_v49 = vmul.f32 %v1045_v14, %v457_v46 }
  0x98   : > { %906 = vpow2.f32 %v816_v37  ;;  %v490_v50 = vadd.f32 %v1053_v17, %v478_v41  ;;  %v492_v51 = vadd.f32 %v1053_v17, %v480_v43 }
  0x99   : > { %v487_v53 = vadd.f32 %v1053_v17, %v475_v47  ;;  %v489_v54 = vadd.f32 %v1053_v17, %v477_v49 }
  0x9a   : > { %v1084_v55 = vadd.f32 %v490_v50, %v391_v38  ;;  %v1086_v56 = vadd.f32 %v492_v51, %v393_v42 }
  0x9b   : > { %v1088_v57 = vadd.f32 %v487_v53, %v388_v44  ;;  %v1090_v58 = vadd.f32 %v489_v54, %v390_v48 }
  0x9c   : > { %v818_v59 = vmul.f32 -1.442695, %v1084_v55  ;;  %v820_v60 = vmul.f32 -1.442695, %v1086_v56 }
  0x9d   : > { %v905_v62 = vpop.eup %904  ;;  %v462_v63 = vpop.f32.mrf.mxu2  ;;  %v815_v3 = vmul.f32 -1.442695, %v1088_v57  ;;  %v817_v6 = vmul.f32 -1.442695, %v1090_v58 }
  0x9e   : > { %v907_v1 = vpop.eup %906  ;;  %v1096_v2 = vadd.f32 1.0, %v905_v62  ;;  %908 = vpow2.f32 %v818_v59  ;;  %v479_v4 = vmul.f32 %v1045_v14, %v462_v63  ;;  %v467_v8 = vpop.f32.mrf.mxu3 }
  0x9f   : > { %v1100_v5 = vadd.f32 1.0, %v907_v1  ;;  %910 = vpow2.f32 %v820_v60  ;;  %v481_v13 = vmul.f32 %v1045_v14, %v467_v8 }
  0xa0   : > { %912 = vrcp.f32 %v1096_v2  ;;  %v491_v10 = vadd.f32 %v1053_v17, %v479_v4  ;;  %v543_v35 = vand.u32 2147483647, %v1096_v2  ;;  %v545_v36 = vand.u32 2147483648, %v1096_v2 }
  0xa1   : > { %914 = vrcp.f32 %v1100_v5  ;;  %v493_v14 = vadd.f32 %v1053_v17, %v481_v13  ;;  %v573_v40 = vand.u32 2147483647, %v1100_v5  ;;  %v575_v41 = vand.u32 2147483648, %v1100_v5 }
  0xa2   : > { %916 = vpow2.f32 %v815_v3  ;;  %v1109_v16 = vadd.f32 %v491_v10, %v392_v7  ;;  %vm539_vm2 = vweird.f32 %v1096_v2  ;;  %vm569_vm4 = vweird.f32 %v1100_v5 }
  0xa3   : > { %918 = vpow2.f32 %v817_v6  ;;  %v1132_v31 = vadd.f32 %v493_v14, %v394_v21  ;;  %vm1153_vm5 = vcmp.eq.f32.partialorder %v543_v35, 8.507059e+37  ;;  %v546_v46 = vor.u32 1.1754944e-38, %v545_v36 }
  0xa4   : > { %v909_v15 = vpop.eup %908  ;;  %v819_v26 = vmul.f32 -1.442695, %v1109_v16  ;;  %vm1166_vm8 = vcmp.eq.f32.partialorder %v573_v40, 8.507059e+37  ;;  %v576_v54 = vor.u32 1.1754944e-38, %v575_v41 }
  0xa5   : > { %v911_v18 = vpop.eup %910  ;;  %v1111_v19 = vadd.f32 1.0, %v909_v15  ;;  %v821_v39 = vmul.f32 -1.442695, %v1132_v31 }
  0xa6   : > { %v1113_v20 = vpop.eup %912  ;;  %v1121_v9 = vadd.f32 1.0, %v911_v18 }
  0xa7   : > { %v1116_v22 = vpop.eup %914  ;;  %v535_v23 = vmul.f32 %v1113_v20, %v1096_v2  ;;  %920 = vrcp.f32 %v1111_v19  ;;  %vm540_vm3 = vweird.f32 %v1113_v20  ;;  %v603_v59 = vand.u32 2147483647, %v1111_v19 }
  0xa8   : > { %v917_v24 = vpop.eup %916  ;;  %v565_v25 = vmul.f32 %v1116_v22, %v1100_v5  ;;  %922 = vrcp.f32 %v1121_v9  ;;  %vm570_vm6 = vweird.f32 %v1116_v22  ;;  %vm1162_vm7 = vmor %vm539_vm2, %vm540_vm3  ;;  %vm599_vm10 = vweird.f32 %v1111_v19 }
  0xa9   : > { %v919_v27 = vpop.eup %918  ;;  %v536_v28 = vsub.f32 1.0, %v535_v23  ;;  %v1128_v29 = vadd.f32 1.0, %v917_v24  ;;  %924 = vpow2.f32 %v819_v26  ;;  %vm1177_vm9 = vmor %vm569_vm4, %vm570_vm6  ;;  %v605_v0 = vand.u32 2147483648, %v1111_v19 }
  0xaa   : > { %v566_v12 = vsub.f32 1.0, %v565_v25  ;;  %v1130_v30 = vadd.f32 1.0, %v919_v27  ;;  %vm604_vm6 = vcmp.eq.f32.partialorder %v603_v59, 8.507059e+37  ;;  %v635_v53 = vand.u32 2147483648, %v1121_v9 }
  0xab   : > { %v537_v17 = vmul.f32 %v1113_v20, %v536_v28  ;;  %926 = vrcp.f32 %v1128_v29  ;;  %v558_v50 = vand.u32 2147483647, %v1128_v29  ;;  %vm554_vm11 = vweird.f32 %v1128_v29 }
  0xac   : > { %v567_v37 = vmul.f32 %v1116_v22, %v566_v12  ;;  %928 = vrcp.f32 %v1130_v30  ;;  %v560_v7 = vand.u32 2147483648, %v1128_v29  ;;  %v590_v21 = vand.u32 2147483648, %v1130_v30 }
  0xad   : > { %v1134_v32 = vpop.eup %920  ;;  %v538_v43 = vadd.f32 %v1113_v20, %v537_v17  ;;  %930 = vpow2.f32 %v821_v39  ;;  %vm1193_vm13 = vcmp.eq.f32.partialorder %v558_v50, 8.507059e+37  ;;  %vm584_vm1 = vweird.f32 %v1130_v30 }
  0xae   : > { %v595_v38 = vmul.f32 %v1134_v32, %v1111_v19  ;;  %v1147_v42 = vpop.eup %922  ;;  %v568_v47 = vadd.f32 %v1116_v22, %v567_v37  ;;  %vm600_vm12 = vweird.f32 %v1134_v32  ;;  %v561_v27 = vor.u32 1.1754944e-38, %v560_v7 }
  0xaf   : > { %v925_v44 = vpop.eup %924  ;;  %v542_v62 = vsel %vm1162_vm7, %v1113_v20, %v538_v43  ;;  %v625_v1 = vmul.f32 %v1147_v42, %v1121_v9  ;;  %v588_v20 = vand.u32 2147483647, %v1130_v30  ;;  %v591_v37 = vor.u32 1.1754944e-38, %v590_v21  ;;  %vm1221_vm3 = vmor %vm599_vm10, %vm600_vm12 }
  0xb0   : > { %v596_v49 = vsub.f32 1.0, %v595_v38  ;;  %v1160_v51 = vadd.f32 1.0, %v925_v44  ;;  %v572_v2 = vsel %vm1177_vm9, %v1116_v22, %v568_v47  ;;  %v547_v8 = vsel %vm1153_vm5, %v546_v46, %v542_v62 }
  0xb1   : > { %v927_v48 = vpop.eup %926  ;;  %v577_v15 = vsel %vm1166_vm8, %v576_v54, %v572_v2  ;;  %v626_v18 = vsub.f32 1.0, %v625_v1  ;;  %v654_v25 = vmul.f32 %v547_v8, %v1065_v33  ;;  %vm589_vm4 = vcmp.eq.f32.partialorder %v588_v20, 8.507059e+37 }
  0xb2   : > { %v550_v60 = vmul.f32 %v927_v48, %v1128_v29  ;;  %v929_v61 = vpop.eup %928  ;;  %932 = vrcp.f32 %v1160_v51  ;;  %v597_v5 = vmul.f32 %v1134_v32, %v596_v49  ;;  %vm555_vm14 = vweird.f32 %v927_v48 }
  0xb3   : > { %v580_v4 = vmul.f32 %v929_v61, %v1130_v30  ;;  %v931_v13 = vpop.eup %930  ;;  %vm585_vm15 = vweird.f32 %v929_v61  ;;  %vm556_vm0 = vmor %vm554_vm11, %vm555_vm14  ;;  %v656_v28 = vmul.f32 %v577_v15, %v1067_v34  ;;  %v627_v36 = vmul.f32 %v1147_v42, %v626_v18 }
  0xb4   : > { %v551_v3 = vsub.f32 1.0, %v550_v60  ;;  %v1204_v14 = vadd.f32 1.0, %v931_v13  ;;  %v598_v26 = vadd.f32 %v1134_v32, %v597_v5  ;;  %vm586_vm2 = vmor %vm584_vm1, %vm585_vm15  ;;  %v618_v40 = vand.u32 2147483647, %v1160_v51 }
  0xb5   : > { %v581_v11 = vsub.f32 1.0, %v580_v4  ;;  %v620_v41 = vand.u32 2147483648, %v1160_v51  ;;  %v606_v45 = vor.u32 1.1754944e-38, %v605_v0  ;;  %vm614_vm7 = vweird.f32 %v1160_v51 }
  0xb6   : > { %v552_v10 = vmul.f32 %v927_v48, %v551_v3  ;;  %934 = vrcp.f32 %v1204_v14  ;;  %v602_v39 = vsel %vm1221_vm3, %v1134_v32, %v598_v26  ;;  %v628_v49 = vadd.f32 %v1147_v42, %v627_v36 }
  0xb7   : > { %v582_v23 = vmul.f32 %v929_v61, %v581_v11  ;;  %vm630_vm8 = vweird.f32 %v1147_v42  ;;  %v621_v50 = vor.u32 1.1754944e-38, %v620_v41  ;;  %vm619_vm10 = vcmp.eq.f32.partialorder %v618_v40, 8.507059e+37 }
  0xb8   : > { %v553_v22 = vadd.f32 %v927_v48, %v552_v10  ;;  %v933_v24 = vpop.eup %932  ;;  %vm629_vm11 = vweird.f32 %v1121_v9  ;;  %v633_v60 = vand.u32 2147483647, %v1121_v9  ;;  %v650_v0 = vand.u32 2147483648, %v1204_v14 }
  0xb9   : > { %v583_v17 = vadd.f32 %v929_v61, %v582_v23  ;;  %v610_v35 = vmul.f32 %v933_v24, %v1160_v51  ;;  %vm615_vm5 = vweird.f32 %v933_v24  ;;  %vm1247_vm12 = vmor %vm629_vm11, %vm630_vm8  ;;  %v636_v3 = vor.u32 1.1754944e-38, %v635_v53 }
  0xba   : > { %v557_v12 = vsel %vm556_vm0, %v927_v48, %v553_v22  ;;  %v607_v48 = vsel %vm604_vm6, %v606_v45, %v602_v39  ;;  %vm616_vm9 = vmor %vm614_vm7, %vm615_vm5  ;;  %v632_v63 = vsel %vm1247_vm12, %v1147_v42, %v628_v49  ;;  %vm634_vm14 = vcmp.eq.f32.partialorder %v633_v60, 8.507059e+37 }
  0xbb   : > { %v562_v33 = vsel %vm1193_vm13, %v561_v27, %v557_v12  ;;  %v587_v30 = vsel %vm586_vm2, %v929_v61, %v583_v17  ;;  %v611_v38 = vsub.f32 1.0, %v610_v35  ;;  %v658_v51 = vmul.f32 %v607_v48, %v1084_v55 }
  0xbc   : > { %v655_v34 = vmul.f32 %v562_v33, %v1088_v57  ;;  %v592_v19 = vsel %vm589_vm4, %v591_v37, %v587_v30  ;;  %v935_v47 = vpop.eup %934  ;;  %v648_v55 = vand.u32 2147483647, %v1204_v14  ;;  %vm644_vm15 = vweird.f32 %v1204_v14 }
  0xbd   : > { %v657_v57 = vmul.f32 %v592_v19, %v1090_v58  ;;  %v612_v44 = vmul.f32 %v933_v24, %v611_v38  ;;  %v640_v58 = vmul.f32 %v935_v47, %v1204_v14  ;;  %vm645_vm13 = vweird.f32 %v935_v47 }
  0xbe   : > { %v850_v43 = vpack.c.bf16 %v655_v34, %v654_v25  ;;  %vm646_vm0 = vmor %vm644_vm15, %vm645_vm13  ;;  %v651_v9 = vor.u32 1.1754944e-38, %v650_v0  ;;  %vm649_vm1 = vcmp.eq.f32.partialorder %v648_v55, 8.507059e+37 }
  0xbf   : > { %v855_v32 = vpack.c.bf16 %v657_v57, %v656_v28  ;;  %v613_v46 = vadd.f32 %v933_v24, %v612_v44  ;;  %v641_v62 = vsub.f32 1.0, %v640_v58 }
  0xc0   : > { %851 = vst [vmem:[%s1233_s24] sm:$0xff] %v850_v43  }
  0xc1   : > { %870 = vst [vmem:[%s1233_s24 + $0x8] sm:$0xff] %v855_v32   ;;  %v617_v52 = vsel %vm616_vm9, %v933_v24, %v613_v46  ;;  %v642_v2 = vmul.f32 %v935_v47, %v641_v62 }
  0xc2   : > { %v622_v54 = vsel %vm619_vm10, %v621_v50, %v617_v52 }
  0xc3   : > { %v659_v61 = vmul.f32 %v622_v54, %v1109_v16  ;;  %v643_v4 = vadd.f32 %v935_v47, %v642_v2  ;;  %v637_v16 = vsel %vm634_vm14, %v636_v3, %v632_v63 }
  0xc4   : > { %v660_v6 = vmul.f32 %v637_v16, %v1086_v56 }
  0xc5   : > { %v860_v1 = vpack.c.bf16 %v659_v61, %v658_v51  ;;  %v647_v5 = vsel %vm646_vm0, %v935_v47, %v643_v4 }
  0xc6   : > { %v652_v42 = vsel %vm649_vm1, %v651_v9, %v647_v5 }
  0xc7   : > { %871 = vst [vmem:[%s1233_s24 + $0x10] sm:$0xff] %v860_v1   ;;  %v661_v7 = vmul.f32 %v652_v42, %v1132_v31 }
  0xc9   : > { %v865_v8 = vpack.c.bf16 %v661_v7, %v660_v6 }
  0xcb   : > { %872 = vst [vmem:[%s1233_s24 + $0x18] sm:$0xff] %v865_v8  }
  0xcc PF: > { %s17_s26 = sadd.s32 1, %s958_s26   ;;  %s1294_s24 = smov %s954_s25 }
  0xcd   : > { %p14_p5 = scmp.ge.s32.totalorder %s17_s26, 4   ;;  %s1295_s25 = smov %s1297_s27 }
  0xcf   :  { %16 = sbr.rel (!%p14_p5) target bundleno = 2 (0x2), region = 81 }

// kernel: downsampling_forward.3
= control target key start
LH: loop header
LB: loop body
LE: loop exit
PB: predicated region body
PF: predicated region fallthrough
CT: control target
= control target key end

     0   :  { %s1778_s15 = smov 0   ;;  %s1780_s16 = smov 0   ;;  %s2255_s0 = inlined_call_operand.vmem [shape: bf16[2,8,8,4], index: 0, kind: input, shape index: {}]   ;;  %s2256_s1 = inlined_call_operand.vmem [shape: bf16[36,256], index: 1, kind: input, shape index: {}]   ;;  %s2257_s2 = inlined_call_operand.vmem [shape: bf16[2,8,8,128], index: 2, kind: output, shape index: {0}]   ;;  %s2258_s3 = inlined_call_operand.vmem [shape: f32[2,1,2,128], index: 3, kind: output, shape index: {1}]   ;;  %s2259_s4 = inlined_call_operand.vmem [shape: f32[2,1,2,128], index: 4, kind: output, shape index: {2}]  }
   0x1   :  { %s1782_s17 = smov 0  }
   0x2 LB: > { %s27_s18 = sadd.s32 1, %s1738_s16  ;;  %p1617_p0 = scmp.ge.s32.totalorder %s1742_s17, 1  ;;  %s1742_s17 = sphi %s1782_s17, %s15_s17   ;;  %s1738_s16 = sphi %s1780_s16, %s2265_s16   ;;  %s1734_s15 = sphi %s1778_s15, %s2264_s15  }
   0x3   : > { %p29_p1 = scmp.ge.s32.totalorder %s27_s18, 2  ;;  %p185_p2 = scmp.lt.s32.totalorder %s1742_s17, 3 }
   0x5   : > { %s2267_s18 = smov (%p29_p1, %s27_s18), 0  ;;  %p186_p3 = pnand %p1617_p0, %p185_p2 }
   0x6   : > { %p229_p4 = scmp.lt.s32.totalorder (!%p186_p3), %s1734_s15, 1  ;;  %s1745_s23 = smov (!%p186_p3), 8  }
   0x7   : > { %189 = sbr.rel (%p186_p3) target bundleno = 485 (0x1e5), region = 28  ;;  %s1746_s24 = smov (!%p186_p3), 4  }
   0x8   : > { %s1747_s25 = smov (!%p186_p3), 12   ;;  %s1748_s26 = smov (!%p186_p3), 20  }
   0x9   : > { %s1749_s27 = smov (!%p186_p3), 16   ;;  %s1750_s28 = smov (!%p186_p3), 24  }
   0xa   : > { %s1751_s29 = smov (!%p186_p3), 28   ;;  %s1752_s30 = smov (!%p186_p3), 32  }
   0xc   : > { %vm263_vm0 = vcmask 27648   ;;  %vm265_vm1 = vcmask 24576   ;;  %v1744_v0 = vmov 0   ;;  %s2269_s15 = smov (!%p229_p4, %s1734_s15), 1  ;;  %vm378_vm2 = vsmask.f32 7938 }
   0xd   : > { %264 = vst.msk [vmem:[#allocation2] sm:$0xf] %vm263_vm0, %v1744_v0  ;;  %s1652_s19 = sshll.u32 %s2269_s15, 5  ;;  %vm384_vm3 = vsmask.f32 256  ;;  %vm1848_vm4 = vmand %vm263_vm0, %vm378_vm2  ;;  %vm1082_vm6 = vcmask 31744  }
   0xe   : > { %266 = vst.msk [vmem:[#allocation2 + $0x4] sm:$0x1] %vm265_vm1, %v1744_v0  ;;  %s1816_s22 = scalar_lea.vmem %s2255_s0, %s1652_s19  ;;  %vm1863_vm5 = vmand %vm265_vm1, %vm384_vm3  ;;  %vm1107_vm7 = vcmask 64512   ;;  %vm1289_vm8 = vcmask 1041408   ;;  %vm1124_vm9 = vcmask 97280   ;;  %vm1141_vm10 = vcmask 130048  }
   0xf   : > { %267 = vst.msk [vmem:[#allocation2 + $0x8] sm:$0xf] %vm263_vm0, %v1744_v0  ;;  %v289_v1 = vld [vmem:[%s1816_s22 + $0x4] sm:$0xf]  ;;  %v288_v2 = vld [vmem:[%s1816_s22] sm:$0xf] }
  0x10   : > { %268 = vst.msk [vmem:[#allocation2 + $0xc] sm:$0x1] %vm265_vm1, %v1744_v0  ;;  %v305_v8 = vshrl.u32 %v289_v1, 16  ;;  %v308_v10 = vshll.u32 %v289_v1, 16  ;;  %v297_v11 = vshrl.u32 %v288_v2, 16  ;;  %v300_v13 = vshll.u32 %v288_v2, 16 }
  0x11   : > { %269 = vst.msk [vmem:[#allocation2 + $0x10] sm:$0xf] %vm263_vm0, %v1744_v0  ;;  %v291_v14 = vld [vmem:[%s1816_s22 + $0xc] sm:$0xf]  ;;  %v293_v21 = vld [vmem:[%s1816_s22 + $0x14] sm:$0xf] }
  0x12   : > { %270 = vst.msk [vmem:[#allocation2 + $0x14] sm:$0x1] %vm265_vm1, %v1744_v0  ;;  %v1833_v12 = vrot.slane %v305_v8, 7  ;;  %v299_v17 = vrot.slane %v297_v11, 7  ;;  %v321_v18 = vshrl.u32 %v291_v14, 16  ;;  %v324_v20 = vshll.u32 %v291_v14, 16 }
  0x13   : > { %271 = vst.msk [vmem:[#allocation2 + $0x18] sm:$0xf] %vm263_vm0, %v1744_v0  ;;  %v337_v29 = vshrl.u32 %v293_v21, 16  ;;  %v340_v30 = vshll.u32 %v293_v21, 16  ;;  %v292_v41 = vld [vmem:[%s1816_s22 + $0x10] sm:$0xf] }
  0x14   : > { %v497_v3 = vld [vmem:[#allocation2] sm:$0xe]  ;;  %272 = vst.msk [vmem:[#allocation2 + $0x1c] sm:$0x1] %vm265_vm1, %v1744_v0  ;;  %v310_v25 = vor.u32 %v308_v10, %v1833_v12  ;;  %v302_v27 = vor.u32 %v300_v13, %v299_v17  ;;  %v323_v28 = vrot.slane %v321_v18, 7  ;;  %v329_v44 = vshrl.u32 %v292_v41, 16 }
  0x15   : > { %v1824_v4 = vld [vmem:[#allocation2] sm:$0xf]  ;;  %v489_v5 = vld [vmem:[#allocation2 + $0x4] sm:$0x1]  ;;  %v674_v6 = vunpack.c.l.b16 %v497_v3  ;;  %273 = vst.msk [vmem:[#allocation2 + $0x20] sm:$0xf] %vm263_vm0, %v1744_v0 }
  0x16   : > { %v570_v7 = vunpack.c.l.b16 %v1824_v4  ;;  %v571_v9 = vunpack.c.l.b16 %v489_v5  ;;  %274 = vst.msk [vmem:[#allocation2 + $0x24] sm:$0x1] %vm265_vm1, %v1744_v0  ;;  %v380_v32 = vld [vmem:[#allocation2 + $0x8] sm:$0xf]  ;;  %v326_v33 = vor.u32 %v324_v20, %v323_v28  ;;  %v327_v34 = vrot.slane %v323_v28, 4 }
  0x17   : > { %275 = vst.msk [vmem:[#allocation2 + $0x28] sm:$0xf] %vm263_vm0, %v1744_v0  ;;  %v339_v36 = vrot.slane %v337_v29, 7  ;;  %v381_v42 = vsel %vm1848_vm4, %v302_v27, %v380_v32  ;;  %v332_v47 = vshll.u32 %v292_v41, 16  ;;  %v303_v48 = vrot.slane %v299_v17, 4 }
  0x18   : > { %v682_v15 = vpack.c.b16 %v571_v9, %v674_v6  ;;  %276 = vst.msk [vmem:[#allocation2 + $0x2c] sm:$0x1] %vm265_vm1, %v1744_v0  ;;  %v586_v16 = vpack.c.b16 %v571_v9, %v570_v7  ;;  %v389_v19 = vld [vmem:[#allocation2 + $0x10] sm:$0xf]  ;;  %v331_v50 = vrot.slane %v329_v44, 7  ;;  %v311_v59 = vrot.slane %v1833_v12, 4 }
  0x19   : > { %277 = vst.msk [vmem:[#allocation2 + $0x30] sm:$0xf] %vm263_vm0, %v1744_v0  ;;  %v390_v38 = vsel %vm1848_vm4, %v310_v25, %v389_v19  ;;  %v342_v43 = vor.u32 %v340_v30, %v339_v36  ;;  %v386_v51 = vld [vmem:[#allocation2 + $0xc] sm:$0x1]  ;;  %v290_v57 = vld [vmem:[%s1816_s22 + $0x8] sm:$0xf] }
  0x1a   : > { %v690_v22 = vrot.slane %v682_v15, 1  ;;  %278 = vst.msk [vmem:[#allocation2 + $0x34] sm:$0x1] %vm265_vm1, %v1744_v0  ;;  %v595_v23 = vshrl.u32 %v586_v16, 16  ;;  %v597_v24 = vshll.u32 %v586_v16, 16  ;;  %v334_v55 = vor.u32 %v332_v47, %v331_v50 }
  0x1b   : > { %279 = vst.msk [vmem:[#allocation2 + $0x38] sm:$0xf] %vm263_vm0, %v1744_v0  ;;  %v335_v56 = vrot.slane %v331_v50, 4  ;;  %v387_v58 = vsel %vm1863_vm5, %v303_v48, %v386_v51  ;;  %v313_v60 = vshrl.u32 %v290_v57, 16  ;;  %v392_v63 = vld [vmem:[#allocation2 + $0x14] sm:$0x1] }
  0x1c   : > { %698 = vrot.lane.b32.xlu1 %v690_v22, %s1745_s23  ;;  %280 = vst.msk [vmem:[#allocation2 + $0x3c] sm:$0x1] %vm265_vm1, %v1744_v0  ;;  %v599_v31 = vrot.slane %v597_v24, 1  ;;  %v401_v35 = vld [vmem:[#allocation2 + $0x20] sm:$0xf]  ;;  %v316_v2 = vshll.u32 %v290_v57, 16  ;;  %v393_v6 = vsel %vm1863_vm5, %v311_v59, %v392_v63 }
  0x1d   : > { %281 = vst.msk [vmem:[#allocation2 + $0x40] sm:$0xf] %vm263_vm0, %v1744_v0  ;;  %v404_v40 = vld [vmem:[#allocation2 + $0x24] sm:$0x1]  ;;  %v402_v45 = vsel %vm1848_vm4, %v326_v33, %v401_v35  ;;  %v1889_v1 = vrot.slane %v313_v60, 7  ;;  %vm1158_vm11 = vcmask 162816  }
  0x1e   : > { %282 = vst.msk [vmem:[#allocation2 + $0x44] sm:$0x1] %vm265_vm1, %v1744_v0  ;;  %v600_v37 = vor.u32 %v599_v31, %v595_v23  ;;  %v405_v49 = vsel %vm1863_vm5, %v327_v34, %v404_v40  ;;  %v407_v53 = vld [vmem:[#allocation2 + $0x28] sm:$0xf]  ;;  %v395_v21 = vld [vmem:[#allocation2 + $0x18] sm:$0xf] }
  0x1f   : > { %283 = vst.msk [vmem:[#allocation2 + $0x48] sm:$0xf] %vm263_vm0, %v1744_v0  ;;  %v410_v54 = vld [vmem:[#allocation2 + $0x2c] sm:$0x1]  ;;  %v408_v61 = vsel %vm1848_vm4, %v334_v55, %v407_v53  ;;  %v318_v9 = vor.u32 %v316_v2, %v1889_v1  ;;  %vm1175_vm12 = vcmask 195584   ;;  %vm1192_vm13 = vcmask 228352  }
  0x20   : > { %284 = vst.msk [vmem:[#allocation2 + $0x4c] sm:$0x1] %vm265_vm1, %v1744_v0  ;;  %650 = vrot.lane.b32.xlu0 %v600_v37, %s1746_s24  ;;  %v413_v46 = vld [vmem:[#allocation2 + $0x30] sm:$0xf]  ;;  %v411_v62 = vsel %vm1863_vm5, %v335_v56, %v410_v54  ;;  %v343_v0 = vrot.slane %v339_v36, 4  ;;  %vm1209_vm14 = vcmask 261120  }
  0x21   : > { %391 = vst [vmem:[#allocation2 + $0x10] sm:$0xf] %v390_v38  ;;  %v414_v52 = vsel %vm1848_vm4, %v342_v43, %v413_v46  ;;  %v416_v3 = vld [vmem:[#allocation2 + $0x34] sm:$0x1]  ;;  %v396_v28 = vsel %vm1848_vm4, %v318_v9, %v395_v21  ;;  %vm1276_vm15 = vcmask 293888   ;;  %vm1404_vm0 = vcmask 1040384  }
  0x22   : > { %382 = vst [vmem:[#allocation2 + $0x8] sm:$0xf] %v381_v42  ;;  %v417_v10 = vsel %vm1863_vm5, %v343_v0, %v416_v3  ;;  %v419_v21 = vld [vmem:[#allocation2 + $0x38] sm:$0xf] }
  0x23   : > { %403 = vst [vmem:[#allocation2 + $0x20] sm:$0xf] %v402_v45 }
  0x24   : > { %406 = vst [vmem:[#allocation2 + $0x24] sm:$0x1] %v405_v49 }
  0x25   : > { %415 = vst [vmem:[#allocation2 + $0x30] sm:$0xf] %v414_v52 }
  0x26   : > { %409 = vst [vmem:[#allocation2 + $0x28] sm:$0xf] %v408_v61 }
  0x27   : > { %388 = vst [vmem:[#allocation2 + $0xc] sm:$0x1] %v387_v58  ;;  %v294_v58 = vld [vmem:[%s1816_s22 + $0x18] sm:$0xf] }
  0x28   : > { %v506_v5 = vld [vmem:[#allocation2 + $0x10] sm:$0xf]  ;;  %412 = vst [vmem:[#allocation2 + $0x2c] sm:$0x1] %v411_v62  ;;  %v348_v9 = vshll.u32 %v294_v58, 16 }
  0x29   : > { %v1893_v7 = vunpack.c.l.b16 %v506_v5  ;;  %v505_v8 = vld [vmem:[#allocation2 + $0x8] sm:$0xf]  ;;  %394 = vst [vmem:[#allocation2 + $0x14] sm:$0x1] %v393_v6  ;;  %v345_v5 = vshrl.u32 %v294_v58, 16 }
  0x2a   : > { %v722_v11 = vunpack.c.l.b16 %v505_v8  ;;  %v501_v12 = vld [vmem:[#allocation2 + $0x20] sm:$0xe]  ;;  %v521_v17 = vld [vmem:[#allocation2 + $0x8] sm:$0xe]  ;;  %418 = vst [vmem:[#allocation2 + $0x34] sm:$0x1] %v417_v10 }
  0x2b   : > { %v1898_v13 = vld [vmem:[#allocation2 + $0x20] sm:$0xf]  ;;  %v731_v14 = vpack.c.b16 %v1893_v7, %v1893_v7  ;;  %v493_v15 = vld [vmem:[#allocation2 + $0x24] sm:$0x1]  ;;  %v678_v16 = vunpack.c.l.b16 %v501_v12  ;;  %v498_v25 = vld [vmem:[#allocation2 + $0x8] sm:$0xe]  ;;  %v858_v32 = vunpack.c.l.b16 %v521_v17 }
  0x2c   : > { %v730_v18 = vpack.c.b16 %v722_v11, %v722_v11  ;;  %v579_v19 = vunpack.c.l.b16 %v493_v15  ;;  %v510_v20 = vld [vmem:[#allocation2 + $0x30] sm:$0xf]  ;;  %v578_v22 = vunpack.c.l.b16 %v1898_v13  ;;  %v1906_v27 = vld [vmem:[#allocation2 + $0x8] sm:$0xf]  ;;  %397 = vst [vmem:[#allocation2 + $0x18] sm:$0xf] %v396_v28  ;;  %v675_v38 = vunpack.c.l.b16 %v498_v25 }
  0x2d   : > { %740 = vrot.lane.b32.xlu1 %v731_v14, %s1747_s25  ;;  %v1904_v23 = vunpack.c.l.b16 %v510_v20  ;;  %v509_v24 = vld [vmem:[#allocation2 + $0x28] sm:$0xf]  ;;  %v572_v43 = vunpack.c.l.b16 %v1906_v27  ;;  %v319_v10 = vrot.slane %v1889_v1, 4 }
  0x2e   : > { %738 = vrot.lane.b32.xlu0 %v730_v18, %s1747_s25  ;;  %v686_v29 = vpack.c.b16 %v579_v19, %v678_v16  ;;  %v726_v30 = vunpack.c.l.b16 %v509_v24  ;;  %v513_v31 = vld [vmem:[#allocation2 + $0xc] sm:$0x1]  ;;  %v502_v36 = vld [vmem:[#allocation2 + $0x28] sm:$0xe]  ;;  %v590_v40 = vpack.c.b16 %v579_v19, %v578_v22  ;;  %v347_v16 = vrot.slane %v345_v5, 7 }
  0x2f   : > { %v490_v33 = vld [vmem:[#allocation2 + $0xc] sm:$0x1]  ;;  %v762_v34 = vunpack.c.l.b16 %v513_v31  ;;  %v735_v41 = vpack.c.b16 %v1904_v23, %v1904_v23  ;;  %v679_v47 = vunpack.c.l.b16 %v502_v36  ;;  %v1915_v48 = vld [vmem:[#allocation2 + $0x28] sm:$0xf]  ;;  %v522_v19 = vld [vmem:[#allocation2 + $0x10] sm:$0xe] }
  0x30   : > { %v494_v35 = vld [vmem:[#allocation2 + $0x2c] sm:$0x1]  ;;  %v694_v37 = vrot.slane %v686_v29, 1  ;;  %v573_v42 = vunpack.c.l.b16 %v490_v33  ;;  %v734_v44 = vpack.c.b16 %v726_v30, %v726_v30  ;;  %v625_v50 = vshll.u32 %v590_v40, 16  ;;  %v514_v3 = vld [vmem:[#allocation2 + $0x14] sm:$0x1] }
  0x31   : > { %v866_v45 = vpack.c.b16 %v762_v34, %v858_v32  ;;  %v581_v46 = vunpack.c.l.b16 %v494_v35  ;;  %v770_v51 = vpack.c.b16 %v762_v34, %v722_v11  ;;  %v580_v55 = vunpack.c.l.b16 %v1915_v48  ;;  %v1920_v56 = vld [vmem:[#allocation2 + $0x2c] sm:$0x1]  ;;  %v398_v11 = vld [vmem:[#allocation2 + $0x1c] sm:$0x1]  ;;  %v518_v34 = vld [vmem:[#allocation2 + $0x34] sm:$0x1] }
  0x32   : > { %706 = vrot.lane.b32.xlu2 %v694_v37, %s1745_s23  ;;  %v683_v49 = vpack.c.b16 %v573_v42, %v675_v38  ;;  %v587_v54 = vpack.c.b16 %v573_v42, %v572_v43  ;;  %v623_v57 = vshrl.u32 %v590_v40, 16  ;;  %v627_v60 = vrot.slane %v625_v50, 1  ;;  %v1938_v43 = vld [vmem:[#allocation2 + $0x14] sm:$0x1]  ;;  %v525_v5 = vld [vmem:[#allocation2 + $0x28] sm:$0xe] }
  0x33   : > { %v874_v52 = vrot.slane %v866_v45, 1  ;;  %v687_v53 = vpack.c.b16 %v581_v46, %v679_v47  ;;  %v781_v61 = vshll.u32 %v770_v51, 16  ;;  %v766_v62 = vunpack.c.l.b16 %v1920_v56  ;;  %v422_v45 = vld [vmem:[#allocation2 + $0x3c] sm:$0x1]  ;;  %v531_v47 = vld [vmem:[#allocation2 + $0x18] sm:$0xf] }
  0x34   : > { %v691_v59 = vrot.slane %v683_v49, 1  ;;  %v604_v0 = vshll.u32 %v587_v54, 16  ;;  %v591_v2 = vpack.c.b16 %v581_v46, %v580_v55  ;;  %v779_v6 = vshrl.u32 %v770_v51, 16 }
  0x35   : > { %748 = vrot.lane.b32.xlu1 %v735_v41, %s1747_s25  ;;  %v695_v63 = vrot.slane %v687_v53, 1  ;;  %v602_v8 = vshrl.u32 %v587_v54, 16  ;;  %v628_v12 = vor.u32 %v627_v60, %v623_v57  ;;  %v783_v14 = vrot.slane %v781_v61, 1  ;;  %v530_v41 = vld [vmem:[#allocation2 + $0x10] sm:$0xf] }
  0x36   : > { %746 = vrot.lane.b32.xlu0 %v734_v44, %s1747_s25  ;;  %v774_v15 = vpack.c.b16 %v766_v62, %v726_v30  ;;  %v606_v17 = vrot.slane %v604_v0, 1  ;;  %v632_v18 = vshll.u32 %v591_v2, 16  ;;  %v763_v20 = vunpack.c.l.b16 %v514_v3  ;;  %v526_v60 = vld [vmem:[#allocation2 + $0x30] sm:$0xe] }
  0x37   : > { %v399_v22 = vsel %vm1863_vm5, %v319_v10, %v398_v11  ;;  %v350_v1 = vor.u32 %v348_v9, %v347_v16  ;;  %v784_v24 = vor.u32 %v783_v14, %v779_v6  ;;  %v859_v28 = vunpack.c.l.b16 %v522_v19  ;;  %v534_v14 = vld [vmem:[#allocation2 + $0x30] sm:$0xf] }
  0x38   : > { %400 = vst [vmem:[#allocation2 + $0x1c] sm:$0x1] %v399_v22  ;;  %v809_v25 = vshll.u32 %v774_v15, 16  ;;  %v607_v30 = vor.u32 %v606_v17, %v602_v8  ;;  %v630_v31 = vshrl.u32 %v591_v2, 16  ;;  %v634_v32 = vrot.slane %v632_v18, 1 }
  0x39   : > { %v420_v29 = vsel %vm1848_vm4, %v350_v1, %v419_v21  ;;  %v771_v33 = vpack.c.b16 %v763_v20, %v1893_v7  ;;  %v807_v35 = vshrl.u32 %v774_v15, 16  ;;  %v867_v37 = vpack.c.b16 %v763_v20, %v859_v28  ;;  %v542_v15 = vld [vmem:[#allocation2 + $0x34] sm:$0x1] }
  0x3a   : > { %882 = vrot.lane.b32.xlu2 %v874_v52, %s1748_s26  ;;  %421 = vst [vmem:[#allocation2 + $0x38] sm:$0xf] %v420_v29  ;;  %v811_v36 = vrot.slane %v809_v25, 1  ;;  %v635_v38 = vor.u32 %v634_v32, %v630_v31  ;;  %v767_v42 = vunpack.c.l.b16 %v518_v34  ;;  %v351_v44 = vrot.slane %v347_v16, 4 }
  0x3b   : > { %v788_v40 = vshll.u32 %v771_v33, 16  ;;  %v906_v49 = vunpack.c.l.b16 %v530_v41  ;;  %v946_v50 = vunpack.c.l.b16 %v1938_v43  ;;  %v875_v51 = vrot.slane %v867_v37, 1 }
  0x3c   : > { %v423_v7 = vsel %vm1863_vm5, %v351_v44, %v422_v45  ;;  %v812_v46 = vor.u32 %v811_v36, %v807_v35  ;;  %v786_v52 = vshrl.u32 %v771_v33, 16  ;;  %v775_v54 = vpack.c.b16 %v767_v42, %v1904_v23 }
  0x3d   : > { %700 = vrot.lane.b32.xlu1 %v691_v59, %s1745_s23  ;;  %v790_v53 = vrot.slane %v788_v40, 1  ;;  %424 = vst [vmem:[#allocation2 + $0x3c] sm:$0x1] %v423_v7  ;;  %v907_v55 = vunpack.c.l.b16 %v531_v47  ;;  %v954_v57 = vpack.c.b16 %v946_v50, %v906_v49  ;;  %v914_v0 = vpack.c.b16 %v906_v49, %v906_v49  ;;  %v1960_v7 = vld [vmem:[#allocation2 + $0x18] sm:$0xf] }
  0x3e   : > { %708 = vrot.lane.b32.xlu0 %v695_v63, %s1745_s23  ;;  %v816_v59 = vshll.u32 %v775_v54, 16  ;;  %v814_v2 = vshrl.u32 %v775_v54, 16  ;;  %v863_v23 = vunpack.c.l.b16 %v526_v60  ;;  %v910_v18 = vunpack.c.l.b16 %v534_v14 }
  0x3f   : > { %v791_v58 = vor.u32 %v790_v53, %v786_v52  ;;  %v915_v61 = vpack.c.b16 %v907_v55, %v907_v55  ;;  %v965_v63 = vshll.u32 %v954_v57, 16  ;;  %v539_v6 = vld [vmem:[#allocation2 + $0x1c] sm:$0x1]  ;;  %v963_v8 = vshrl.u32 %v954_v57, 16 }
  0x40   : > { %v818_v3 = vrot.slane %v816_v59, 1  ;;  %v871_v11 = vpack.c.b16 %v767_v42, %v863_v23  ;;  %v947_v16 = vunpack.c.l.b16 %v539_v6  ;;  %v950_v19 = vunpack.c.l.b16 %v542_v15 }
  0x41   : > { %v967_v9 = vrot.slane %v965_v63, 1  ;;  %v535_v21 = vld [vmem:[#allocation2 + $0x38] sm:$0xf]  ;;  %v918_v33 = vpack.c.b16 %v910_v18, %v910_v18  ;;  %v576_v53 = vunpack.c.l.b16 %v1960_v7  ;;  %v491_v63 = vld [vmem:[#allocation2 + $0x14] sm:$0x1] }
  0x42   : > { %658 = vrot.lane.b32.xlu2 %v628_v12, %s1746_s24  ;;  %v819_v10 = vor.u32 %v818_v3, %v814_v2  ;;  %v862_v12 = vunpack.c.l.b16 %v525_v5  ;;  %v879_v20 = vrot.slane %v871_v11, 1  ;;  %v955_v1 = vpack.c.b16 %v947_v16, %v907_v55  ;;  %v551_v37 = vld [vmem:[#allocation2 + $0x38] sm:$0xe]  ;;  %v295_v2 = vld [vmem:[%s1816_s22 + $0x1c] sm:$0xf] }
  0x43   : > { %v968_v17 = vor.u32 %v967_v9, %v963_v8  ;;  %v958_v25 = vpack.c.b16 %v950_v19, %v910_v18  ;;  %v1047_v49 = vunpack.c.l.b16 %v551_v37  ;;  %v1975_v23 = vld [vmem:[#allocation2 + $0x38] sm:$0xf]  ;;  %v353_v6 = vshrl.u32 %v295_v2, 16  ;;  %v1981_v9 = vld [vmem:[#allocation2 + $0x30] sm:$0xf] }
  0x44   : > { %v870_v22 = vpack.c.b16 %v766_v62, %v862_v12  ;;  %v972_v29 = vshll.u32 %v955_v1, 16  ;;  %v970_v34 = vshrl.u32 %v955_v1, 16  ;;  %v546_v62 = vld [vmem:[#allocation2 + $0x10] sm:$0xe]  ;;  %v543_v36 = vld [vmem:[#allocation2 + $0x3c] sm:$0x1]  ;;  %v584_v18 = vunpack.c.l.b16 %v1975_v23 }
  0x45   : > { %834 = vrot.lane.b32.xlu1 %v784_v24, %s1749_s27  ;;  %v911_v24 = vunpack.c.l.b16 %v535_v21  ;;  %v993_v32 = vshll.u32 %v958_v25, 16  ;;  %v991_v40 = vshrl.u32 %v958_v25, 16  ;;  %v1042_v45 = vunpack.c.l.b16 %v546_v62  ;;  %v1977_v5 = vld [vmem:[#allocation2 + $0x3c] sm:$0x1] }
  0x46   : > { %652 = vrot.lane.b32.xlu0 %v607_v30, %s1746_s24  ;;  %v878_v28 = vrot.slane %v870_v22, 1  ;;  %v547_v30 = vld [vmem:[#allocation2 + $0x18] sm:$0xe]  ;;  %v974_v35 = vrot.slane %v972_v29, 1  ;;  %v951_v47 = vunpack.c.l.b16 %v543_v36  ;;  %v355_v14 = vrot.slane %v353_v6, 7 }
  0x47   : > { %v919_v31 = vpack.c.b16 %v911_v24, %v911_v24  ;;  %v1043_v56 = vunpack.c.l.b16 %v547_v30  ;;  %v995_v41 = vrot.slane %v993_v32, 1  ;;  %v1050_v57 = vpack.c.b16 %v946_v50, %v1042_v45  ;;  %v425_v29 = vld [vmem:[#allocation2 + $0x40] sm:$0xf]  ;;  %v428_v32 = vld [vmem:[#allocation2 + $0x44] sm:$0x1] }
  0x48   : > { %v975_v42 = vor.u32 %v974_v35, %v970_v34  ;;  %v1055_v59 = vpack.c.b16 %v951_v47, %v1047_v49  ;;  %v356_v15 = vshll.u32 %v295_v2, 16  ;;  %v582_v21 = vunpack.c.l.b16 %v1981_v9  ;;  %v500_v45 = vld [vmem:[#allocation2 + $0x18] sm:$0xe] }
  0x49   : > { %v1051_v44 = vpack.c.b16 %v947_v16, %v1043_v56  ;;  %v996_v52 = vor.u32 %v995_v41, %v991_v40  ;;  %v1058_v43 = vrot.slane %v1050_v57, 1  ;;  %v575_v16 = vunpack.c.l.b16 %v491_v63  ;;  %v515_v63 = vld [vmem:[#allocation2 + $0x1c] sm:$0x1] }
  0x4a   : > { %660 = vrot.lane.b32.xlu2 %v635_v38, %s1746_s24  ;;  %v550_v38 = vld [vmem:[#allocation2 + $0x30] sm:$0xe]  ;;  %v1063_v11 = vrot.slane %v1055_v59, 1  ;;  %v358_v1 = vor.u32 %v356_v15, %v355_v14  ;;  %v359_v30 = vrot.slane %v355_v14, 4  ;;  %v677_v59 = vunpack.c.l.b16 %v500_v45 }
  0x4b   : > { %v1059_v55 = vrot.slane %v1051_v44, 1 }
  0x4c   : > { %v429_v34 = vsel %vm1863_vm5, %v359_v30, %v428_v32  ;;  %v523_v30 = vld [vmem:[#allocation2 + $0x18] sm:$0xe] }
  0x4d   : > { %842 = vrot.lane.b32.xlu1 %v812_v46, %s1749_s27  ;;  %v1962_v46 = vld [vmem:[#allocation2 + $0x1c] sm:$0x1]  ;;  %430 = vst [vmem:[#allocation2 + $0x44] sm:$0x1] %v429_v34  ;;  %v511_v32 = vld [vmem:[#allocation2 + $0x38] sm:$0xf] }
  0x4e   : > { %884 = vrot.lane.b32.xlu0 %v875_v51, %s1748_s26  ;;  %v1046_v51 = vunpack.c.l.b16 %v550_v38  ;;  %v577_v54 = vunpack.c.l.b16 %v1962_v46 }
  0x50   : > { %v1054_v60 = vpack.c.b16 %v950_v19, %v1046_v51  ;;  %v589_v3 = vpack.c.b16 %v577_v54, %v576_v53  ;;  %v585_v19 = vunpack.c.l.b16 %v1977_v5  ;;  %v508_v53 = vld [vmem:[#allocation2 + $0x20] sm:$0xf] }
  0x52   : > { %836 = vrot.lane.b32.xlu2 %v791_v58, %s1749_s27  ;;  %v959_v58 = vpack.c.b16 %v951_v47, %v911_v24  ;;  %v1062_v12 = vrot.slane %v1054_v60, 1  ;;  %v616_v36 = vshrl.u32 %v589_v3, 16  ;;  %v507_v60 = vld [vmem:[#allocation2 + $0x18] sm:$0xf] }
  0x54   : > { %v1000_v50 = vshll.u32 %v959_v58, 16  ;;  %v998_v24 = vshrl.u32 %v959_v58, 16  ;;  %v503_v58 = vld [vmem:[#allocation2 + $0x30] sm:$0xe] }
  0x55   : > { %924 = vrot.lane.b32.xlu1 %v915_v61, %s1750_s28  ;;  %v1969_v61 = vld [vmem:[#allocation2 + $0x10] sm:$0xf]  ;;  %v680_v6 = vunpack.c.l.b16 %v503_v58 }
  0x56   : > { %922 = vrot.lane.b32.xlu0 %v914_v0, %s1750_s28  ;;  %v499_v0 = vld [vmem:[#allocation2 + $0x10] sm:$0xe]  ;;  %v574_v8 = vunpack.c.l.b16 %v1969_v61  ;;  %v1002_v25 = vrot.slane %v1000_v50, 1  ;;  %v764_v50 = vunpack.c.l.b16 %v515_v63 }
  0x58   : > { %v1003_v62 = vor.u32 %v1002_v25, %v998_v24 }
  0x5a   : > { %844 = vrot.lane.b32.xlu2 %v819_v10, %s1749_s27  ;;  %v1983_v10 = vld [vmem:[#allocation2 + $0x34] sm:$0x1] }
  0x5b   : > { %v583_v22 = vunpack.c.l.b16 %v1983_v10  ;;  %v685_v10 = vpack.c.b16 %v577_v54, %v677_v59 }
  0x5d   : > { %1018 = vrot.lane.b32.xlu1 %v968_v17, %s1751_s29  ;;  %v676_v17 = vunpack.c.l.b16 %v499_v0  ;;  %v592_v56 = vpack.c.b16 %v583_v22, %v582_v21  ;;  %v725_v0 = vunpack.c.l.b16 %v508_v53  ;;  %v693_v15 = vrot.slane %v685_v10, 1  ;;  %v504_v21 = vld [vmem:[#allocation2 + $0x38] sm:$0xe]  ;;  %v524_v53 = vld [vmem:[#allocation2 + $0x20] sm:$0xe] }
  0x5e   : > { %892 = vrot.lane.b32.xlu0 %v879_v20, %s1748_s26  ;;  %v618_v20 = vshll.u32 %v589_v3, 16  ;;  %v540_v10 = vld [vmem:[#allocation2 + $0x24] sm:$0x1] }
  0x5f   : > { %v684_v35 = vpack.c.b16 %v575_v16, %v676_v17  ;;  %v639_v41 = vshll.u32 %v592_v56, 16  ;;  %v637_v51 = vshrl.u32 %v592_v56, 16 }
  0x60   : > { %v620_v37 = vrot.slane %v618_v20, 1  ;;  %v733_v20 = vpack.c.b16 %v725_v0, %v725_v0 }
  0x61   : > { %v692_v40 = vrot.slane %v684_v35, 1 }
  0x62   : > { %890 = vrot.lane.b32.xlu2 %v878_v28, %s1748_s26  ;;  %v588_v28 = vpack.c.b16 %v575_v16, %v574_v8 }
  0x64   : > { %v611_v26 = vshll.u32 %v588_v28, 16  ;;  %v609_v44 = vshrl.u32 %v588_v28, 16  ;;  %v2015_v28 = vld [vmem:[#allocation2 + $0x44] sm:$0x1] }
  0x65   : > { %932 = vrot.lane.b32.xlu1 %v919_v31, %s1750_s28  ;;  %v426_v31 = vsel %vm1848_vm4, %v358_v1, %v425_v29  ;;  %v769_v56 = vunpack.c.l.b16 %v2015_v28  ;;  %v1230_v28 = vld [vmem:[%s2256_s1 + $0x20] sm:$0x33] }
  0x66   : > { %930 = vrot.lane.b32.xlu0 %v918_v33, %s1750_s28  ;;  %v593_v33 = vpack.c.b16 %v585_v19, %v584_v18  ;;  %427 = vst [vmem:[#allocation2 + $0x40] sm:$0xf] %v426_v31  ;;  %v613_v39 = vrot.slane %v611_v26, 1  ;;  %v681_v31 = vunpack.c.l.b16 %v504_v21 }
  0x68   : > { %v646_v38 = vshll.u32 %v593_v33, 16  ;;  %v644_v47 = vshrl.u32 %v593_v33, 16  ;;  %v614_v57 = vor.u32 %v613_v39, %v609_v44  ;;  %v519_v33 = vld [vmem:[#allocation2 + $0x3c] sm:$0x1] }
  0x6a   : > { %1020 = vrot.lane.b32.xlu2 %v975_v42, %s1751_s29  ;;  %v621_v42 = vor.u32 %v620_v37, %v616_v36  ;;  %v648_v49 = vrot.slane %v646_v38, 1  ;;  %v728_v36 = vunpack.c.l.b16 %v511_v32  ;;  %v768_v37 = vunpack.c.l.b16 %v519_v33 }
  0x6c   : > { %v649_v3 = vor.u32 %v648_v49, %v644_v47  ;;  %v776_v49 = vpack.c.b16 %v768_v37, %v728_v36 }
  0x6d   : > { %1026 = vrot.lane.b32.xlu1 %v996_v52, %s1751_s29  ;;  %v641_v52 = vrot.slane %v639_v41, 1 }
  0x6e   : > { %1068 = vrot.lane.b32.xlu0 %v1059_v55, %s1752_s30  ;;  %v2000_v55 = vld [vmem:[#allocation2 + $0x24] sm:$0x1] }
  0x6f   : > { %v765_v2 = vunpack.c.l.b16 %v2000_v55  ;;  %v642_v8 = vor.u32 %v641_v52, %v637_v51  ;;  %v823_v52 = vshll.u32 %v776_v49, 16 }
  0x71   : > { %v825_v63 = vrot.slane %v823_v52, 1 }
  0x72   : > { %1066 = vrot.lane.b32.xlu2 %v1058_v43, %s1752_s30  ;;  %v724_v43 = vunpack.c.l.b16 %v507_v60  ;;  %v821_v60 = vshrl.u32 %v776_v49, 16  ;;  %v536_v49 = vld [vmem:[#allocation2 + $0x40] sm:$0xf] }
  0x74   : > { %v772_v14 = vpack.c.b16 %v764_v50, %v724_v43  ;;  %v732_v29 = vpack.c.b16 %v724_v43, %v724_v43  ;;  %v861_v43 = vunpack.c.l.b16 %v524_v53  ;;  %v826_v21 = vor.u32 %v825_v63, %v821_v60 }
  0x75   : > { %1076 = vrot.lane.b32.xlu1 %v1063_v11, %s1752_s30  ;;  %v773_v11 = vpack.c.b16 %v765_v2, %v725_v0  ;;  %v527_v0 = vld [vmem:[#allocation2 + $0x38] sm:$0xe]  ;;  %v912_v60 = vunpack.c.l.b16 %v536_v49 }
  0x76   : > { %1074 = vrot.lane.b32.xlu0 %v1062_v12, %s1752_s30  ;;  %v688_v12 = vpack.c.b16 %v583_v22, %v680_v6  ;;  %v795_v18 = vshll.u32 %v772_v14, 16  ;;  %v793_v24 = vshrl.u32 %v772_v14, 16  ;;  %v512_v22 = vld [vmem:[#allocation2 + $0x40] sm:$0xf]  ;;  %v736_v6 = vpack.c.b16 %v728_v36, %v728_v36 }
  0x77   : > { %v802_v16 = vshll.u32 %v773_v11, 16  ;;  %v800_v46 = vshrl.u32 %v773_v11, 16  ;;  %v729_v35 = vunpack.c.l.b16 %v512_v22 }
  0x78   : > { %v696_v17 = vrot.slane %v688_v12, 1  ;;  %v797_v25 = vrot.slane %v795_v18, 1 }
  0x79   : > { %v804_v54 = vrot.slane %v802_v16, 1  ;;  %v777_v45 = vpack.c.b16 %v769_v56, %v729_v35 }
  0x7a   : > { %1028 = vrot.lane.b32.xlu2 %v1003_v62, %s1751_s29  ;;  %v860_v62 = vunpack.c.l.b16 %v523_v30  ;;  %v798_v26 = vor.u32 %v797_v25, %v793_v24 }
  0x7b   : > { %v805_v34 = vor.u32 %v804_v54, %v800_v46  ;;  %v828_v58 = vshrl.u32 %v777_v45, 16  ;;  %v869_v46 = vpack.c.b16 %v765_v2, %v861_v43 }
  0x7c   : > { %v868_v47 = vpack.c.b16 %v764_v50, %v860_v62  ;;  %v2038_v50 = vld [vmem:[#allocation2 + $0x2c] sm:$0x1] }
  0x7d   : > { %702 = vrot.lane.b32.xlu1 %v692_v40, %s1745_s23  ;;  %v689_v40 = vpack.c.b16 %v585_v19, %v681_v31  ;;  %v830_v19 = vshll.u32 %v777_v45, 16  ;;  %v2063_v45 = vld [vmem:[#allocation2 + $0x4c] sm:$0x1] }
  0x7e   : > { %656 = vrot.lane.b32.xlu0 %v621_v42, %s1746_s24  ;;  %v876_v51 = vrot.slane %v868_v47, 1  ;;  %v953_v53 = vunpack.c.l.b16 %v2063_v45 }
  0x7f   : > { %v697_v5 = vrot.slane %v689_v40, 1  ;;  %v832_v59 = vrot.slane %v830_v19, 1  ;;  %v548_v40 = vld [vmem:[#allocation2 + $0x20] sm:$0xe] }
  0x80   : > { %v1044_v52 = vunpack.c.l.b16 %v548_v40 }
  0x81   : > { %v833_v14 = vor.u32 %v832_v59, %v828_v58 }
  0x82   : > { %654 = vrot.lane.b32.xlu2 %v614_v57, %s1746_s24 }
  0x85   : > { %664 = vrot.lane.b32.xlu1 %v649_v3, %s1746_s24  ;;  %v533_v3 = vld [vmem:[#allocation2 + $0x28] sm:$0xf] }
  0x86   : > { %662 = vrot.lane.b32.xlu0 %v642_v8, %s1746_s24  ;;  %v532_v8 = vld [vmem:[#allocation2 + $0x20] sm:$0xf]  ;;  %v909_v16 = vunpack.c.l.b16 %v533_v3 }
  0x87   : > { %v908_v18 = vunpack.c.l.b16 %v532_v8 }
  0x88   : > { %v917_v2 = vpack.c.b16 %v909_v16, %v909_v16 }
  0x8a   : > { %704 = vrot.lane.b32.xlu2 %v693_v15, %s1745_s23  ;;  %v864_v15 = vunpack.c.l.b16 %v527_v0 }
  0x8c   : > { %v2012_v1 = vpop.permute.xlu2 %706  ;;  %v872_v24 = vpack.c.b16 %v768_v37, %v864_v15  ;;  %v1265_v15 = vunpack.c.h.b16 %v1230_v28 }
  0x8d   : > { %710 = vrot.lane.b32.xlu1 %v696_v17, %s1745_s23  ;;  %v949_v17 = vunpack.c.l.b16 %v2038_v50  ;;  %v1630_v50 = vld [vmem:[%s2256_s1 + $0x8] sm:$0xf0] }
  0x8e   : > { %744 = vrot.lane.b32.xlu0 %v733_v20, %s1747_s25  ;;  %v699_v41 = vpop.permute.xlu1 %698  ;;  %v948_v20 = vunpack.c.l.b16 %v540_v10  ;;  %v880_v32 = vrot.slane %v872_v24, 1  ;;  %v1271_v24 = vpack.c.b16 %v1265_v15, %v1265_v15 }
  0x8f   : > { %v957_v25 = vpack.c.b16 %v949_v17, %v909_v16 }
  0x90   : > { %v956_v22 = vpack.c.b16 %v948_v20, %v908_v18  ;;  %v1052_v3 = vpack.c.b16 %v948_v20, %v1044_v52 }
  0x91   : > { %v986_v33 = vshll.u32 %v957_v25, 16  ;;  %v984_v62 = vshrl.u32 %v957_v25, 16  ;;  %v1636_v25 = vld [vmem:[%s2256_s1 + $0x10] sm:$0xf] }
  0x92   : > { %742 = vrot.lane.b32.xlu2 %v732_v29, %s1747_s25  ;;  %v651_v38 = vpop.permute.xlu0 %650  ;;  %v877_v29 = vrot.slane %v869_v46, 1  ;;  %v979_v55 = vshll.u32 %v956_v22, 16  ;;  %v977_v37 = vshrl.u32 %v956_v22, 16  ;;  %v1060_v16 = vrot.slane %v1052_v3, 1  ;;  %v1657_v22 = vld [vmem:[%s2256_s1 + $0x14] sm:$0xf0] }
  0x93   : > { %v1085_v42 = vsel %vm1082_vm6, %v1824_v4, %v651_v38  ;;  %v737_v4 = vpack.c.b16 %v729_v35, %v729_v35  ;;  %v988_v36 = vrot.slane %v986_v33, 1  ;;  %v916_v38 = vpack.c.b16 %v908_v18, %v908_v18  ;;  %v1638_v33 = vld [vmem:[%s2256_s1 + $0x18] sm:$0xf0] }
  0x94   : > { %v2024_v44 = vpop.permute.xlu2 %882  ;;  %v2027_v39 = vsel %vm1107_vm7, %v1085_v42, %v699_v41  ;;  %v537_v42 = vld [vmem:[#allocation2 + $0x48] sm:$0xf] }
  0x95   : > { %840 = vrot.lane.b32.xlu1 %v805_v34, %s1749_s27  ;;  %v528_v34 = vld [vmem:[#allocation2 + $0x40] sm:$0xe] }
  0x96   : > { %838 = vrot.lane.b32.xlu0 %v798_v26, %s1749_s27  ;;  %v981_v26 = vrot.slane %v979_v55, 1  ;;  %v865_v41 = vunpack.c.l.b16 %v528_v34  ;;  %v1294_v34 = vsel %vm1289_vm8, %v1271_v24, 0 }
  0x97   : > { %1330 = vmatpush.bf16.msra.mxu1 %v1294_v34  ;;  %1684 = vmatpush.bf16.msra.mxu3 %v1294_v34 }
  0x98   : > { %v982_v58 = vor.u32 %v981_v26, %v977_v37  ;;  %v873_v59 = vpack.c.b16 %v769_v56, %v865_v41  ;;  %v1637_v26 = vor.u32 %v1657_v22, %v1636_v25 }
  0x9a   : > { %712 = vrot.lane.b32.xlu2 %v697_v5, %s1745_s23  ;;  %v2067_v5 = vld [vmem:[#allocation2 + $0x44] sm:$0x1]  ;;  %v881_v43 = vrot.slane %v873_v59, 1 }
  0x9b   : > { %v952_v63 = vunpack.c.l.b16 %v2067_v5 }
  0x9c   : > { %v2034_v57 = vpop.permute.xlu2 %658 }
  0x9d   : > { %886 = vrot.lane.b32.xlu1 %v876_v51, %s1748_s26  ;;  %v989_v51 = vor.u32 %v988_v36, %v984_v62  ;;  %v960_v8 = vpack.c.b16 %v952_v63, %v912_v60 }
  0x9e   : > { %752 = vrot.lane.b32.xlu0 %v737_v4, %s1747_s25  ;;  %v913_v4 = vunpack.c.l.b16 %v537_v42 }
  0x9f   : > { %v2040_v11 = vpop.permute.xlu1 %740  ;;  %v1005_v37 = vshrl.u32 %v960_v8, 16 }
  0xa0   : > { %v2042_v12 = vpop.permute.xlu0 %738  ;;  %v921_v20 = vpack.c.b16 %v913_v4, %v913_v4 }
  0xa1   : > { %v1126_v5 = vsel %vm1124_vm9, %v2027_v39, %v2042_v12 }
  0xa2   : > { %750 = vrot.lane.b32.xlu2 %v736_v6, %s1747_s25  ;;  %v961_v6 = vpack.c.b16 %v953_v53, %v913_v4 }
  0xa4   : > { %v2048_v54 = vpop.permute.xlu2 %660  ;;  %v1014_v18 = vshll.u32 %v961_v6, 16  ;;  %v1012_v62 = vshrl.u32 %v961_v6, 16  ;;  %v1655_v6 = vld [vmem:[%s2256_s1 + $0x4] sm:$0xf0] }
  0xa5   : > { %848 = vrot.lane.b32.xlu1 %v833_v14, %s1749_s27  ;;  %v1264_v14 = vunpack.c.l.b16 %v1230_v28  ;;  %v1100_v34 = vsel %vm1082_vm6, %v1915_v48, %v2048_v54 }
  0xa6   : > { %846 = vrot.lane.b32.xlu0 %v826_v21, %s1749_s27  ;;  %v1007_v21 = vshll.u32 %v960_v8, 16  ;;  %v1016_v36 = vrot.slane %v1014_v18, 1  ;;  %v552_v8 = vld [vmem:[#allocation2 + $0x40] sm:$0xe] }
  0xa7   : > { %v2054_v30 = vpop.permute.xlu1 %748  ;;  %v1270_v46 = vpack.c.b16 %v1264_v14, %v1264_v14  ;;  %v1048_v18 = vunpack.c.l.b16 %v552_v8 }
  0xa8   : > { %v2056_v31 = vpop.permute.xlu0 %746  ;;  %v1009_v40 = vrot.slane %v1007_v21, 1  ;;  %v1017_v4 = vor.u32 %v1016_v36, %v1012_v62 }
  0xa9   : > { %v1056_v24 = vpack.c.b16 %v952_v63, %v1048_v18 }
  0xaa   : > { %888 = vrot.lane.b32.xlu2 %v877_v29, %s1748_s26  ;;  %v549_v29 = vld [vmem:[#allocation2 + $0x28] sm:$0xe] }
  0xab   : > { %v1045_v41 = vunpack.c.l.b16 %v549_v29  ;;  %v1064_v22 = vrot.slane %v1056_v24, 1 }
  0xac   : > { %v2059_v35 = vpop.permute.xlu2 %836 }
  0xad   : > { %894 = vrot.lane.b32.xlu1 %v880_v32, %s1748_s26  ;;  %v1656_v32 = vld [vmem:[%s2256_s1 + $0x14] sm:$0xf]  ;;  %v1053_v59 = vpack.c.b16 %v949_v17, %v1045_v41 }
  0xae   : > { %928 = vrot.lane.b32.xlu0 %v917_v2, %s1750_s28  ;;  %v1291_v2 = vsel %vm1289_vm8, %v1270_v46, 0  ;;  %v1641_v42 = vor.u32 %v1656_v32, %v1638_v33 }
  0xaf   : > { %v2065_v47 = vpop.permute.xlu1 %700  ;;  %1301 = vmatpush.bf16.msra.mxu0 %v1291_v2  ;;  %1681 = vmatpush.bf16.msra.mxu2 %v1291_v2  ;;  %v1061_v15 = vrot.slane %v1053_v59, 1 }
  0xb0   : > { %v2069_v19 = vpop.permute.xlu0 %708  ;;  %1331 = vmatpush.bf16.msra.mxu1 %v1641_v42  ;;  %1685 = vmatpush.bf16.msra.mxu3 %v1641_v42 }
  0xb2   : > { %926 = vrot.lane.b32.xlu2 %v916_v38, %s1750_s28  ;;  %v920_v38 = vpack.c.b16 %v912_v60, %v912_v60  ;;  %v1628_v60 = vld [vmem:[%s2256_s1] sm:$0xf] }
  0xb3   : > { %1302 = vmatpush.bf16.msra.mxu0 %v1637_v26  ;;  %v1629_v28 = vor.u32 %v1655_v6, %v1628_v60  ;;  %1682 = vmatpush.bf16.msra.mxu2 %v1637_v26 }
  0xb4   : > { %v2076_v0 = vpop.permute.xlu2 %844 }
  0xb5   : > { %1024 = vrot.lane.b32.xlu1 %v989_v51, %s1751_s29  ;;  %v553_v51 = vld [vmem:[#allocation2 + $0x48] sm:$0xe] }
  0xb6   : > { %1022 = vrot.lane.b32.xlu0 %v982_v58, %s1751_s29  ;;  %v1010_v58 = vor.u32 %v1009_v40, %v1005_v37  ;;  %v1049_v3 = vunpack.c.l.b16 %v553_v51 }
  0xb7   : > { %v2084_v10 = vpop.permute.xlu1 %834  ;;  %1303 = vmatpush.bf16.msra.mxu0 %v1629_v28  ;;  %1683 = vmatpush.bf16.msra.mxu2 %v1629_v28 }
  0xb8   : > { %v2089_v56 = vpop.permute.xlu0 %652  ;;  %v1143_v63 = vsel %vm1141_vm10, %v1126_v5, %v2084_v10  ;;  %v1119_v10 = vsel %vm1107_vm7, %v1100_v34, %v2069_v19 }
  0xb9   : > { %v1088_v45 = vsel %vm1082_vm6, %v1906_v27, %v2089_v56  ;;  %v1136_v54 = vsel %vm1124_vm9, %v1119_v10, %v2054_v30 }
  0xba   : > { %896 = vrot.lane.b32.xlu2 %v881_v43, %s1748_s26  ;;  %v1654_v43 = vld [vmem:[%s2256_s1 + $0x4] sm:$0xf]  ;;  %v1111_v33 = vsel %vm1107_vm7, %v1088_v45, %v2065_v47  ;;  %v1160_v47 = vsel %vm1158_vm11, %v1143_v63, %v2024_v44  ;;  %v1097_v44 = vsel %vm1082_vm6, %v1898_v13, %v2034_v57  ;;  %v1153_v13 = vsel %vm1141_vm10, %v1136_v54, %v2076_v0 }
  0xbb   : > { %v1633_v14 = vor.u32 %v1654_v43, %v1630_v50  ;;  %v1128_v27 = vsel %vm1124_vm9, %v1111_v33, %v2040_v11 }
  0xbc   : > { %v2104_v55 = vpop.permute.xlu2 %890  ;;  %v1145_v39 = vsel %vm1141_vm10, %v1128_v27, %v2059_v35 }
  0xbd   : > { %1070 = vrot.lane.b32.xlu1 %v1060_v16, %s1752_s30  ;;  %v1057_v16 = vpack.c.b16 %v953_v53, %v1049_v3  ;;  %1332 = vmatpush.bf16.msra.mxu1 %v1633_v14 }
  0xbe   : > { %936 = vrot.lane.b32.xlu0 %v921_v20, %s1750_s28  ;;  %1686 = vmatpush.bf16.msra.mxu3 %v1633_v14 }
  0xbf   : > { %v2108_v49 = vpop.permute.xlu1 %842  ;;  %v1065_v46 = vrot.slane %v1057_v16, 1 }
  0xc0   : > { %v885_v52 = vpop.permute.xlu0 %884 }
  0xc1   : > { %v1162_v11 = vsel %vm1158_vm11, %v1145_v39, %v885_v52 }
  0xc2   : > { %934 = vrot.lane.b32.xlu2 %v920_v38, %s1750_s28  ;;  %v1117_v38 = vsel %vm1107_vm7, %v1097_v44, %v2012_v1 }
  0xc3   : > { %v1134_v41 = vsel %vm1124_vm9, %v1117_v38, %v2056_v31 }
  0xc4   : > { %v1021_v17 = vpop.permute.xlu2 %1020  ;;  %v1151_v30 = vsel %vm1141_vm10, %v1134_v41, %v2108_v49 }
  0xc5   : > { %1032 = vrot.lane.b32.xlu1 %v1017_v4, %s1751_s29 }
  0xc6   : > { %1030 = vrot.lane.b32.xlu0 %v1010_v58, %s1751_s29  ;;  %v1168_v58 = vsel %vm1158_vm11, %v1151_v30, %v2104_v55 }
  0xc7   : > { %v925_v20 = vpop.permute.xlu1 %924 }
  0xc8   : > { %v923_v21 = vpop.permute.xlu0 %922  ;;  %v1179_v48 = vsel %vm1175_vm12, %v1162_v11, %v925_v20 }
  0xc9   : > { %v1177_v12 = vsel %vm1175_vm12, %v1160_v47, %v923_v21  ;;  %v1196_v19 = vsel %vm1192_vm13, %v1179_v48, %v1021_v17 }
  0xca   : > { %1072 = vrot.lane.b32.xlu2 %v1061_v15, %s1752_s30 }
  0xcc   : > { %v1067_v25 = vpop.permute.xlu2 %1066 }
  0xce   : > { %1080 = vrot.lane.b32.xlu0 %v1065_v46, %s1752_s30 }
  0xcf   : > { %v1019_v29 = vpop.permute.xlu1 %1018 }
  0xd0   : > { %v893_v32 = vpop.permute.xlu0 %892  ;;  %v1194_v62 = vsel %vm1192_vm13, %v1177_v12, %v1019_v29 }
  0xd1   : > { %v1211_v35 = vsel %vm1209_vm14, %v1194_v62, %v1067_v25  ;;  %v1170_v51 = vsel %vm1158_vm11, %v1153_v13, %v893_v32 }
  0xd2   : > { %1078 = vrot.lane.b32.xlu2 %v1064_v22, %s1752_s30  ;;  %v1239_v57 = vunpack.c.l.b16 %v1211_v35  ;;  %s2233_s30 = scalar_lea.vmem %s2257_s2, %s1652_s19  ;;  %s1622_s19 = sshll.u32 %s2269_s15, 1 }
  0xd3   : > { %s250_s7 = scalar_lea.vmem %s2258_s3, %s1622_s19  ;;  %s257_s10 = scalar_lea.vmem %s2259_s4, %s1622_s19 }
  0xd4   : > { %v1029_v53 = vpop.permute.xlu2 %1028 }
  0xd7   : > { %v933_v2 = vpop.permute.xlu1 %932 }
  0xd8   : > { %v931_v56 = vpop.permute.xlu0 %930  ;;  %v1187_v52 = vsel %vm1175_vm12, %v1170_v51, %v933_v2 }
  0xd9   : > { %v1204_v31 = vsel %vm1192_vm13, %v1187_v52, %v1029_v53  ;;  %v1185_v0 = vsel %vm1175_vm12, %v1168_v58, %v931_v56 }
  0xdc   : > { %v655_v36 = vpop.permute.xlu2 %654 }
  0xdd   : > { %v1091_v56 = vsel %vm1082_vm6, %v1969_v61, %v655_v36 }
  0xdf   : > { %v1027_v37 = vpop.permute.xlu1 %1026 }
  0xe0   : > { %v1069_v26 = vpop.permute.xlu0 %1068  ;;  %v1202_v49 = vsel %vm1192_vm13, %v1185_v0, %v1027_v37 }
  0xe1   : > { %v1213_v40 = vsel %vm1209_vm14, %v1196_v19, %v1069_v26 }
  0xe2   : > { %v1240_v42 = vunpack.c.l.b16 %v1213_v40 }
  0xe4   : > { %v1247_v4 = vpack.c.b16 %v1240_v42, %v1239_v57  ;;  %v705_v1 = vpop.permute.xlu2 %704 }
  0xe6   : > { %1642 = vmatmul.msk.bf16.vlgmr.msra.gmra.mxu0 %vm1276_vm15, %v1247_v4  ;;  %1646 = vmatmul.msk.bf16.vlgmr.msra.gmra.mxu1 %vm1276_vm15, %v1247_v4 }
  0xe7   : > { %v1077_v59 = vpop.permute.xlu1 %1076 }
  0xe8   : > { %v1221_v3 = vsel %vm1209_vm14, %v1204_v31, %v1077_v59  ;;  %v1075_v60 = vpop.permute.xlu0 %1074 }
  0xe9   : > { %v1244_v6 = vunpack.c.l.b16 %v1221_v3  ;;  %v1219_v43 = vsel %vm1209_vm14, %v1202_v49, %v1075_v60 }
  0xea   : > { %v1243_v8 = vunpack.c.l.b16 %v1219_v43 }
  0xec   : > { %v1249_v28 = vpack.c.b16 %v1244_v6, %v1243_v8  ;;  %v743_v55 = vpop.permute.xlu2 %742 }
  0xee   : > { %1644 = vmatmul.msk.bf16.vlgmr.msra.gmra.mxu2 %vm1276_vm15, %v1249_v28  ;;  %1648 = vmatmul.msk.bf16.vlgmr.msra.gmra.mxu3 %vm1276_vm15, %v1249_v28 }
  0xef   : > { %v703_v50 = vpop.permute.xlu1 %702 }
  0xf0   : > { %v657_v17 = vpop.permute.xlu0 %656  ;;  %v1113_v39 = vsel %vm1107_vm7, %v1091_v56, %v703_v50 }
  0xf1   : > { %v1094_v2 = vsel %vm1082_vm6, %v1960_v7, %v657_v17  ;;  %v1130_v62 = vsel %vm1124_vm9, %v1113_v39, %v743_v55 }
  0xf2   : > { %v1115_v34 = vsel %vm1107_vm7, %v1094_v2, %v705_v1 }
  0xf4   : > { %v713_v14 = vpop.permute.xlu2 %712 }
  0xf7   : > { %v665_v15 = vpop.permute.xlu1 %664 }
  0xf8   : > { %v663_v16 = vpop.permute.xlu0 %662  ;;  %v1106_v51 = vsel %vm1082_vm6, %v1975_v23, %v665_v15 }
  0xf9   : > { %v1103_v57 = vsel %vm1082_vm6, %v1981_v9, %v663_v16  ;;  %v1123_v31 = vsel %vm1107_vm7, %v1106_v51, %v713_v14 }
  0xfc   : > { %v751_v18 = vpop.permute.xlu2 %750 }
  0xff   : > { %v711_v20 = vpop.permute.xlu1 %710 }
 0x100   : > { %v745_v21 = vpop.permute.xlu0 %744  ;;  %v1121_v42 = vsel %vm1107_vm7, %v1103_v57, %v711_v20 }
 0x101   : > { %v1132_v47 = vsel %vm1124_vm9, %v1115_v34, %v745_v21  ;;  %v1138_v52 = vsel %vm1124_vm9, %v1121_v42, %v751_v18 }
 0x104   : > { %v889_v46 = vpop.permute.xlu2 %888 }
 0x107   : > { %v841_v24 = vpop.permute.xlu1 %840 }
 0x108   : > { %v839_v25 = vpop.permute.xlu0 %838  ;;  %v1149_v12 = vsel %vm1141_vm10, %v1132_v47, %v841_v24 }
 0x109   : > { %v1166_v48 = vsel %vm1158_vm11, %v1149_v12, %v889_v46  ;;  %v1147_v7 = vsel %vm1141_vm10, %v1130_v62, %v839_v25 }
 0x10c   : > { %v927_v22 = vpop.permute.xlu2 %926 }
 0x10f   : > { %v887_v29 = vpop.permute.xlu1 %886 }
 0x110   : > { %v753_v32 = vpop.permute.xlu0 %752  ;;  %v1164_v61 = vsel %vm1158_vm11, %v1147_v7, %v887_v29 }
 0x111   : > { %v1181_v35 = vsel %vm1175_vm12, %v1164_v61, %v927_v22  ;;  %v1140_v9 = vsel %vm1124_vm9, %v1123_v31, %v753_v32 }
 0x114   : > { %v897_v53 = vpop.permute.xlu2 %896 }
 0x117   : > { %v849_v45 = vpop.permute.xlu1 %848 }
 0x118   : > { %v847_v33 = vpop.permute.xlu0 %846  ;;  %v1157_v0 = vsel %vm1141_vm10, %v1140_v9, %v849_v45 }
 0x119   : > { %v1155_v4 = vsel %vm1141_vm10, %v1138_v52, %v847_v33  ;;  %v1174_v60 = vsel %vm1158_vm11, %v1157_v0, %v897_v53 }
 0x11c   : > { %v935_v27 = vpop.permute.xlu2 %934 }
 0x11f   : > { %v895_v5 = vpop.permute.xlu1 %894 }
 0x120   : > { %v929_v63 = vpop.permute.xlu0 %928  ;;  %v1172_v1 = vsel %vm1158_vm11, %v1155_v4, %v895_v5 }
 0x121   : > { %v1183_v44 = vsel %vm1175_vm12, %v1166_v48, %v929_v63  ;;  %v1189_v59 = vsel %vm1175_vm12, %v1172_v1, %v935_v27 }
 0x124   : > { %v1073_v54 = vpop.permute.xlu2 %1072 }
 0x127   : > { %v1025_v10 = vpop.permute.xlu1 %1024 }
 0x128   : > { %v1023_v11 = vpop.permute.xlu0 %1022  ;;  %v1200_v36 = vsel %vm1192_vm13, %v1183_v44, %v1025_v10 }
 0x129   : > { %v1217_v37 = vsel %vm1209_vm14, %v1200_v36, %v1073_v54  ;;  %v1198_v19 = vsel %vm1192_vm13, %v1181_v35, %v1023_v11 }
 0x12a   : > { %v1242_v41 = vunpack.c.l.b16 %v1217_v37 }
 0x12c   : > { %v1079_v3 = vpop.permute.xlu2 %1078 }
 0x12f   : > { %v1071_v26 = vpop.permute.xlu1 %1070 }
 0x130   : > { %v1215_v38 = vsel %vm1209_vm14, %v1198_v19, %v1071_v26  ;;  %v937_v40 = vpop.permute.xlu0 %936 }
 0x131   : > { %v1241_v13 = vunpack.c.l.b16 %v1215_v38  ;;  %v1191_v6 = vsel %vm1175_vm12, %v1174_v60, %v937_v40 }
 0x133   : > { %v1248_v30 = vpack.c.b16 %v1242_v41, %v1241_v13 }
 0x135   : > { %1643 = vmatmul.msk.bf16.gmra.mxu0 %vm1276_vm15, %v1248_v30  ;;  %1647 = vmatmul.msk.bf16.gmra.mxu1 %vm1276_vm15, %v1248_v30 }
 0x137   : > { %v1033_v23 = vpop.permute.xlu1 %1032 }
 0x138   : > { %v1031_v58 = vpop.permute.xlu0 %1030  ;;  %v1208_v8 = vsel %vm1192_vm13, %v1191_v6, %v1033_v23 }
 0x139   : > { %v1206_v49 = vsel %vm1192_vm13, %v1189_v59, %v1031_v58 }
 0x13a   : > { %v1223_v43 = vsel %vm1209_vm14, %v1206_v49, %v1079_v3 }
 0x13b   : > { %v1245_v50 = vunpack.c.l.b16 %v1223_v43 }
 0x140   : > { %v1081_v28 = vpop.permute.xlu0 %1080 }
 0x141   : > { %v1225_v55 = vsel %vm1209_vm14, %v1208_v8, %v1081_v28 }
 0x142   : > { %v1246_v17 = vunpack.c.l.b16 %v1225_v55 }
 0x144   : > { %v1250_v14 = vpack.c.b16 %v1246_v17, %v1245_v50 }
 0x146   : > { %1645 = vmatmul.msk.bf16.gmra.mxu2 %vm1276_vm15, %v1250_v14  ;;  %1649 = vmatmul.msk.bf16.gmra.mxu3 %vm1276_vm15, %v1250_v14 }
 0x163   : > { %v1305_v15 = vpop.f32.mrf.mxu0  ;;  %v1334_v24 = vpop.f32.mrf.mxu1 }
 0x164   : > { %v1383_v5 = vmul.f32 %v1305_v15, %v1305_v15  ;;  %v1420_v39 = vmul.f32 %v1334_v24, %v1334_v24 }
 0x16b   : > { %v1307_v16 = vpop.f32.mrf.mxu0  ;;  %v1336_v25 = vpop.f32.mrf.mxu1 }
 0x16c   : > { %v1661_v18 = vpack.c.bf16 %v1307_v16, %v1305_v15  ;;  %v1384_v33 = vmul.f32 %v1307_v16, %v1307_v16  ;;  %v1421_v63 = vmul.f32 %v1336_v25, %v1336_v25  ;;  %v1370_v56 = vadd.f32 %v1307_v16, %v1305_v15 }
 0x16d   : > { %v1407_v34 = vadd.f32 %v1336_v25, %v1334_v24 }
 0x16e   : > { %1662 = vst [vmem:[%s2233_s30] sm:$0xff] %v1661_v18   ;;  %v1391_v12 = vadd.f32 %v1384_v33, %v1383_v5  ;;  %v1428_v7 = vadd.f32 %v1421_v63, %v1420_v39 }
 0x171   : > { %v1315_v20 = vpop.f32.mrf.mxu2  ;;  %v1344_v29 = vpop.f32.mrf.mxu3 }
 0x172   : > { %v1387_v19 = vmul.f32 %v1315_v20, %v1315_v20  ;;  %v1424_v57 = vmul.f32 %v1344_v29, %v1344_v29 }
 0x179   : > { %v1317_v21 = vpop.f32.mrf.mxu2  ;;  %v1346_v2 = vpop.f32.mrf.mxu3 }
 0x17a   : > { %v1671_v46 = vpack.c.bf16 %v1317_v21, %v1315_v20  ;;  %v1388_v30 = vmul.f32 %v1317_v21, %v1317_v21  ;;  %v1425_v58 = vmul.f32 %v1346_v2, %v1346_v2 }
 0x17c   : > { %1679 = vst [vmem:[%s2233_s30 + $0x10] sm:$0xff] %v1671_v46  }
 0x1b2   : > { %v1310_v22 = vpop.f32.mrf.mxu0  ;;  %v1339_v32 = vpop.f32.mrf.mxu1 }
 0x1b3   : > { %v1385_v27 = vmul.f32 %v1310_v22, %v1310_v22  ;;  %v1422_v10 = vmul.f32 %v1339_v32, %v1339_v32  ;;  %v1371_v62 = vadd.f32 %v1370_v56, %v1310_v22  ;;  %v1408_v48 = vadd.f32 %v1407_v34, %v1339_v32 }
 0x1b5   : > { %v1392_v44 = vadd.f32 %v1391_v12, %v1385_v27  ;;  %v1429_v35 = vadd.f32 %v1428_v7, %v1422_v10 }
 0x1ba   : > { %v1312_v45 = vpop.f32.mrf.mxu0  ;;  %v1341_v47 = vpop.f32.mrf.mxu1 }
 0x1bb   : > { %v1666_v53 = vpack.c.bf16 %v1312_v45, %v1310_v22  ;;  %v1386_v11 = vmul.f32 %v1312_v45, %v1312_v45  ;;  %v1423_v61 = vmul.f32 %v1341_v47, %v1341_v47  ;;  %v1372_v36 = vadd.f32 %v1371_v62, %v1312_v45 }
 0x1bc   : > { %v1409_v54 = vadd.f32 %v1408_v48, %v1341_v47 }
 0x1bd   : > { %1678 = vst [vmem:[%s2233_s30 + $0x8] sm:$0xff] %v1666_v53   ;;  %v1393_v37 = vadd.f32 %v1392_v44, %v1386_v11  ;;  %v1430_v26 = vadd.f32 %v1429_v35, %v1423_v61  ;;  %v1373_v41 = vadd.f32 %v1372_v36, %v1315_v20 }
 0x1be   : > { %v1410_v13 = vadd.f32 %v1409_v54, %v1344_v29 }
 0x1bf   : > { %v1394_v42 = vadd.f32 %v1393_v37, %v1387_v19  ;;  %v1431_v51 = vadd.f32 %v1430_v26, %v1424_v57  ;;  %v1374_v4 = vadd.f32 %v1373_v41, %v1317_v21 }
 0x1c0   : > { %v1411_v1 = vadd.f32 %v1410_v13, %v1346_v2 }
 0x1c1   : > { %v1395_v31 = vadd.f32 %v1394_v42, %v1388_v30  ;;  %v1432_v3 = vadd.f32 %v1431_v51, %v1425_v58 }
 0x1c9   : > { %v1320_v38 = vpop.f32.mrf.mxu2  ;;  %v1349_v40 = vpop.f32.mrf.mxu3 }
 0x1ca   : > { %v1389_v52 = vmul.f32 %v1320_v38, %v1320_v38  ;;  %v1426_v9 = vmul.f32 %v1349_v40, %v1349_v40  ;;  %v1375_v0 = vadd.f32 %v1374_v4, %v1320_v38  ;;  %v1412_v59 = vadd.f32 %v1411_v1, %v1349_v40 }
 0x1cc   : > { %v1396_v49 = vadd.f32 %v1395_v31, %v1389_v52  ;;  %v1433_v55 = vadd.f32 %v1432_v3, %v1426_v9 }
 0x1d1   : > { %v1322_v23 = vpop.f32.mrf.mxu2  ;;  %v1351_v60 = vpop.f32.mrf.mxu3 }
 0x1d2   : > { %v1676_v6 = vpack.c.bf16 %v1322_v23, %v1320_v38  ;;  %v1376_v43 = vadd.f32 %v1375_v0, %v1322_v23  ;;  %v1390_v8 = vmul.f32 %v1322_v23, %v1322_v23  ;;  %v1413_v28 = vadd.f32 %v1412_v59, %v1351_v60 }
 0x1d3   : > { %v1427_v50 = vmul.f32 %v1351_v60, %v1351_v60 }
 0x1d4   : > { %1680 = vst [vmem:[%s2233_s30 + $0x18] sm:$0xff] %v1676_v6   ;;  %v1377_v17 = vrot.slane %v1376_v43, 4  ;;  %v1397_v14 = vadd.f32 %v1396_v49, %v1390_v8  ;;  %v1414_v15 = vrot.slane %v1413_v28, 4 }
 0x1d5   : > { %v1434_v16 = vadd.f32 %v1433_v55, %v1427_v50 }
 0x1d6   : > { %v1378_v18 = vadd.f32 %v1377_v17, %v1376_v43  ;;  %v1398_v20 = vrot.slane %v1397_v14, 4  ;;  %v1415_v21 = vadd.f32 %v1414_v15, %v1413_v28 }
 0x1d7   : > { %v1435_v46 = vrot.slane %v1434_v16, 4 }
 0x1d8   : > { %v1379_v24 = vrot.slane %v1378_v18, 2  ;;  %v1399_v25 = vadd.f32 %v1398_v20, %v1397_v14  ;;  %v1416_v22 = vrot.slane %v1415_v21, 2 }
 0x1d9   : > { %v1436_v29 = vadd.f32 %v1435_v46, %v1434_v16 }
 0x1da   : > { %v1380_v32 = vadd.f32 %v1379_v24, %v1378_v18  ;;  %v1400_v45 = vrot.slane %v1399_v25, 2  ;;  %v1417_v53 = vadd.f32 %v1416_v22, %v1415_v21 }
 0x1db   : > { %v1437_v33 = vrot.slane %v1436_v29, 2 }
 0x1dc   : > { %v1381_v5 = vrot.slane %v1380_v32, 1  ;;  %v1401_v63 = vadd.f32 %v1400_v45, %v1399_v25  ;;  %v1418_v2 = vrot.slane %v1417_v53, 1 }
 0x1dd   : > { %v1438_v27 = vadd.f32 %v1437_v33, %v1436_v29 }
 0x1de   : > { %v1402_v56 = vrot.slane %v1401_v63, 1  ;;  %v1382_v47 = vadd.f32 %v1381_v5, %v1380_v32  ;;  %v1419_v12 = vadd.f32 %v1418_v2, %v1417_v53 }
 0x1df   : > { %v1439_v34 = vrot.slane %v1438_v27, 1 }
 0x1e0   : > { %v1403_v39 = vadd.f32 %v1402_v56, %v1401_v63 }
 0x1e1   : > { %v1440_v10 = vadd.f32 %v1439_v34, %v1438_v27 }
 0x1e2   : > { %v1405_v11 = vsel %vm1404_vm0, %v1382_v47, %v1403_v39 }
 0x1e3   : > { %1406 = vst [vmem:[%s250_s7] sm:$0x3] %v1405_v11  ;;  %v1441_v62 = vsel %vm1404_vm0, %v1419_v12, %v1440_v10 }
 0x1e4   : > { %1442 = vst [vmem:[%s257_s10] sm:$0x3] %v1441_v62 }
 0x1e5 PF: > { %s15_s17 = sadd.s32 1, %s1742_s17   ;;  %s2264_s15 = smov %s1738_s16 }
 0x1e6   : > { %p12_p5 = scmp.ge.s32.totalorder %s15_s17, 4   ;;  %s2265_s16 = smov %s2267_s18 }
 0x1e8   :  { %14 = sbr.rel (!%p12_p5) target bundleno = 2 (0x2), region = 100 }

// kernel: downsampling_forward.4
= control target key start
LH: loop header
LB: loop body
LE: loop exit
PB: predicated region body
PF: predicated region fallthrough
CT: control target
= control target key end

     0   :  { %s3348_s18 = smov 0   ;;  %s3350_s19 = smov 0   ;;  %s4194_s0 = inlined_call_operand.vmem [shape: bf16[2,8,8,128], index: 0, kind: input, shape index: {}]   ;;  %s4195_s1 = inlined_call_operand.vmem [shape: f32[1,128], index: 1, kind: input, shape index: {}]   ;;  %s4196_s2 = inlined_call_operand.vmem [shape: f32[1,128], index: 2, kind: input, shape index: {}]   ;;  %s4197_s3 = inlined_call_operand.vmem [shape: bf16[3,3,128,128], index: 3, kind: input, shape index: {}]   ;;  %s4198_s4 = inlined_call_operand.vmem [shape: bf16[2,8,8,128], index: 4, kind: output, shape index: {0}]   ;;  %s4199_s5 = inlined_call_operand.vmem [shape: f32[2,1,2,128], index: 5, kind: output, shape index: {1}]  }
   0x1   :  { %s3352_s20 = smov 0  }
   0x2 LB: > { %s28_s21 = sadd.s32 1, %s3311_s19  ;;  %p2582_p0 = scmp.ge.s32.totalorder %s3315_s20, 1  ;;  %s3315_s20 = sphi %s3352_s20, %s16_s20   ;;  %s3311_s19 = sphi %s3350_s19, %s4237_s19   ;;  %s3307_s18 = sphi %s3348_s18, %s4236_s18  }
   0x3   : > { %p30_p1 = scmp.ge.s32.totalorder %s28_s21, 2  ;;  %p206_p2 = scmp.lt.s32.totalorder %s3315_s20, 3 }
   0x5   : > { %s4239_s21 = smov (%p30_p1, %s28_s21), 0  ;;  %p207_p3 = pnand %p2582_p0, %p206_p2 }
   0x6   : > { %p245_p4 = scmp.lt.s32.totalorder (!%p207_p3), %s3307_s18, 1 }
   0x7   : > { %210 = sbr.rel (%p207_p3) target bundleno = 391 (0x187), region = 36 }
   0xc   : > { %v3111_v0 = vld [vmem:[%s4197_s3 + $0x78] sm:$0xff]  ;;  %v3317_v2 = vmov 0   ;;  %v3110_v3 = vld [vmem:[%s4197_s3 + $0x70] sm:$0xff]  ;;  %s4241_s18 = smov (!%p245_p4, %s3307_s18), 1  ;;  %v3109_v6 = vld [vmem:[%s4197_s3 + $0x68] sm:$0xff]  ;;  %vm584_vm10 = vcmask 1043456  }
   0xd   : > { %v3119_v1 = vld [vmem:[%s4197_s3 + $0xb8] sm:$0xff]  ;;  %280 = vst [vmem:[#allocation2 + $0x20] sm:$0xf] %v3317_v2  ;;  %3218 = vmatpush.bf16.msra.mxu1 %v3111_v0  ;;  %980 = vmatpush.bf16.msra.mxu0 %v3111_v0  ;;  %v3118_v4 = vld [vmem:[%s4197_s3 + $0xb0] sm:$0xff]  ;;  %s3090_s9 = sshll.u32 %s4241_s18, 5  ;;  %v3117_v7 = vld [vmem:[%s4197_s3 + $0xa8] sm:$0xff] }
   0xe   : > { %281 = vst [vmem:[#allocation2 + $0x24] sm:$0x1] %v3317_v2  ;;  %1250 = vmatpush.bf16.msra.mxu2 %v3119_v1  ;;  %v3131_v5 = vld [vmem:[%s4197_s3 + $0xf8] sm:$0xff]  ;;  %v3130_v8 = vld [vmem:[%s4197_s3 + $0xf0] sm:$0xff]  ;;  %s249_s16 = scalar_lea.vmem %s4194_s0, %s3090_s9  ;;  %v3406_v11 = vld [vmem:[%s4195_s1] ss:$0 sm:$0xff]  ;;  %s4169_s11 = scalar_lea.vmem %s4198_s4, %s3090_s9 }
   0xf   : > { %282 = vst [vmem:[#allocation2 + $0x28] sm:$0xf] %v3317_v2  ;;  %1384 = vmatpush.bf16.msra.mxu3 %v3131_v5  ;;  %v3212_v9 = vld [vmem:[%s249_s16 + $0x8] sm:$0xff]   ;;  %v3213_v10 = vld [vmem:[%s249_s16 + $0x10] sm:$0xff]   ;;  %v3412_v14 = vld [vmem:[%s4196_s2] ss:$0 sm:$0xff] }
  0x10   : > { %283 = vst [vmem:[#allocation2 + $0x2c] sm:$0x1] %v3317_v2  ;;  %v3183_v12 = vunpack.c.h.bf16 %v3212_v9  ;;  %v3186_v13 = vunpack.c.l.bf16 %v3213_v10  ;;  %v3187_v15 = vunpack.c.h.bf16 %v3213_v10  ;;  %v3177_v16 = vld [vmem:[%s249_s16] sm:$0xff]   ;;  %v3416_v17 = vld [vmem:[%s249_s16 + $0x18] sm:$0xff]   ;;  %v3129_v18 = vld [vmem:[%s4197_s3 + $0xe8] sm:$0xff]  ;;  %v3182_v38 = vunpack.c.l.bf16 %v3212_v9  ;;  %s2587_s9 = sshll.u32 %s4241_s18, 1 }
  0x11   : > { %272 = vst [vmem:[#allocation2] sm:$0xf] %v3317_v2  ;;  %3219 = vmatpush.bf16.msra.mxu1 %v3110_v3  ;;  %981 = vmatpush.bf16.msra.mxu0 %v3110_v3  ;;  %v3178_v21 = vunpack.c.l.bf16 %v3177_v16  ;;  %v3190_v22 = vunpack.c.l.bf16 %v3416_v17  ;;  %v3108_v23 = vld [vmem:[%s4197_s3 + $0x60] sm:$0xff]  ;;  %v3179_v29 = vunpack.c.h.bf16 %v3177_v16  ;;  %v3107_v35 = vld [vmem:[%s4197_s3 + $0x58] sm:$0xff]  ;;  %v3106_v43 = vld [vmem:[%s4197_s3 + $0x50] sm:$0xff]  ;;  %vm590_vm13 = vcmask 1040384   ;;  %s266_s14 = scalar_lea.vmem %s4199_s5, %s2587_s9 }
  0x12   : > { %273 = vst [vmem:[#allocation2 + $0x4] sm:$0x1] %v3317_v2  ;;  %1251 = vmatpush.bf16.msra.mxu2 %v3118_v4  ;;  %v318_v19 = vmul.f32 %v3406_v11, %v3183_v12  ;;  %v319_v20 = vmul.f32 %v3406_v11, %v3186_v13  ;;  %v320_v24 = vmul.f32 %v3406_v11, %v3187_v15  ;;  %v3116_v25 = vld [vmem:[%s4197_s3 + $0xa0] sm:$0xff]  ;;  %v3115_v36 = vld [vmem:[%s4197_s3 + $0x98] sm:$0xff]  ;;  %v3114_v45 = vld [vmem:[%s4197_s3 + $0x90] sm:$0xff] }
  0x13   : > { %274 = vst [vmem:[#allocation2 + $0x8] sm:$0xf] %v3317_v2  ;;  %1385 = vmatpush.bf16.msra.mxu3 %v3130_v8  ;;  %v315_v28 = vmul.f32 %v3406_v11, %v3178_v21  ;;  %v321_v30 = vmul.f32 %v3406_v11, %v3190_v22  ;;  %v316_v41 = vmul.f32 %v3406_v11, %v3179_v29  ;;  %v3105_v49 = vld [vmem:[%s4197_s3 + $0x48] sm:$0xff]  ;;  %v3104_v57 = vld [vmem:[%s4197_s3 + $0x40] sm:$0xff]  ;;  %vm585_vm11 = vsmask.f32 7938 }
  0x14   : > { %275 = vst [vmem:[#allocation2 + $0xc] sm:$0x1] %v3317_v2  ;;  %v3434_v26 = vadd.f32 %v3412_v14, %v318_v19  ;;  %v3437_v27 = vadd.f32 %v3412_v14, %v319_v20  ;;  %v3444_v31 = vadd.f32 %v3412_v14, %v320_v24  ;;  %v317_v44 = vmul.f32 %v3406_v11, %v3182_v38 }
  0x15   : > { %276 = vst [vmem:[#allocation2 + $0x10] sm:$0xf] %v3317_v2  ;;  %3220 = vmatpush.bf16.msra.mxu1 %v3109_v6  ;;  %982 = vmatpush.bf16.msra.mxu0 %v3109_v6  ;;  %v3450_v34 = vadd.f32 %v3412_v14, %v315_v28  ;;  %v3460_v37 = vadd.f32 %v3412_v14, %v321_v30  ;;  %vm591_vm14 = vsmask.f32 256 }
  0x16   : > { %277 = vst [vmem:[#allocation2 + $0x14] sm:$0x1] %v3317_v2  ;;  %1252 = vmatpush.bf16.msra.mxu2 %v3117_v7  ;;  %v2591_v32 = vmul.f32 -1.442695, %v3434_v26  ;;  %v2592_v33 = vmul.f32 -1.442695, %v3437_v27  ;;  %v3478_v46 = vadd.f32 %v3412_v14, %v316_v41  ;;  %v3486_v51 = vadd.f32 %v3412_v14, %v317_v44 }
  0x17   : > { %278 = vst [vmem:[#allocation2 + $0x18] sm:$0xf] %v3317_v2  ;;  %1386 = vmatpush.bf16.msra.mxu3 %v3129_v18  ;;  %v2588_v39 = vmul.f32 -1.442695, %v3450_v34  ;;  %v2593_v40 = vmul.f32 -1.442695, %v3444_v31 }
  0x18   : > { %279 = vst [vmem:[#allocation2 + $0x1c] sm:$0x1] %v3317_v2  ;;  %3261 = vpow2.f32 %v2591_v32  ;;  %v2594_v42 = vmul.f32 -1.442695, %v3460_v37  ;;  %v2589_v54 = vmul.f32 -1.442695, %v3478_v46 }
  0x19   : > { %284 = vst [vmem:[#allocation2 + $0x30] sm:$0xf] %v3317_v2  ;;  %3221 = vmatpush.bf16.msra.mxu1 %v3108_v23  ;;  %983 = vmatpush.bf16.msra.mxu0 %v3108_v23  ;;  %3263 = vpow2.f32 %v2592_v33  ;;  %v2590_v60 = vmul.f32 -1.442695, %v3486_v51  ;;  %v752_v24 = vld [vmem:[#allocation2] sm:$0xf] }
  0x1a   : > { %285 = vst [vmem:[#allocation2 + $0x34] sm:$0x1] %v3317_v2  ;;  %1253 = vmatpush.bf16.msra.mxu2 %v3116_v25  ;;  %3265 = vpow2.f32 %v2588_v39  ;;  %v791_v44 = vshll.u32 %v752_v24, 16  ;;  %v614_v38 = vld [vmem:[#allocation2 + $0x28] sm:$0xf] }
  0x1b   : > { %286 = vst [vmem:[#allocation2 + $0x38] sm:$0xf] %v3317_v2  ;;  %3267 = vpow2.f32 %v2593_v40 }
  0x1c   : > { %287 = vst [vmem:[#allocation2 + $0x3c] sm:$0x1] %v3317_v2  ;;  %3269 = vpow2.f32 %v2594_v42 }
  0x1d   : > { %288 = vst [vmem:[#allocation2 + $0x40] sm:$0xf] %v3317_v2  ;;  %3222 = vmatpush.bf16.msra.mxu1 %v3107_v35  ;;  %984 = vmatpush.bf16.msra.mxu0 %v3107_v35 }
  0x1e   : > { %1254 = vmatpush.bf16.msra.mxu2 %v3115_v36  ;;  %289 = vst [vmem:[#allocation2 + $0x44] sm:$0x1] %v3317_v2  ;;  %v3262_v47 = vpop.eup %3261 }
  0x1f   : > { %290 = vst [vmem:[#allocation2 + $0x48] sm:$0xf] %v3317_v2  ;;  %v3264_v48 = vpop.eup %3263  ;;  %v362_v50 = vadd.f32 1.0, %v3262_v47 }
  0x20   : > { %291 = vst [vmem:[#allocation2 + $0x4c] sm:$0x1] %v3317_v2  ;;  %v3266_v52 = vpop.eup %3265  ;;  %v363_v53 = vadd.f32 1.0, %v3264_v48 }
  0x21   : > { %3223 = vmatpush.bf16.msra.mxu1 %v3106_v43  ;;  %985 = vmatpush.bf16.msra.mxu0 %v3106_v43  ;;  %3271 = vrcp.f32 %v362_v50  ;;  %v3268_v55 = vpop.eup %3267  ;;  %v3492_v58 = vadd.f32 1.0, %v3266_v52  ;;  %v421_v61 = vand.u32 2147483647, %v362_v50  ;;  %v423_v62 = vand.u32 2147483648, %v362_v50 }
  0x22   : > { %1255 = vmatpush.bf16.msra.mxu2 %v3114_v45  ;;  %3273 = vrcp.f32 %v363_v53  ;;  %v3270_v56 = vpop.eup %3269  ;;  %v3494_v59 = vadd.f32 1.0, %v3268_v55  ;;  %v436_v0 = vand.u32 2147483647, %v363_v53  ;;  %v438_v1 = vand.u32 2147483648, %v363_v53 }
  0x23   : > { %3275 = vpow2.f32 %v2589_v54  ;;  %v3498_v63 = vadd.f32 1.0, %v3270_v56  ;;  %vm417_vm0 = vweird.f32 %v362_v50  ;;  %vm432_vm1 = vweird.f32 %v363_v53 }
  0x24   : > { %3277 = vrcp.f32 %v3492_v58  ;;  %vm3501_vm2 = vcmp.eq.f32.partialorder %v421_v61, 8.507059e+37  ;;  %v424_v6 = vor.u32 1.1754944e-38, %v423_v62  ;;  %v376_v7 = vand.u32 2147483647, %v3492_v58 }
  0x25   : > { %3224 = vmatpush.bf16.msra.mxu1 %v3105_v49  ;;  %986 = vmatpush.bf16.msra.mxu0 %v3105_v49  ;;  %3279 = vrcp.f32 %v3494_v59  ;;  %v378_v9 = vand.u32 2147483648, %v3492_v58  ;;  %v453_v10 = vand.u32 2147483648, %v3494_v59  ;;  %vm3509_vm4 = vcmp.eq.f32.partialorder %v436_v0, 8.507059e+37  ;;  %v3103_v0 = vld [vmem:[%s4197_s3 + $0x38] sm:$0xff] }
  0x26   : > { %3281 = vpow2.f32 %v2590_v60  ;;  %v439_v16 = vor.u32 1.1754944e-38, %v438_v1  ;;  %vm372_vm6 = vweird.f32 %v3492_v58  ;;  %vm447_vm7 = vweird.f32 %v3494_v59  ;;  %v3113_v1 = vld [vmem:[%s4197_s3 + $0x88] sm:$0xff] }
  0x27   : > { %v3272_v2 = vpop.eup %3271  ;;  %3283 = vrcp.f32 %v3498_v63  ;;  %vm3521_vm8 = vcmp.eq.f32.partialorder %v376_v7, 8.507059e+37  ;;  %v451_v25 = vand.u32 2147483647, %v3494_v59  ;;  %v379_v32 = vor.u32 1.1754944e-38, %v378_v9  ;;  %1256 = vmatpush.bf16.msra.mxu2 %v3113_v1  ;;  %v3102_v9 = vld [vmem:[%s4197_s3 + $0x30] sm:$0xff] }
  0x28   : > { %v3274_v3 = vpop.eup %3273  ;;  %v413_v4 = vmul.f32 %v3272_v2, %v362_v50  ;;  %vm418_vm3 = vweird.f32 %v3272_v2  ;;  %v3536_v35 = vor.u32 1.1754944e-38, %v453_v10  ;;  %v466_v40 = vand.u32 2147483647, %v3498_v63  ;;  %v3112_v10 = vld [vmem:[%s4197_s3 + $0x80] sm:$0xff] }
  0x29   : > { %3225 = vmatpush.bf16.msra.mxu1 %v3104_v57  ;;  %987 = vmatpush.bf16.msra.mxu0 %v3104_v57  ;;  %v428_v8 = vmul.f32 %v3274_v3, %v363_v53  ;;  %v3276_v12 = vpop.eup %3275  ;;  %vm433_vm5 = vweird.f32 %v3274_v3  ;;  %vm3530_vm9 = vmor %vm417_vm0, %vm418_vm3  ;;  %v788_v43 = vshrl.u32 %v752_v24, 16  ;;  %vm462_vm0 = vweird.f32 %v3498_v63 }
  0x2a   : > { %v414_v13 = vsub.f32 1.0, %v413_v4  ;;  %v3513_v18 = vpop.eup %3277  ;;  %vm3540_vm12 = vmor %vm432_vm1, %vm433_vm5  ;;  %v468_v49 = vand.u32 2147483648, %v3498_v63  ;;  %vm3563_vm3 = vcmp.eq.f32.partialorder %v451_v25, 8.507059e+37  ;;  %v3569_v56 = vadd.f32 1.0, %v3276_v12  ;;  %v608_v25 = vld [vmem:[#allocation2 + $0x20] sm:$0xf] }
  0x2b   : > { %v429_v19 = vsub.f32 1.0, %v428_v8  ;;  %v3517_v20 = vpop.eup %3279  ;;  %v368_v22 = vmul.f32 %v3513_v18, %v3492_v58  ;;  %vm373_vm15 = vweird.f32 %v3513_v18  ;;  %1257 = vmatpush.bf16.msra.mxu2 %v3112_v10 }
  0x2c   : > { %v415_v21 = vmul.f32 %v3272_v2, %v414_v13  ;;  %v3526_v28 = vpop.eup %3281  ;;  %v443_v33 = vmul.f32 %v3517_v20, %v3494_v59  ;;  %vm3559_vm1 = vmor %vm372_vm6, %vm373_vm15  ;;  %v3601_v7 = vor.u32 1.1754944e-38, %v468_v49  ;;  %vm784_vm6 = vsmask.f32 3328  ;;  %v3139_v59 = vld [vmem:[%s4197_s3 + $0x138] sm:$0xff] }
  0x2d   : > { %v430_v30 = vmul.f32 %v3274_v3, %v429_v19  ;;  %v369_v39 = vsub.f32 1.0, %v368_v22  ;;  %v3546_v41 = vpop.eup %3283  ;;  %1081 = vmatpush.bf16.msrb.mxu1 %v3103_v0  ;;  %3285 = vrcp.f32 %v3569_v56  ;;  %vm1135_vm15 = vcmask 1046532   ;;  %1630 = vmatpush.bf16.msrb.mxu0 %v3139_v59 }
  0x2e   : > { %v416_v36 = vadd.f32 %v3272_v2, %v415_v21  ;;  %v444_v45 = vsub.f32 1.0, %v443_v33  ;;  %v458_v55 = vmul.f32 %v3546_v41, %v3498_v63  ;;  %vm463_vm5 = vweird.f32 %v3546_v41  ;;  %v3613_v21 = vld [vmem:[#allocation2] sm:$0xe]  ;;  %v587_v63 = vld [vmem:[#allocation2 + $0x8] sm:$0xf] }
  0x2f   : > { %v431_v42 = vadd.f32 %v3274_v3, %v430_v30  ;;  %v370_v48 = vmul.f32 %v3513_v18, %v369_v39  ;;  %v3127_v30 = vld [vmem:[%s4197_s3 + $0xd8] sm:$0xff]  ;;  %v3141_v33 = vld [vmem:[%s4197_s3 + $0x148] sm:$0xff] }
  0x30   : > { %v420_v47 = vsel %vm3530_vm9, %v3272_v2, %v416_v36  ;;  %v445_v61 = vmul.f32 %v3517_v20, %v444_v45  ;;  %v3583_v2 = vrot.slane %v788_v43, 4  ;;  %v459_v15 = vsub.f32 1.0, %v458_v55  ;;  %v611_v36 = vld [vmem:[#allocation2 + $0x24] sm:$0x1]  ;;  %v617_v43 = vld [vmem:[#allocation2 + $0x2c] sm:$0x1] }
  0x31   : > { %v425_v50 = vsel %vm3501_vm2, %v424_v6, %v420_v47  ;;  %v435_v52 = vsel %vm3540_vm12, %v3274_v3, %v431_v42  ;;  %v371_v58 = vadd.f32 %v3513_v18, %v370_v48  ;;  %v3585_v3 = vrot.slane %v791_v44, 5  ;;  %v3598_v6 = vld [vmem:[#allocation2 + $0x4] sm:$0x1]  ;;  %1082 = vmatpush.bf16.msrb.mxu1 %v3102_v9  ;;  %v3101_v44 = vld [vmem:[%s4197_s3 + $0x28] sm:$0xff]  ;;  %v3126_v55 = vld [vmem:[%s4197_s3 + $0xd0] sm:$0xff] }
  0x32   : > { %v440_v57 = vsel %vm3509_vm4, %v439_v16, %v435_v52  ;;  %v490_v60 = vmul.f32 %v425_v50, %v3434_v26  ;;  %vm448_vm2 = vweird.f32 %v3517_v20  ;;  %vm3588_vm4 = vcmp.eq.f32.partialorder %v466_v40, 8.507059e+37  ;;  %v3171_v42 = vld [vmem:[%s4197_s3 + $0x218] sm:$0xff] }
  0x33   : > { %v491_v62 = vmul.f32 %v440_v57, %v3437_v27  ;;  %v3128_v27 = vld [vmem:[%s4197_s3 + $0xe0] sm:$0xff]  ;;  %v375_v5 = vsel %vm3559_vm1, %v3513_v18, %v371_v58  ;;  %v446_v13 = vadd.f32 %v3517_v20, %v445_v61  ;;  %vm785_vm9 = vsmask.f32 7440  ;;  %vm3619_vm12 = vmor %vm447_vm7, %vm448_vm2  ;;  %v3138_v57 = vld [vmem:[%s4197_s3 + $0x130] sm:$0xff]  ;;  %v3669_v0 = vpop.eup %3285 }
  0x34   : > { %v498_v4 = vpack.c.bf16 %v490_v60, %v490_v60  ;;  %v380_v12 = vsel %vm3521_vm8, %v379_v32, %v375_v5  ;;  %1387 = vmatpush.bf16.msra.mxu3 %v3128_v27  ;;  %v794_v29 = vor.u32 %v3585_v3, %v3583_v2  ;;  %vm3635_vm7 = vmand %vm584_vm10, %vm585_vm11  ;;  %vm1134_vm8 = vcmask 1042432   ;;  %1631 = vmatpush.bf16.msrb.mxu0 %v3138_v57  ;;  %v3124_v57 = vld [vmem:[%s4197_s3 + $0xc0] sm:$0xff] }
  0x35   : > { %v499_v8 = vpack.c.bf16 %v491_v62, %v491_v62  ;;  %v487_v19 = vmul.f32 %v380_v12, %v3450_v34  ;;  %v797_v34 = vshll.u32 %v3598_v6, 16  ;;  %vm3641_vm1 = vmand %vm590_vm13, %vm591_vm14  ;;  %v2696_v45 = vrot.slane %v3613_v21, 9  ;;  %1083 = vmatpush.bf16.msrb.mxu1 %v3101_v44 }
  0x36   : > { %v528_v16 = vshrl.u32 %v498_v4, 16  ;;  %v531_v18 = vshll.u32 %v498_v4, 16  ;;  %v450_v47 = vsel %vm3619_vm12, %v3517_v20, %v446_v13  ;;  %v460_v48 = vmul.f32 %v3546_v41, %v459_v15  ;;  %vm3663_vm10 = vmor %vm462_vm0, %vm463_vm5  ;;  %v3125_v15 = vld [vmem:[%s4197_s3 + $0xc8] sm:$0xff] }
  0x37   : > { %v536_v23 = vshrl.u32 %v499_v8, 16  ;;  %v539_v24 = vshll.u32 %v499_v8, 16  ;;  %v495_v39 = vpack.c.bf16 %v487_v19, %v487_v19  ;;  %v1139_v61 = vrot.slane %v3598_v6, 5  ;;  %v593_v6 = vld [vmem:[#allocation2 + $0xc] sm:$0x1]  ;;  %vm3686_vm11 = vmor %vm1134_vm8, %vm1135_vm15 }
  0x38   : > { %v530_v32 = vrot.slane %v528_v16, 7  ;;  %1388 = vmatpush.bf16.msra.mxu3 %v3127_v30  ;;  %v461_v62 = vadd.f32 %v3546_v41, %v460_v48  ;;  %v455_v4 = vsel %vm3563_vm3, %v3536_v35, %v450_v47  ;;  %v3682_v8 = vrot.slane %v794_v29, 4  ;;  %v3100_v35 = vld [vmem:[%s4197_s3 + $0x20] sm:$0xff]  ;;  %v3137_v16 = vld [vmem:[%s4197_s3 + $0x128] sm:$0xff]  ;;  %vm3721_vm14 = vmor %vm784_vm6, %vm785_vm9 }
  0x39   : > { %v538_v40 = vrot.slane %v536_v23, 7  ;;  %v504_v52 = vshrl.u32 %v495_v39, 16  ;;  %v507_v53 = vshll.u32 %v495_v39, 16  ;;  %v3696_v13 = vrot.slane %v797_v34, 5  ;;  %1084 = vmatpush.bf16.msrb.mxu1 %v3100_v35  ;;  %1632 = vmatpush.bf16.msrb.mxu0 %v3137_v16  ;;  %v620_v35 = vld [vmem:[#allocation2 + $0x30] sm:$0xf] }
  0x3a   : > { %v533_v49 = vor.u32 %v531_v18, %v530_v32  ;;  %v534_v50 = vrot.slane %v530_v32, 4  ;;  %v465_v54 = vsel %vm3663_vm10, %v3546_v41, %v461_v62  ;;  %v492_v41 = vmul.f32 %v455_v4, %v3444_v31 }
  0x3b   : > { %v541_v60 = vor.u32 %v539_v24, %v538_v40  ;;  %v542_v58 = vrot.slane %v538_v40, 4  ;;  %v506_v3 = vrot.slane %v504_v52, 7  ;;  %v470_v18 = vsel %vm3588_vm4, %v3601_v7, %v465_v54 }
  0x3c   : > { %v609_v1 = vsel %vm3635_vm7, %v533_v49, %v608_v25  ;;  %v612_v2 = vsel %vm3641_vm1, %v534_v50, %v611_v36  ;;  %1389 = vmatpush.bf16.msra.mxu3 %v3126_v55  ;;  %v493_v19 = vmul.f32 %v470_v18, %v3460_v37  ;;  %v383_v21 = vmul.f32 %v3669_v0, %v3569_v56  ;;  %v3159_v55 = vld [vmem:[%s4197_s3 + $0x1b8] sm:$0xff]  ;;  %v3136_v18 = vld [vmem:[%s4197_s3 + $0x120] sm:$0xff] }
  0x3d   : > { %610 = vst [vmem:[#allocation2 + $0x20] sm:$0xf] %v609_v1  ;;  %v615_v27 = vsel %vm3635_vm7, %v541_v60, %v614_v38  ;;  %v618_v5 = vsel %vm3641_vm1, %v542_v58, %v617_v43  ;;  %v509_v10 = vor.u32 %v507_v53, %v506_v3  ;;  %v510_v12 = vrot.slane %v506_v3, 4  ;;  %v3099_v43 = vld [vmem:[%s4197_s3 + $0x18] sm:$0xff]  ;;  %1939 = vmatpush.bf16.msrb.mxu2 %v3159_v55 }
  0x3e   : > { %613 = vst [vmem:[#allocation2 + $0x24] sm:$0x1] %v612_v2  ;;  %v3717_v24 = vsel %vm3686_vm11, %v2696_v45, %v1139_v61  ;;  %v500_v37 = vpack.c.bf16 %v492_v41, %v492_v41  ;;  %v501_v26 = vpack.c.bf16 %v493_v19, %v493_v19  ;;  %v384_v7 = vsub.f32 1.0, %v383_v21  ;;  %1085 = vmatpush.bf16.msrb.mxu1 %v3099_v43 }
  0x3f   : > { %616 = vst [vmem:[#allocation2 + $0x28] sm:$0xf] %v615_v27  ;;  %v588_v22 = vsel %vm3635_vm7, %v509_v10, %v587_v63  ;;  %v594_v23 = vsel %vm3641_vm1, %v510_v12, %v593_v6  ;;  %v391_v25 = vand.u32 2147483647, %v3569_v56  ;;  %v800_v29 = vsel %vm3721_vm14, %v3682_v8, %v3696_v13  ;;  %1633 = vmatpush.bf16.msrb.mxu0 %v3136_v18 }
  0x40   : > { %619 = vst [vmem:[#allocation2 + $0x2c] sm:$0x1] %v618_v5  ;;  %1390 = vmatpush.bf16.msra.mxu3 %v3125_v15  ;;  %v3731_v34 = vadd.f32 1.0, %v3526_v28  ;;  %v393_v30 = vand.u32 2147483648, %v3569_v56  ;;  %v1186_v59 = vunpack.c.l.b16 %v3717_v24  ;;  %v544_v32 = vshrl.u32 %v500_v37, 16 }
  0x41   : > { %589 = vst [vmem:[#allocation2 + $0x8] sm:$0xf] %v588_v22  ;;  %v552_v36 = vshrl.u32 %v501_v26, 16  ;;  %vm387_vm0 = vweird.f32 %v3569_v56  ;;  %v547_v39 = vshll.u32 %v500_v37, 16  ;;  %v555_v40 = vshll.u32 %v501_v26, 16  ;;  %v3098_v37 = vld [vmem:[%s4197_s3 + $0x10] sm:$0xff] }
  0x42   : > { %595 = vst [vmem:[#allocation2 + $0xc] sm:$0x1] %v594_v23  ;;  %v385_v44 = vmul.f32 %v3669_v0, %v384_v7  ;;  %vm388_vm3 = vweird.f32 %v3669_v0  ;;  %v546_v48 = vrot.slane %v544_v32, 7  ;;  %vm3745_vm2 = vcmp.eq.f32.partialorder %v391_v25, 8.507059e+37  ;;  %v626_v23 = vld [vmem:[#allocation2 + $0x38] sm:$0xf]  ;;  %1086 = vmatpush.bf16.msrb.mxu1 %v3098_v37 }
  0x43   : > { %v3743_v49 = vrot.slane %v552_v36, 7  ;;  %v394_v60 = vor.u32 1.1754944e-38, %v393_v30  ;;  %3287 = vrcp.f32 %v3731_v34  ;;  %v623_v32 = vld [vmem:[#allocation2 + $0x34] sm:$0x1]  ;;  %vm3777_vm4 = vmor %vm387_vm0, %vm388_vm3  ;;  %vm402_vm5 = vweird.f32 %v3731_v34 }
  0x44   : > { %v756_v38 = vld [vmem:[#allocation2 + $0x20] sm:$0xf]  ;;  %v3757_v20 = vadd.f32 %v3669_v0, %v385_v44  ;;  %v549_v5 = vor.u32 %v547_v39, %v546_v48  ;;  %1391 = vmatpush.bf16.msra.mxu3 %v3124_v57  ;;  %v629_v44 = vld [vmem:[#allocation2 + $0x3c] sm:$0x1]  ;;  %v406_v50 = vand.u32 2147483647, %v3731_v34 }
  0x45   : > { %v3741_v28 = vld [vmem:[#allocation2 + $0x24] sm:$0x1]  ;;  %v844_v45 = vshrl.u32 %v756_v38, 16  ;;  %v847_v47 = vshll.u32 %v756_v38, 16  ;;  %v557_v6 = vor.u32 %v555_v40, %v3743_v49  ;;  %v550_v40 = vrot.slane %v546_v48, 4 }
  0x46   : > { %v757_v52 = vld [vmem:[#allocation2 + $0x28] sm:$0xf]  ;;  %v853_v53 = vshll.u32 %v3741_v28, 16  ;;  %v558_v43 = vrot.slane %v3743_v49, 4  ;;  %v621_v48 = vsel %vm3635_vm7, %v549_v5, %v620_v35  ;;  %v916_v5 = vunpack.c.l.b16 %v800_v29 }
  0x47   : > { %v3760_v58 = vld [vmem:[#allocation2 + $0x2c] sm:$0x1]  ;;  %v846_v61 = vrot.slane %v844_v45, 4  ;;  %v849_v62 = vrot.slane %v847_v47, 5  ;;  %v858_v1 = vshrl.u32 %v757_v52, 16  ;;  %v861_v2 = vshll.u32 %v757_v52, 16 }
  0x48   : > { %v855_v3 = vrot.slane %v853_v53, 5  ;;  %v867_v63 = vshll.u32 %v3760_v58, 16  ;;  %v753_v4 = vld [vmem:[#allocation2 + $0x8] sm:$0xf]  ;;  %622 = vst [vmem:[#allocation2 + $0x30] sm:$0xf] %v621_v48  ;;  %v624_v56 = vsel %vm3641_vm1, %v550_v40, %v623_v32  ;;  %v3191_v29 = vunpack.c.h.bf16 %v3416_v17 }
  0x49   : > { %v1111_v27 = vld [vmem:[#allocation2 + $0x8] sm:$0xe]  ;;  %v850_v54 = vor.u32 %v849_v62, %v846_v61  ;;  %v860_v10 = vrot.slane %v858_v1, 4  ;;  %v863_v12 = vrot.slane %v861_v2, 5  ;;  %v777_v15 = vld [vmem:[#allocation2 + $0xc] sm:$0x1]  ;;  %v3770_v36 = vpop.eup %3287  ;;  %v627_v62 = vsel %vm3635_vm7, %v557_v6, %v626_v23 }
  0x4a   : > { %v802_v16 = vshrl.u32 %v753_v4, 16  ;;  %v869_v41 = vrot.slane %v867_v63, 5  ;;  %v805_v19 = vshll.u32 %v753_v4, 16  ;;  %v811_v21 = vshll.u32 %v777_v15, 16  ;;  %625 = vst [vmem:[#allocation2 + $0x34] sm:$0x1] %v624_v56 }
  0x4b   : > { %v2697_v22 = vrot.slane %v1111_v27, 9  ;;  %v851_v26 = vrot.slane %v850_v54, 4  ;;  %v864_v7 = vor.u32 %v863_v12, %v860_v10  ;;  %v1143_v30 = vrot.slane %v777_v15, 5  ;;  %628 = vst [vmem:[#allocation2 + $0x38] sm:$0xf] %v627_v62  ;;  %v3135_v48 = vld [vmem:[%s4197_s3 + $0x118] sm:$0xff] }
  0x4c   : > { %v804_v25 = vrot.slane %v802_v16, 4  ;;  %v807_v38 = vrot.slane %v805_v19, 5  ;;  %v813_v39 = vrot.slane %v811_v21, 5  ;;  %v630_v1 = vsel %vm3641_vm1, %v558_v43, %v629_v44  ;;  %v3158_v56 = vld [vmem:[%s4197_s3 + $0x1b0] sm:$0xff]  ;;  %1634 = vmatpush.bf16.msrb.mxu0 %v3135_v48 }
  0x4d   : > { %v856_v47 = vsel %vm3721_vm14, %v851_v26, %v855_v3  ;;  %v865_v52 = vrot.slane %v864_v7, 4  ;;  %v1144_v53 = vsel %vm3686_vm11, %v2697_v22, %v1143_v30  ;;  %v390_v2 = vsel %vm3777_vm4, %v3669_v0, %v3757_v20  ;;  %631 = vst [vmem:[#allocation2 + $0x3c] sm:$0x1] %v630_v1  ;;  %v596_v26 = vld [vmem:[#allocation2 + $0x10] sm:$0xf]  ;;  %1940 = vmatpush.bf16.msrb.mxu2 %v3158_v56 }
  0x4e   : > { %v920_v49 = vunpack.c.l.b16 %v856_v47  ;;  %v808_v55 = vor.u32 %v807_v38, %v804_v25  ;;  %v1187_v57 = vunpack.c.l.b16 %v1144_v53  ;;  %v395_v27 = vsel %vm3745_vm2, %v394_v60, %v390_v2  ;;  %v599_v53 = vld [vmem:[#allocation2 + $0x14] sm:$0x1]  ;;  %v3167_v2 = vld [vmem:[%s4197_s3 + $0x1f8] sm:$0xff] }
  0x4f   : > { %v870_v61 = vsel %vm3721_vm14, %v865_v52, %v869_v41  ;;  %v398_v6 = vmul.f32 %v3770_v36, %v3731_v34  ;;  %v488_v0 = vmul.f32 %v395_v27, %v3478_v46  ;;  %v408_v20 = vand.u32 2147483648, %v3731_v34  ;;  %v758_v54 = vld [vmem:[#allocation2 + $0x30] sm:$0xf]  ;;  %v3096_v27 = vld [vmem:[%s4197_s3] sm:$0xff]  ;;  %2185 = vmatpush.bf16.msrb.mxu3 %v3167_v2 }
  0x50   : > { %v921_v3 = vunpack.c.l.b16 %v870_v61  ;;  %v809_v63 = vrot.slane %v808_v55, 4  ;;  %v1194_v4 = vpack.c.b16 %v1187_v57, %v1186_v59  ;;  %vm403_vm6 = vweird.f32 %v3770_v36 }
  0x51   : > { %v399_v8 = vsub.f32 1.0, %v398_v6  ;;  %v496_v13 = vpack.c.bf16 %v488_v0, %v488_v0  ;;  %v3819_v15 = vld [vmem:[#allocation2 + $0x34] sm:$0x1]  ;;  %v872_v16 = vshrl.u32 %v758_v54, 16  ;;  %v875_v18 = vshll.u32 %v758_v54, 16  ;;  %vm3823_vm9 = vmor %vm402_vm5, %vm403_vm6  ;;  %v3157_v0 = vld [vmem:[%s4197_s3 + $0x1a8] sm:$0xff] }
  0x52   : > { %v926_v24 = vpack.c.b16 %v921_v3, %v920_v49  ;;  %v814_v59 = vsel %vm3721_vm14, %v809_v63, %v813_v39  ;;  %1258 = vmatmul.bf16.vlgmr.msra.gmra.mxu2 %v1194_v4  ;;  %vm3827_vm12 = vcmp.eq.f32.partialorder %v406_v50, 8.507059e+37  ;;  %v409_v17 = vor.u32 1.1754944e-38, %v408_v20  ;;  %v759_v21 = vld [vmem:[#allocation2 + $0x38] sm:$0xf] }
  0x53   : > { %v917_v60 = vunpack.c.l.b16 %v814_v59  ;;  %v400_v46 = vmul.f32 %v3770_v36, %v399_v8  ;;  %v512_v10 = vshrl.u32 %v496_v13, 16  ;;  %v515_v12 = vshll.u32 %v496_v13, 16  ;;  %1941 = vmatpush.bf16.msrb.mxu2 %v3157_v0  ;;  %v602_v54 = vld [vmem:[#allocation2 + $0x18] sm:$0xf] }
  0x54   : > { %998 = vmatmul.bf16.vlgmr.msra.gmra.mxu1 %v926_v24  ;;  %v881_v22 = vshll.u32 %v3819_v15, 16  ;;  %v322_v7 = vmul.f32 %v3406_v11, %v3191_v29  ;;  %v3834_v34 = vld [vmem:[#allocation2 + $0x3c] sm:$0x1]  ;;  %v874_v25 = vrot.slane %v872_v16, 4  ;;  %v877_v30 = vrot.slane %v875_v18, 5 }
  0x55   : > { %v924_v35 = vpack.c.b16 %v917_v60, %v916_v5  ;;  %v401_v23 = vadd.f32 %v3770_v36, %v400_v46  ;;  %v514_v37 = vrot.slane %v512_v10, 7  ;;  %v886_v32 = vshrl.u32 %v759_v21, 16  ;;  %v3133_v60 = vld [vmem:[%s4197_s3 + $0x108] sm:$0xff]  ;;  %v605_v46 = vld [vmem:[#allocation2 + $0x1c] sm:$0x1] }
  0x56   : > { %v889_v38 = vshll.u32 %v759_v21, 16  ;;  %v883_v39 = vrot.slane %v881_v22, 5  ;;  %v895_v40 = vshll.u32 %v3834_v34, 16  ;;  %v878_v45 = vor.u32 %v877_v30, %v874_v25  ;;  %v3132_v22 = vld [vmem:[%s4197_s3 + $0x100] sm:$0xff] }
  0x57   : > { %988 = vmatmul.bf16.vlgmr.msra.gmra.mxu0 %v924_v35  ;;  %v405_v43 = vsel %vm3823_vm9, %v3770_v36, %v401_v23  ;;  %v517_v44 = vor.u32 %v515_v12, %v514_v37  ;;  %v888_v47 = vrot.slane %v886_v32, 4  ;;  %v518_v55 = vrot.slane %v514_v37, 4  ;;  %v3097_v36 = vld [vmem:[%s4197_s3 + $0x8] sm:$0xff] }
  0x58   : > { %v891_v52 = vrot.slane %v889_v38, 5  ;;  %v410_v11 = vsel %vm3827_vm12, %v409_v17, %v405_v43  ;;  %v879_v61 = vrot.slane %v878_v45, 4  ;;  %v897_v1 = vrot.slane %v895_v40, 5  ;;  %1087 = vmatpush.bf16.msrb.mxu1 %v3097_v36  ;;  %v2770_v35 = vld [vmem:[#allocation2 + $0x8] sm:$0xf] }
  0x59   : > { %v489_v49 = vmul.f32 %v410_v11, %v3486_v51  ;;  %v597_v57 = vsel %vm3635_vm7, %v517_v44, %v596_v26  ;;  %v3134_v51 = vld [vmem:[%s4197_s3 + $0x110] sm:$0xff]  ;;  %v3861_v3 = vadd.f32 %v3412_v14, %v322_v7  ;;  %v600_v4 = vsel %vm3641_vm1, %v518_v55, %v599_v53  ;;  %v3147_v14 = vld [vmem:[%s4197_s3 + $0x178] sm:$0xff]  ;;  %v1421_v23 = vld [vmem:[#allocation2 + $0x8] sm:$0xf] }
  0x5a   : > { %v892_v62 = vor.u32 %v891_v52, %v888_v47  ;;  %598 = vst [vmem:[#allocation2 + $0x10] sm:$0xf] %v597_v57  ;;  %v884_v5 = vsel %vm3721_vm14, %v879_v61, %v883_v39  ;;  %1635 = vmatpush.bf16.msrb.mxu0 %v3134_v51  ;;  %v1438_v38 = vshrl.u32 %v1421_v23, 16  ;;  %v2650_v52 = vld [vmem:[#allocation2] sm:$0xf]  ;;  %v1441_v48 = vshll.u32 %v1421_v23, 16 }
  0x5b   : > { %v497_v63 = vpack.c.bf16 %v489_v49, %v489_v49  ;;  %601 = vst [vmem:[#allocation2 + $0x14] sm:$0x1] %v600_v4  ;;  %v922_v24 = vunpack.c.l.b16 %v884_v5  ;;  %v2595_v8 = vmul.f32 -1.442695, %v3861_v3  ;;  %v3092_v11 = vld [vmem:[#allocation2 + $0x4] sm:$0xf0] }
  0x5c   : > { %v893_v6 = vrot.slane %v892_v62, 4  ;;  %1088 = vmatpush.bf16.msrb.mxu1 %v3096_v27  ;;  %v3889_v53 = vrot.slane %v1438_v38, 4  ;;  %v3166_v49 = vld [vmem:[%s4197_s3 + $0x1f0] sm:$0xff]  ;;  %v3156_v57 = vld [vmem:[%s4197_s3 + $0x1a0] sm:$0xff]  ;;  %v3165_v62 = vld [vmem:[%s4197_s3 + $0x1e8] sm:$0xff] }
  0x5d   : > { %v520_v59 = vshrl.u32 %v497_v63, 16  ;;  %v523_v50 = vshll.u32 %v497_v63, 16  ;;  %3289 = vpow2.f32 %v2595_v8  ;;  %v3146_v55 = vld [vmem:[%s4197_s3 + $0x170] sm:$0xff]  ;;  %v3121_v27 = vld [vmem:[#allocation2 + $0x1c] sm:$0xf0]  ;;  %2186 = vmatpush.bf16.msrb.mxu3 %v3166_v49  ;;  %v3145_v5 = vld [vmem:[%s4197_s3 + $0x168] sm:$0xff]  ;;  %1942 = vmatpush.bf16.msrb.mxu2 %v3156_v57 }
  0x5e   : > { %v898_v20 = vsel %vm3721_vm14, %v893_v6, %v897_v1  ;;  %1636 = vmatpush.bf16.msrb.mxu0 %v3133_v60  ;;  %v2651_v60 = vor.u32 %v3092_v11, %v2650_v52  ;;  %v1159_v11 = vrot.slane %v3760_v58, 5  ;;  %v3164_v58 = vld [vmem:[%s4197_s3 + $0x1e0] sm:$0xff] }
  0x5f   : > { %v923_v13 = vunpack.c.l.b16 %v898_v20  ;;  %v522_v29 = vrot.slane %v520_v59, 7  ;;  %v3155_v59 = vld [vmem:[%s4197_s3 + $0x198] sm:$0xff] }
  0x60   : > { %1804 = vmatpush.bf16.msra.mxu1 %v3147_v14 }
  0x61   : > { %v927_v10 = vpack.c.b16 %v923_v13, %v922_v24  ;;  %v525_v12 = vor.u32 %v523_v50, %v522_v29  ;;  %v526_v16 = vrot.slane %v522_v29, 4  ;;  %v754_v18 = vld [vmem:[#allocation2 + $0x10] sm:$0xf]  ;;  %v1443_v13 = vrot.slane %v1441_v48, 5  ;;  %v3916_v29 = vld [vmem:[%s4197_s3 + $0x238] sm:$0xff]  ;;  %2187 = vmatpush.bf16.msrb.mxu3 %v3165_v62  ;;  %1943 = vmatpush.bf16.msrb.mxu2 %v3155_v59 }
  0x62   : > { %v3120_v41 = vld [vmem:[#allocation2 + $0xc] sm:$0xf0]  ;;  %v816_v19 = vshrl.u32 %v754_v18, 16  ;;  %v819_v17 = vshll.u32 %v754_v18, 16  ;;  %v778_v7 = vld [vmem:[#allocation2 + $0x14] sm:$0x1]  ;;  %1637 = vmatpush.bf16.msrb.mxu0 %v3132_v22 }
  0x63   : > { %v2771_v21 = vor.u32 %v3120_v41, %v2770_v35  ;;  %v603_v37 = vsel %vm3635_vm7, %v525_v12, %v602_v54  ;;  %v606_v26 = vsel %vm3641_vm1, %v526_v16, %v605_v46  ;;  %v1112_v32 = vld [vmem:[#allocation2 + $0x10] sm:$0xe]  ;;  %v825_v39 = vshll.u32 %v778_v7, 16  ;;  %v3290_v40 = vpop.eup %3289  ;;  %v3923_v16 = vld [vmem:[#allocation2 + $0xc] sm:$0x1] }
  0x64   : > { %1003 = vmatmul.bf16.gmra.mxu1 %v927_v10  ;;  %604 = vst [vmem:[#allocation2 + $0x18] sm:$0xf] %v603_v37  ;;  %v818_v25 = vrot.slane %v816_v19, 4  ;;  %v821_v30 = vrot.slane %v819_v17, 5  ;;  %v2698_v44 = vrot.slane %v1112_v32, 9  ;;  %v1147_v45 = vrot.slane %v778_v7, 5 }
  0x65   : > { %1392 = vmatmul.bf16.vlgmr.msra.gmra.mxu3 %v2771_v21  ;;  %607 = vst [vmem:[#allocation2 + $0x1c] sm:$0x1] %v606_v26  ;;  %v1423_v47 = vld [vmem:[#allocation2 + $0x10] sm:$0xf]  ;;  %v827_v36 = vrot.slane %v825_v39, 5  ;;  %v3903_v1 = vadd.f32 1.0, %v3290_v40  ;;  %1805 = vmatpush.bf16.msra.mxu1 %v3146_v55 }
  0x66   : > { %v822_v43 = vor.u32 %v821_v30, %v818_v25  ;;  %v1452_v56 = vshrl.u32 %v1423_v47, 16  ;;  %v1455_v61 = vshll.u32 %v1423_v47, 16  ;;  %v1148_v4 = vsel %vm3686_vm11, %v2698_v44, %v1147_v45  ;;  %v3925_v23 = vld [vmem:[#allocation2 + $0x14] sm:$0x1]  ;;  %2359 = vmatpush.bf16.msra.mxu0 %v3916_v29  ;;  %v1114_v37 = vld [vmem:[#allocation2 + $0x20] sm:$0xe]  ;;  %2188 = vmatpush.bf16.msrb.mxu3 %v3164_v58 }
  0x67   : > { %v1188_v46 = vunpack.c.l.b16 %v1148_v4  ;;  %3291 = vrcp.f32 %v3903_v1  ;;  %v1115_v26 = vld [vmem:[#allocation2 + $0x28] sm:$0xe]  ;;  %v1444_v30 = vor.u32 %v1443_v13, %v3889_v53  ;;  %v1447_v32 = vshll.u32 %v3923_v16, 16  ;;  %v3163_v13 = vld [vmem:[%s4197_s3 + $0x1d8] sm:$0xff] }
  0x68   : > { %v823_v2 = vrot.slane %v822_v43, 4  ;;  %v1454_v18 = vrot.slane %v1452_v56, 4  ;;  %v1457_v41 = vrot.slane %v1455_v61, 5  ;;  %v1461_v40 = vshll.u32 %v3925_v23, 16 }
  0x69   : > { %1806 = vmatpush.bf16.msra.mxu1 %v3145_v5  ;;  %v1155_v43 = vrot.slane %v3741_v28, 5  ;;  %v2700_v47 = vrot.slane %v1114_v37, 9  ;;  %v2701_v52 = vrot.slane %v1115_v26, 9  ;;  %v1445_v48 = vrot.slane %v1444_v30, 4  ;;  %v2654_v5 = vld [vmem:[#allocation2 + $0x10] sm:$0xf] }
  0x6a   : > { %v828_v10 = vsel %vm3721_vm14, %v823_v2, %v827_v36  ;;  %v1458_v39 = vor.u32 %v1457_v41, %v1454_v18  ;;  %v1449_v49 = vrot.slane %v1447_v32, 5  ;;  %v1463_v56 = vrot.slane %v1461_v40, 5  ;;  %v3144_v2 = vld [vmem:[%s4197_s3 + $0x160] sm:$0xff]  ;;  %v2778_v41 = vld [vmem:[#allocation2 + $0x28] sm:$0xf]  ;;  %2189 = vmatpush.bf16.msrb.mxu3 %v3163_v13 }
  0x6b   : > { %v755_v51 = vld [vmem:[#allocation2 + $0x18] sm:$0xf]  ;;  %v918_v38 = vunpack.c.l.b16 %v828_v10  ;;  %v1156_v28 = vsel %vm3686_vm11, %v2700_v47, %v1155_v43  ;;  %v1160_v61 = vsel %vm3686_vm11, %v2701_v52, %v1159_v11  ;;  %vm477_vm8 = vweird.f32 %v3903_v1  ;;  %v3974_v10 = vld [vmem:[%s4197_s3 + $0x228] sm:$0xff]  ;;  %v1116_v47 = vld [vmem:[#allocation2 + $0x30] sm:$0xe] }
  0x6c   : > { %v1113_v63 = vld [vmem:[#allocation2 + $0x18] sm:$0xe]  ;;  %v779_v6 = vld [vmem:[#allocation2 + $0x1c] sm:$0x1]  ;;  %v830_v14 = vshrl.u32 %v755_v51, 16  ;;  %v833_v0 = vshll.u32 %v755_v51, 16 }
  0x6d   : > { %v2699_v24 = vrot.slane %v1113_v63, 9  ;;  %v839_v50 = vshll.u32 %v779_v6, 16  ;;  %v1151_v20 = vrot.slane %v779_v6, 5  ;;  %v2774_v8 = vld [vmem:[#allocation2 + $0x18] sm:$0xf]  ;;  %v3292_v44 = vpop.eup %3291  ;;  %v1459_v36 = vrot.slane %v1458_v39, 4  ;;  %1807 = vmatpush.bf16.msra.mxu1 %v3144_v2 }
  0x6e   : > { %v832_v35 = vrot.slane %v830_v14, 4  ;;  %v835_v54 = vrot.slane %v833_v0, 5  ;;  %v2775_v22 = vor.u32 %v3121_v27, %v2774_v8  ;;  %v473_v55 = vmul.f32 %v3292_v44, %v3903_v1  ;;  %v1425_v62 = vld [vmem:[#allocation2 + $0x18] sm:$0xf]  ;;  %v3154_v63 = vld [vmem:[%s4197_s3 + $0x190] sm:$0xff]  ;;  %v3152_v52 = vld [vmem:[%s4197_s3 + $0x180] sm:$0xff] }
  0x6f   : > { %v1152_v12 = vsel %vm3686_vm11, %v2699_v24, %v1151_v20  ;;  %v841_v17 = vrot.slane %v839_v50, 5  ;;  %vm478_vm15 = vweird.f32 %v3292_v44  ;;  %v481_v4 = vand.u32 2147483647, %v3903_v1  ;;  %v1427_v6 = vld [vmem:[#allocation2 + $0x20] sm:$0xf]  ;;  %v3956_v14 = vld [vmem:[%s4197_s3 + $0x230] sm:$0xff]  ;;  %1944 = vmatpush.bf16.msrb.mxu2 %v3154_v63 }
  0x70   : > { %v836_v19 = vor.u32 %v835_v54, %v832_v35  ;;  %v1189_v21 = vunpack.c.l.b16 %v1152_v12  ;;  %v474_v51 = vsub.f32 1.0, %v473_v55  ;;  %v1450_v27 = vsel %vm3721_vm14, %v1445_v48, %v1449_v49  ;;  %v3143_v35 = vld [vmem:[%s4197_s3 + $0x158] sm:$0xff]  ;;  %2360 = vmatpush.bf16.msra.mxu0 %v3956_v14  ;;  %vm479_vm10 = vmor %vm477_vm8, %vm478_vm15  ;;  %v3981_v39 = vld [vmem:[#allocation2 + $0x24] sm:$0x1] }
  0x71   : > { %v483_v24 = vand.u32 2147483648, %v3903_v1  ;;  %v1464_v59 = vsel %vm3721_vm14, %v1459_v36, %v1463_v56  ;;  %v1190_v50 = vunpack.c.l.b16 %v1156_v28  ;;  %v1191_v20 = vunpack.c.l.b16 %v1160_v61  ;;  %1808 = vmatpush.bf16.msra.mxu1 %v3143_v35  ;;  %v1117_v11 = vld [vmem:[#allocation2 + $0x38] sm:$0xe]  ;;  %v632_v2 = vld [vmem:[#allocation2 + $0x40] sm:$0xf] }
  0x72   : > { %v837_v7 = vrot.slane %v836_v19, 4  ;;  %v1195_v25 = vpack.c.b16 %v1189_v21, %v1188_v46  ;;  %v475_v0 = vmul.f32 %v3292_v44, %v474_v51  ;;  %v1466_v8 = vshrl.u32 %v1425_v62, 16  ;;  %v3153_v46 = vld [vmem:[%s4197_s3 + $0x188] sm:$0xff]  ;;  %v3122_v19 = vld [vmem:[#allocation2 + $0x2c] sm:$0xf0] }
  0x73   : > { %v1469_v54 = vshll.u32 %v1425_v62, 16  ;;  %vm482_vm0 = vcmp.eq.f32.partialorder %v481_v4, 8.507059e+37  ;;  %v484_v18 = vor.u32 1.1754944e-38, %v483_v24  ;;  %v1483_v21 = vshll.u32 %v1427_v6, 16  ;;  %1945 = vmatpush.bf16.msrb.mxu2 %v3153_v46  ;;  %v1429_v63 = vld [vmem:[#allocation2 + $0x28] sm:$0xf] }
  0x74   : > { %1089 = vmatmul.bf16.vlgmr.msrb.gmra.mxu1 %v2651_v60  ;;  %v842_v45 = vsel %vm3721_vm14, %v837_v7, %v841_v17  ;;  %1263 = vmatmul.bf16.gmra.mxu2 %v1195_v25  ;;  %v3093_v60 = vld [vmem:[#allocation2 + $0x14] sm:$0xf0]  ;;  %v476_v12 = vadd.f32 %v3292_v44, %v475_v0  ;;  %v1480_v17 = vshrl.u32 %v1427_v6, 16  ;;  %v1567_v26 = vunpack.c.l.b16 %v1464_v59  ;;  %v635_v4 = vld [vmem:[#allocation2 + $0x44] sm:$0x1] }
  0x75   : > { %1397 = vmatmul.bf16.gmra.mxu3 %v2775_v22  ;;  %v919_v53 = vunpack.c.l.b16 %v842_v45  ;;  %v1566_v22 = vunpack.c.l.b16 %v1450_v27  ;;  %v1196_v7 = vpack.c.b16 %v1191_v20, %v1190_v50  ;;  %v2655_v25 = vor.u32 %v3093_v60, %v2654_v5  ;;  %2361 = vmatpush.bf16.msra.mxu0 %v3974_v10  ;;  %v1431_v24 = vld [vmem:[#allocation2 + $0x30] sm:$0xf]  ;;  %v3172_v60 = vld [vmem:[%s4197_s3 + $0x220] sm:$0xff] }
  0x76   : > { %v480_v37 = vsel %vm479_vm10, %v3292_v44, %v476_v12  ;;  %v2779_v32 = vor.u32 %v3122_v19, %v2778_v41  ;;  %v1468_v1 = vrot.slane %v1466_v8, 4  ;;  %v1471_v40 = vrot.slane %v1469_v54, 5  ;;  %v3142_v20 = vld [vmem:[%s4197_s3 + $0x150] sm:$0xff]  ;;  %v2658_v8 = vld [vmem:[#allocation2 + $0x20] sm:$0xf]  ;;  %v3161_v41 = vld [vmem:[%s4197_s3 + $0x1c8] sm:$0xff] }
  0x77   : > { %v925_v57 = vpack.c.b16 %v919_v53, %v918_v38  ;;  %v485_v30 = vsel %vm482_vm0, %v484_v18, %v480_v37  ;;  %v3979_v38 = vld [vmem:[#allocation2 + $0x1c] sm:$0x1]  ;;  %v1482_v45 = vrot.slane %v1480_v17, 4  ;;  %v1485_v44 = vrot.slane %v1483_v21, 5  ;;  %1946 = vmatpush.bf16.msrb.mxu2 %v3152_v52  ;;  %1809 = vmatpush.bf16.msra.mxu1 %v3142_v20  ;;  %v3094_v21 = vld [vmem:[#allocation2 + $0x24] sm:$0xf0] }
  0x78   : > { %v494_v43 = vmul.f32 %v485_v30, %v3861_v3  ;;  %v1574_v48 = vpack.c.b16 %v1567_v26, %v1566_v22  ;;  %v1475_v49 = vshll.u32 %v3979_v38, 16  ;;  %v1489_v55 = vshll.u32 %v3981_v39, 16  ;;  %v4024_v37 = vld [vmem:[#allocation2 + $0x2c] sm:$0x1]  ;;  %v1976_v26 = vld [vmem:[#allocation2 + $0x10] sm:$0xf] }
  0x79   : > { %993 = vmatmul.bf16.gmra.mxu0 %v925_v57  ;;  %v1472_v57 = vor.u32 %v1471_v40, %v1468_v1  ;;  %v2702_v36 = vrot.slane %v1116_v47, 9  ;;  %v1486_v28 = vor.u32 %v1485_v44, %v1482_v45  ;;  %v1163_v61 = vrot.slane %v3819_v15, 5  ;;  %v1978_v1 = vld [vmem:[#allocation2 + $0x18] sm:$0xf]  ;;  %v3160_v52 = vld [vmem:[%s4197_s3 + $0x1c0] sm:$0xff] }
  0x7a   : > { %v502_v53 = vpack.c.bf16 %v494_v43, %v494_v43  ;;  %v2703_v62 = vrot.slane %v1117_v11, 9  ;;  %v1167_v51 = vrot.slane %v3834_v34, 5  ;;  %v1477_v27 = vrot.slane %v1475_v49, 5  ;;  %2362 = vmatpush.bf16.msra.mxu0 %v3172_v60  ;;  %v4032_v11 = vld [vmem:[#allocation2 + $0x14] sm:$0x1] }
  0x7b   : > { %3226 = vmatpush.bf16.msra.mxu2 %v3916_v29  ;;  %v1491_v5 = vrot.slane %v1489_v55, 5  ;;  %v1473_v59 = vrot.slane %v1472_v57, 4  ;;  %v1487_v50 = vrot.slane %v1486_v28, 4  ;;  %v1164_v15 = vsel %vm3686_vm11, %v2702_v36, %v1163_v61  ;;  %v3162_v29 = vld [vmem:[%s4197_s3 + $0x1d0] sm:$0xff]  ;;  %1810 = vmatpush.bf16.msra.mxu1 %v3141_v33  ;;  %v4034_v49 = vld [vmem:[#allocation2 + $0x1c] sm:$0x1] }
  0x7c   : > { %v560_v3 = vshrl.u32 %v502_v53, 16  ;;  %v563_v56 = vshll.u32 %v502_v53, 16  ;;  %v1168_v34 = vsel %vm3686_vm11, %v2703_v62, %v1167_v51  ;;  %v1494_v35 = vshrl.u32 %v1429_v63, 16  ;;  %2190 = vmatpush.bf16.msrb.mxu3 %v3162_v29 }
  0x7d   : > { %v1497_v54 = vshll.u32 %v1429_v63, 16  ;;  %v1508_v12 = vshrl.u32 %v1431_v24, 16  ;;  %v1511_v18 = vshll.u32 %v1431_v24, 16  ;;  %v1192_v19 = vunpack.c.l.b16 %v1164_v15 }
  0x7e   : > { %v562_v58 = vrot.slane %v560_v3, 7  ;;  %v1193_v17 = vunpack.c.l.b16 %v1168_v34  ;;  %v1492_v22 = vsel %vm3721_vm14, %v1487_v50, %v1491_v5  ;;  %v1496_v30 = vrot.slane %v1494_v35, 4  ;;  %2363 = vmatpush.bf16.msra.mxu0 %v3171_v42  ;;  %v3140_v35 = vld [vmem:[%s4197_s3 + $0x140] sm:$0xff] }
  0x7f   : > { %3227 = vmatpush.bf16.msra.mxu2 %v3956_v14  ;;  %v1478_v14 = vsel %vm3721_vm14, %v1473_v59, %v1477_v27  ;;  %v1993_v40 = vshrl.u32 %v1976_v26, 16  ;;  %v1996_v43 = vshll.u32 %v1976_v26, 16  ;;  %v2659_v45 = vor.u32 %v3094_v21, %v2658_v8  ;;  %v1433_v8 = vld [vmem:[#allocation2 + $0x38] sm:$0xf]  ;;  %1811 = vmatpush.bf16.msra.mxu1 %v3140_v35  ;;  %v3169_v21 = vld [vmem:[%s4197_s3 + $0x208] sm:$0xff] }
  0x80   : > { %v565_v6 = vor.u32 %v563_v56, %v562_v58  ;;  %v566_v0 = vrot.slane %v562_v58, 4  ;;  %v1510_v44 = vrot.slane %v1508_v12, 4  ;;  %v1513_v47 = vrot.slane %v1511_v18, 5  ;;  %2191 = vmatpush.bf16.msrb.mxu3 %v3161_v41  ;;  %v1982_v26 = vld [vmem:[#allocation2 + $0x28] sm:$0xf] }
  0x81   : > { %v2007_v53 = vshrl.u32 %v1978_v1, 16  ;;  %v1995_v55 = vrot.slane %v1993_v40, 4  ;;  %v1998_v57 = vrot.slane %v1996_v43, 5  ;;  %v2010_v36 = vshll.u32 %v1978_v1, 16  ;;  %v3148_v1 = vld [vmem:[#allocation2 + $0x14] sm:$0xf0] }
  0x82   : > { %v633_v13 = vsel %vm3635_vm7, %v565_v6, %v632_v2  ;;  %v636_v46 = vsel %vm3641_vm1, %v566_v0, %v635_v4  ;;  %v1569_v3 = vunpack.c.l.b16 %v1492_v22  ;;  %v1503_v56 = vshll.u32 %v4024_v37, 16 }
  0x83   : > { %634 = vst [vmem:[#allocation2 + $0x40] sm:$0xf] %v633_v13  ;;  %3228 = vmatpush.bf16.msra.mxu2 %v3974_v10  ;;  %v1568_v10 = vunpack.c.l.b16 %v1478_v14  ;;  %v2009_v28 = vrot.slane %v2007_v53, 4  ;;  %v1999_v62 = vor.u32 %v1998_v57, %v1995_v55  ;;  %v2002_v51 = vshll.u32 %v4032_v11, 16  ;;  %v4057_v53 = vld [vmem:[#allocation2 + $0x24] sm:$0x1] }
  0x84   : > { %1094 = vmatmul.bf16.gmra.mxu1 %v2655_v25  ;;  %1268 = vmatmul.bf16.gmra.mxu2 %v1196_v7  ;;  %637 = vst [vmem:[#allocation2 + $0x44] sm:$0x1] %v636_v46  ;;  %v2782_v7 = vld [vmem:[#allocation2 + $0x38] sm:$0xf]  ;;  %v4026_v25 = vld [vmem:[#allocation2 + $0x34] sm:$0x1]  ;;  %v1514_v27 = vor.u32 %v1513_v47, %v1510_v44 }
  0x85   : > { %1402 = vmatmul.bf16.gmra.mxu3 %v2779_v32  ;;  %v1499_v32 = vrot.slane %v1497_v54, 5  ;;  %v2012_v58 = vrot.slane %v2010_v36, 5  ;;  %v2016_v2 = vshll.u32 %v4034_v49, 16  ;;  %v1517_v5 = vshll.u32 %v4026_v25, 16  ;;  %v3170_v54 = vld [vmem:[%s4197_s3 + $0x210] sm:$0xff]  ;;  %v3168_v57 = vld [vmem:[%s4197_s3 + $0x200] sm:$0xff] }
  0x86   : > { %2192 = vmatpush.bf16.msrb.mxu3 %v3160_v52  ;;  %v1575_v0 = vpack.c.b16 %v1569_v3, %v1568_v10  ;;  %v2000_v24 = vrot.slane %v1999_v62, 4  ;;  %v2004_v59 = vrot.slane %v2002_v51, 5  ;;  %v1505_v29 = vrot.slane %v1503_v56, 5  ;;  %v2662_v46 = vld [vmem:[#allocation2 + $0x30] sm:$0xf]  ;;  %2364 = vmatpush.bf16.msra.mxu0 %v3170_v54 }
  0x87   : > { %3229 = vmatpush.bf16.msra.mxu2 %v3172_v60  ;;  %v1500_v4 = vor.u32 %v1499_v32, %v1496_v30  ;;  %v2013_v6 = vor.u32 %v2012_v58, %v2009_v28  ;;  %v2018_v15 = vrot.slane %v2016_v2, 5  ;;  %v1515_v20 = vrot.slane %v1514_v27, 4  ;;  %v2938_v32 = vld [vmem:[#allocation2 + $0x10] sm:$0xf]  ;;  %v4062_v36 = vld [vmem:[#allocation2 + $0x2c] sm:$0x1] }
  0x88   : > { %v1519_v60 = vrot.slane %v1517_v5, 5  ;;  %v2005_v12 = vsel %vm3721_vm14, %v2000_v24, %v2004_v59  ;;  %v1525_v14 = vshll.u32 %v1433_v8, 16  ;;  %v2035_v44 = vshrl.u32 %v1982_v26, 16  ;;  %v4064_v5 = vld [vmem:[#allocation2 + $0x3c] sm:$0x1] }
  0x89   : > { %1638 = vmatmul.bf16.vlgmr.msrb.gmra.mxu0 %v1574_v48  ;;  %v1197_v48 = vpack.c.b16 %v1193_v17, %v1192_v19  ;;  %v2014_v50 = vrot.slane %v2013_v6, 4  ;;  %v1501_v34 = vrot.slane %v1500_v4, 4  ;;  %v3095_v19 = vld [vmem:[#allocation2 + $0x34] sm:$0xf0]  ;;  %v1522_v17 = vshrl.u32 %v1433_v8, 16 }
  0x8a   : > { %v3123_v61 = vld [vmem:[#allocation2 + $0x3c] sm:$0xf0]  ;;  %v1520_v33 = vsel %vm3721_vm14, %v1515_v20, %v1519_v60  ;;  %v2121_v43 = vunpack.c.l.b16 %v2005_v12  ;;  %v2663_v55 = vor.u32 %v3095_v19, %v2662_v46  ;;  %2365 = vmatpush.bf16.msra.mxu0 %v3169_v21  ;;  %v2037_v3 = vrot.slane %v2035_v44, 4  ;;  %v1668_v4 = vld [vmem:[#allocation2 + $0x10] sm:$0xe] }
  0x8b   : > { %v2783_v63 = vor.u32 %v3123_v61, %v2782_v7  ;;  %3230 = vmatpush.bf16.msra.mxu2 %v3171_v42  ;;  %v1435_v13 = vld [vmem:[#allocation2 + $0x40] sm:$0xf]  ;;  %v2019_v18 = vsel %vm3721_vm14, %v2014_v50, %v2018_v15  ;;  %v1506_v41 = vsel %vm3721_vm14, %v1501_v34, %v1505_v29  ;;  %v1571_v52 = vunpack.c.l.b16 %v1520_v33  ;;  %v4066_v6 = vld [vmem:[#allocation2 + $0x44] sm:$0x1] }
  0x8c   : > { %v1980_v42 = vld [vmem:[#allocation2 + $0x20] sm:$0xf]  ;;  %v1536_v22 = vshrl.u32 %v1435_v13, 16  ;;  %v1539_v40 = vshll.u32 %v1435_v13, 16  ;;  %v1570_v47 = vunpack.c.l.b16 %v1506_v41  ;;  %v2038_v56 = vshll.u32 %v1982_v26, 16 }
  0x8d   : > { %v2021_v7 = vshrl.u32 %v1980_v42, 16  ;;  %v2024_v30 = vshll.u32 %v1980_v42, 16  ;;  %v2939_v28 = vor.u32 %v3148_v1, %v2938_v32  ;;  %v1524_v61 = vrot.slane %v1522_v17, 4  ;;  %v2942_v44 = vld [vmem:[#allocation2 + $0x20] sm:$0xf] }
  0x8e   : > { %v1527_v62 = vrot.slane %v1525_v14, 5  ;;  %v1538_v51 = vrot.slane %v1536_v22, 4  ;;  %v1541_v58 = vrot.slane %v1539_v40, 5  ;;  %v2040_v27 = vrot.slane %v2038_v56, 5  ;;  %2366 = vmatpush.bf16.msra.mxu0 %v3168_v57  ;;  %v1984_v22 = vld [vmem:[#allocation2 + $0x30] sm:$0xf] }
  0x8f   : > { %3231 = vmatpush.bf16.msra.mxu2 %v3170_v54  ;;  %v2026_v10 = vrot.slane %v2024_v30, 5  ;;  %v2030_v24 = vshll.u32 %v4057_v53, 16  ;;  %v2044_v59 = vshll.u32 %v4062_v36, 16  ;;  %v1693_v50 = vrot.slane %v3923_v16, 5  ;;  %v1986_v30 = vld [vmem:[#allocation2 + $0x38] sm:$0xf] }
  0x90   : > { %v2041_v15 = vor.u32 %v2040_v27, %v2037_v3  ;;  %v1697_v34 = vrot.slane %v3925_v23, 5  ;;  %v1576_v29 = vpack.c.b16 %v1571_v52, %v1570_v47  ;;  %v2865_v60 = vrot.slane %v1668_v4, 9  ;;  %v3149_v47 = vld [vmem:[#allocation2 + $0x24] sm:$0xf0]  ;;  %v1669_v4 = vld [vmem:[#allocation2 + $0x18] sm:$0xe] }
  0x91   : > { %v1528_v8 = vor.u32 %v1527_v62, %v1524_v61  ;;  %v1531_v13 = vshll.u32 %v4064_v5, 16  ;;  %v1542_v35 = vor.u32 %v1541_v58, %v1538_v51  ;;  %v1545_v54 = vshll.u32 %v4066_v6, 16  ;;  %v4088_v61 = vld [vmem:[#allocation2 + $0x3c] sm:$0x1]  ;;  %v1670_v27 = vld [vmem:[#allocation2 + $0x20] sm:$0xe] }
  0x92   : > { %v2032_v12 = vrot.slane %v2030_v24, 5  ;;  %v2042_v16 = vrot.slane %v2041_v15, 4  ;;  %v1698_v23 = vsel %vm3686_vm11, %v2865_v60, %v1697_v34  ;;  %v2049_v32 = vshrl.u32 %v1984_v22, 16 }
  0x93   : > { %3232 = vmatpush.bf16.msra.mxu2 %v3169_v21  ;;  %v1529_v33 = vrot.slane %v1528_v8, 4  ;;  %v1533_v19 = vrot.slane %v1531_v13, 5  ;;  %v1543_v17 = vrot.slane %v1542_v35, 4  ;;  %v1547_v21 = vrot.slane %v1545_v54, 5  ;;  %v2222_v8 = vld [vmem:[#allocation2 + $0x10] sm:$0xe] }
  0x94   : > { %1099 = vmatmul.bf16.gmra.mxu1 %v2659_v45  ;;  %1273 = vmatmul.bf16.gmra.mxu2 %v1197_v48  ;;  %v2122_v45 = vunpack.c.l.b16 %v2019_v18  ;;  %v2023_v48 = vrot.slane %v2021_v7, 4  ;;  %v2046_v18 = vrot.slane %v2044_v59, 5  ;;  %v1741_v7 = vunpack.c.l.b16 %v1698_v23  ;;  %v2223_v13 = vld [vmem:[#allocation2 + $0x18] sm:$0xe] }
  0x95   : > { %1407 = vmatmul.bf16.gmra.mxu3 %v2783_v63  ;;  %v1667_v63 = vld [vmem:[#allocation2 + $0x8] sm:$0xe]  ;;  %v2052_v1 = vshll.u32 %v1984_v22, 16  ;;  %v2063_v40 = vshrl.u32 %v1986_v30, 16  ;;  %v2066_v3 = vshll.u32 %v1986_v30, 16  ;;  %v2943_v62 = vor.u32 %v3149_v47, %v2942_v44 }
  0x96   : > { %v2129_v2 = vpack.c.b16 %v2122_v45, %v2121_v43  ;;  %v2864_v20 = vrot.slane %v1667_v63, 9  ;;  %v2047_v14 = vsel %vm3721_vm14, %v2042_v16, %v2046_v18  ;;  %v1534_v43 = vsel %vm3721_vm14, %v1529_v33, %v1533_v19  ;;  %v2946_v30 = vld [vmem:[#allocation2 + $0x30] sm:$0xf] }
  0x97   : > { %3233 = vmatpush.bf16.msra.mxu2 %v3168_v57  ;;  %v1548_v45 = vsel %vm3721_vm14, %v1543_v17, %v1547_v21  ;;  %v2054_v57 = vrot.slane %v2052_v1, 5  ;;  %v2068_v51 = vrot.slane %v2066_v3, 5  ;;  %v1572_v58 = vunpack.c.l.b16 %v1534_v43  ;;  %v1988_v17 = vld [vmem:[#allocation2 + $0x40] sm:$0xf] }
  0x98   : > { %v1694_v41 = vsel %vm3686_vm11, %v2864_v20, %v1693_v50  ;;  %v2072_v50 = vshll.u32 %v4088_v61, 16  ;;  %v2866_v15 = vrot.slane %v1669_v4, 9  ;;  %v1701_v34 = vrot.slane %v3979_v38, 5 }
  0x99   : > { %1643 = vmatmul.bf16.gmra.mxu0 %v1575_v0  ;;  %v2027_v0 = vor.u32 %v2026_v10, %v2023_v48  ;;  %v1740_v26 = vunpack.c.l.b16 %v1694_v41  ;;  %v2124_v48 = vunpack.c.l.b16 %v2047_v14  ;;  %v2065_v10 = vrot.slane %v2063_v40, 4  ;;  %v1990_v14 = vld [vmem:[#allocation2 + $0x48] sm:$0xf] }
  0x9a   : > { %v1705_v20 = vrot.slane %v3981_v39, 5  ;;  %v1702_v16 = vsel %vm3686_vm11, %v2866_v15, %v1701_v34  ;;  %v2248_v38 = vrot.slane %v4032_v11, 5  ;;  %v2252_v41 = vrot.slane %v4034_v49, 5 }
  0x9b   : > { %v2028_v46 = vrot.slane %v2027_v0, 4  ;;  %v1748_v56 = vpack.c.b16 %v1741_v7, %v1740_v26  ;;  %v2069_v59 = vor.u32 %v2068_v51, %v2065_v10  ;;  %v3032_v39 = vrot.slane %v2222_v8, 9  ;;  %v1671_v51 = vld [vmem:[#allocation2 + $0x28] sm:$0xe] }
  0x9c   : > { %v3033_v23 = vrot.slane %v2223_v13, 9  ;;  %v1742_v21 = vunpack.c.l.b16 %v1702_v16  ;;  %v2077_v22 = vshrl.u32 %v1988_v17, 16  ;;  %v2080_v26 = vshll.u32 %v1988_v17, 16 }
  0x9d   : > { %v2033_v42 = vsel %vm3721_vm14, %v2028_v46, %v2032_v12  ;;  %v2070_v46 = vrot.slane %v2069_v59, 4  ;;  %v2074_v12 = vrot.slane %v2072_v50, 5  ;;  %v2091_v7 = vshrl.u32 %v1990_v14, 16 }
  0x9e   : > { %v2123_v52 = vunpack.c.l.b16 %v2033_v42  ;;  %v2249_v11 = vsel %vm3686_vm11, %v3032_v39, %v2248_v38  ;;  %v2253_v49 = vsel %vm3686_vm11, %v3033_v23, %v2252_v41  ;;  %v2079_v43 = vrot.slane %v2077_v22, 4  ;;  %v2950_v39 = vld [vmem:[#allocation2 + $0x40] sm:$0xf]  ;;  %v3151_v23 = vld [vmem:[#allocation2 + $0x44] sm:$0xf0] }
  0x9f   : > { %v2075_v19 = vsel %vm3721_vm14, %v2070_v46, %v2074_v12  ;;  %v2093_v44 = vrot.slane %v2091_v7, 4  ;;  %v2094_v47 = vshll.u32 %v1990_v14, 16  ;;  %v2295_v3 = vunpack.c.l.b16 %v2249_v11  ;;  %v1674_v7 = vld [vmem:[#allocation2 + $0x40] sm:$0xe] }
  0xa0   : > { %v2130_v63 = vpack.c.b16 %v2124_v48, %v2123_v52  ;;  %v2126_v40 = vunpack.c.l.b16 %v2075_v19  ;;  %v4108_v48 = vld [vmem:[#allocation2 + $0x44] sm:$0x1]  ;;  %v1709_v59 = vrot.slane %v4024_v37, 5  ;;  %v1713_v15 = vrot.slane %v4026_v25, 5  ;;  %v2228_v11 = vld [vmem:[#allocation2 + $0x40] sm:$0xe] }
  0xa1   : > { %v2096_v10 = vrot.slane %v2094_v47, 5  ;;  %v2260_v12 = vrot.slane %v4062_v36, 5  ;;  %v2951_v22 = vor.u32 %v3151_v23, %v2950_v39  ;;  %v3038_v47 = vrot.slane %v2228_v11, 9 }
  0xa3   : > { %v2097_v4 = vor.u32 %v2096_v10, %v2093_v44  ;;  %v2226_v10 = vld [vmem:[#allocation2 + $0x30] sm:$0xe] }
  0xa4   : > { %1104 = vmatmul.bf16.gmra.mxu1 %v2663_v55  ;;  %1947 = vmatmul.bf16.vlgmr.msrb.gmra.mxu2 %v2939_v28  ;;  %v2051_v55 = vrot.slane %v2049_v32, 4  ;;  %v4086_v28 = vld [vmem:[#allocation2 + $0x34] sm:$0x1]  ;;  %v3150_v32 = vld [vmem:[#allocation2 + $0x34] sm:$0xf0] }
  0xa5   : > { %2193 = vmatmul.bf16.vlgmr.msrb.gmra.mxu3 %v2129_v2  ;;  %v1573_v2 = vunpack.c.l.b16 %v1548_v45  ;;  %v2058_v24 = vshll.u32 %v4086_v28, 16  ;;  %v2082_v45 = vrot.slane %v2080_v26, 5  ;;  %v2098_v8 = vrot.slane %v2097_v4, 4  ;;  %v1673_v26 = vld [vmem:[#allocation2 + $0x38] sm:$0xe] }
  0xa6   : > { %v2055_v0 = vor.u32 %v2054_v57, %v2051_v55  ;;  %v4110_v55 = vld [vmem:[#allocation2 + $0x4c] sm:$0x1]  ;;  %v2947_v57 = vor.u32 %v3150_v32, %v2946_v30  ;;  %v2870_v32 = vrot.slane %v1673_v26, 9 }
  0xa7   : > { %v1577_v60 = vpack.c.b16 %v1573_v2, %v1572_v58  ;;  %v2060_v54 = vrot.slane %v2058_v24, 5  ;;  %v1672_v58 = vld [vmem:[#allocation2 + $0x30] sm:$0xe]  ;;  %v2083_v2 = vor.u32 %v2082_v45, %v2079_v43  ;;  %v2868_v24 = vrot.slane %v1671_v51, 9 }
  0xa8   : > { %v2056_v35 = vrot.slane %v2055_v0, 4  ;;  %v2224_v0 = vld [vmem:[#allocation2 + $0x20] sm:$0xe]  ;;  %v2869_v50 = vrot.slane %v1672_v58, 9  ;;  %v1721_v43 = vrot.slane %v4066_v6, 5  ;;  %v2272_v45 = vrot.slane %v4108_v48, 5 }
  0xa9   : > { %1648 = vmatmul.bf16.gmra.mxu0 %v1576_v29  ;;  %v2867_v29 = vrot.slane %v1670_v27, 9  ;;  %v2100_v27 = vshll.u32 %v4110_v55, 16  ;;  %v1710_v16 = vsel %vm3686_vm11, %v2868_v24, %v1709_v59  ;;  %v2276_v44 = vrot.slane %v4110_v55, 5 }
  0xaa   : > { %v2061_v33 = vsel %vm3721_vm14, %v2056_v35, %v2060_v54  ;;  %v3034_v35 = vrot.slane %v2224_v0, 9  ;;  %v2256_v54 = vrot.slane %v4057_v53, 5  ;;  %v1714_v37 = vsel %vm3686_vm11, %v2869_v50, %v1713_v15 }
  0xab   : > { %v1706_v18 = vsel %vm3686_vm11, %v2867_v29, %v1705_v20  ;;  %v2125_v1 = vunpack.c.l.b16 %v2061_v33  ;;  %v2225_v29 = vld [vmem:[#allocation2 + $0x28] sm:$0xe]  ;;  %v2084_v20 = vrot.slane %v2083_v2, 4  ;;  %v2102_v13 = vrot.slane %v2100_v27, 5 }
  0xac   : > { %v1743_v42 = vunpack.c.l.b16 %v1706_v18  ;;  %v3035_v46 = vrot.slane %v2225_v29, 9  ;;  %v1744_v38 = vunpack.c.l.b16 %v1710_v16  ;;  %v1745_v41 = vunpack.c.l.b16 %v1714_v37 }
  0xad   : > { %v2103_v18 = vsel %vm3721_vm14, %v2098_v8, %v2102_v13  ;;  %v2257_v53 = vsel %vm3686_vm11, %v3034_v35, %v2256_v54  ;;  %v2273_v6 = vsel %vm3686_vm11, %v3038_v47, %v2272_v45  ;;  %v3036_v55 = vrot.slane %v2226_v10, 9 }
  0xae   : > { %v1749_v52 = vpack.c.b16 %v1743_v42, %v1742_v21  ;;  %v2261_v36 = vsel %vm3686_vm11, %v3035_v46, %v2260_v12  ;;  %v2128_v19 = vunpack.c.l.b16 %v2103_v18  ;;  %v2297_v17 = vunpack.c.l.b16 %v2257_v53 }
  0xaf   : > { %v2298_v21 = vunpack.c.l.b16 %v2261_v36  ;;  %v1750_v14 = vpack.c.b16 %v1745_v41, %v1744_v38  ;;  %v2268_v58 = vrot.slane %v4088_v61, 5  ;;  %v2301_v4 = vunpack.c.l.b16 %v2273_v6 }
  0xb1   : > { %v2304_v30 = vpack.c.b16 %v2298_v21, %v2297_v17 }
  0xb4   : > { %1812 = vmatmul.bf16.vlgmr.msra.gmra.mxu1 %v1748_v56  ;;  %1952 = vmatmul.bf16.gmra.mxu2 %v2943_v62  ;;  %v2296_v56 = vunpack.c.l.b16 %v2253_v49  ;;  %v2131_v62 = vpack.c.b16 %v2126_v40, %v2125_v1  ;;  %v2229_v49 = vld [vmem:[#allocation2 + $0x48] sm:$0xe]  ;;  %v1717_v1 = vrot.slane %v4064_v5, 5  ;;  %v2871_v40 = vrot.slane %v1674_v7, 9 }
  0xb5   : > { %2198 = vmatmul.bf16.gmra.mxu3 %v2130_v63  ;;  %v2086_v63 = vshll.u32 %v4108_v48, 16 }
  0xb6   : > { %v2303_v34 = vpack.c.b16 %v2296_v56, %v2295_v3  ;;  %v2227_v3 = vld [vmem:[#allocation2 + $0x38] sm:$0xe]  ;;  %v1718_v56 = vsel %vm3686_vm11, %v2870_v32, %v1717_v1  ;;  %v1722_v5 = vsel %vm3686_vm11, %v2871_v40, %v1721_v43 }
  0xb7   : > { %v3037_v51 = vrot.slane %v2227_v3, 9  ;;  %v1746_v2 = vunpack.c.l.b16 %v1718_v56 }
  0xb9   : > { %1653 = vmatmul.bf16.gmra.mxu0 %v1577_v60  ;;  %v2088_v60 = vrot.slane %v2086_v63, 5  ;;  %v1747_v63 = vunpack.c.l.b16 %v1722_v5  ;;  %v2269_v24 = vsel %vm3686_vm11, %v3037_v51, %v2268_v58 }
  0xba   : > { %v2300_v29 = vunpack.c.l.b16 %v2269_v24 }
  0xbb   : > { %v2089_v25 = vsel %vm3721_vm14, %v2084_v20, %v2088_v60  ;;  %v1751_v59 = vpack.c.b16 %v1747_v63, %v1746_v2 }
  0xbc   : > { %v2127_v33 = vunpack.c.l.b16 %v2089_v25 }
  0xbe   : > { %v2132_v31 = vpack.c.b16 %v2128_v19, %v2127_v33 }
  0xc4   : > { %1817 = vmatmul.bf16.gmra.mxu1 %v1749_v52  ;;  %1957 = vmatmul.bf16.gmra.mxu2 %v2947_v57  ;;  %v3039_v52 = vrot.slane %v2229_v49, 9 }
  0xc5   : > { %2203 = vmatmul.bf16.gmra.mxu3 %v2131_v62  ;;  %v2264_v62 = vrot.slane %v4086_v28, 5 }
  0xc6   : > { %v2277_v48 = vsel %vm3686_vm11, %v3039_v52, %v2276_v44 }
  0xc7   : > { %v2302_v27 = vunpack.c.l.b16 %v2277_v48  ;;  %v2265_v0 = vsel %vm3686_vm11, %v3036_v55, %v2264_v62 }
  0xc9   : > { %2367 = vmatmul.bf16.vlgmr.msra.gmra.mxu0 %v2303_v34  ;;  %v2306_v50 = vpack.c.b16 %v2302_v27, %v2301_v4  ;;  %v2299_v34 = vunpack.c.l.b16 %v2265_v0 }
  0xcb   : > { %v2305_v61 = vpack.c.b16 %v2300_v29, %v2299_v34 }
  0xd1   : > { %v4130_v42 = vpop.f32.mrf.mxu1 }
  0xd4   : > { %1822 = vmatmul.bf16.gmra.mxu1 %v1750_v14  ;;  %1962 = vmatmul.bf16.gmra.mxu2 %v2951_v22  ;;  %v989_v20 = vpop.f32.mrf.mxu0 }
  0xd5   : > { %2208 = vmatmul.bf16.gmra.mxu3 %v2132_v31  ;;  %v1259_v28 = vpop.f32.mrf.mxu2 }
  0xd9   : > { %v4136_v57 = vpop.f32.mrf.mxu1  ;;  %2372 = vmatmul.bf16.gmra.mxu0 %v2304_v30 }
  0xdc   : > { %v991_v13 = vpop.f32.mrf.mxu0 }
  0xdd   : > { %v1261_v35 = vpop.f32.mrf.mxu2 }
  0xe1   : > { %v1004_v15 = vpop.f32.mrf.mxu1 }
  0xe4   : > { %1827 = vmatmul.bf16.gmra.mxu1 %v1751_v59  ;;  %2382 = vmatmul.bf16.vlgmr.msra.gmra.mxu2 %v2306_v50 }
  0xe8   : > { %v1393_v60 = vpop.f32.mrf.mxu3 }
  0xe9   : > { %v1006_v8 = vpop.f32.mrf.mxu1  ;;  %2377 = vmatmul.bf16.gmra.mxu0 %v2305_v61 }
  0xf0   : > { %v1395_v54 = vpop.f32.mrf.mxu3 }
  0xf1   : > { %v1090_v46 = vpop.f32.mrf.mxu1 }
  0xf2   : > { %v1091_v12 = vadd.f32 %v1090_v46, %v989_v20 }
  0xf4   : > { %v1279_v9 = vadd.f32 %v1259_v28, %v1091_v12 }
  0xf6   : > { %v1413_v16 = vadd.f32 %v1393_v60, %v1279_v9  ;;  %v994_v37 = vpop.f32.mrf.mxu0 }
  0xf7   : > { %v1264_v25 = vpop.f32.mrf.mxu2 }
  0xf8   : > { %v1398_v18 = vpop.f32.mrf.mxu3 }
  0xf9   : > { %v1092_v38 = vpop.f32.mrf.mxu1 }
  0xfa   : > { %v1093_v41 = vadd.f32 %v1092_v38, %v991_v13 }
  0xfc   : > { %v1280_v53 = vadd.f32 %v1261_v35, %v1093_v41 }
  0xfe   : > { %v1414_v36 = vadd.f32 %v1395_v54, %v1280_v53  ;;  %v996_v39 = vpop.f32.mrf.mxu0 }
  0xff   : > { %v1266_v23 = vpop.f32.mrf.mxu2 }
 0x100   : > { %v1400_v33 = vpop.f32.mrf.mxu3 }
 0x101   : > { %v1095_v19 = vpop.f32.mrf.mxu1 }
 0x102   : > { %v1096_v17 = vadd.f32 %v1095_v19, %v994_v37 }
 0x104   : > { %v1281_v21 = vadd.f32 %v1264_v25, %v1096_v17 }
 0x106   : > { %v1415_v14 = vadd.f32 %v1398_v18, %v1281_v21  ;;  %v1639_v22 = vpop.f32.mrf.mxu0 }
 0x107   : > { %v1659_v31 = vadd.f32 %v1639_v22, %v1413_v16  ;;  %v1269_v26 = vpop.f32.mrf.mxu2 }
 0x108   : > { %v1403_v7 = vpop.f32.mrf.mxu3 }
 0x109   : > { %v1097_v11 = vpop.f32.mrf.mxu1 }
 0x10a   : > { %v1098_v49 = vadd.f32 %v1097_v11, %v996_v39 }
 0x10c   : > { %v1282_v30 = vadd.f32 %v1266_v23, %v1098_v49 }
 0x10e   : > { %v1416_v32 = vadd.f32 %v1400_v33, %v1282_v30  ;;  %v1641_v1 = vpop.f32.mrf.mxu0 }
 0x10f   : > { %v1271_v40 = vpop.f32.mrf.mxu2  ;;  %v1660_v9 = vadd.f32 %v1641_v1, %v1414_v36 }
 0x110   : > { %v1405_v43 = vpop.f32.mrf.mxu3 }
 0x111   : > { %v1100_v45 = vpop.f32.mrf.mxu1 }
 0x112   : > { %v1101_v44 = vadd.f32 %v1100_v45, %v4130_v42 }
 0x114   : > { %v1283_v47 = vadd.f32 %v1269_v26, %v1101_v44 }
 0x116   : > { %v4153_v52 = vadd.f32 %v1403_v7, %v1283_v47  ;;  %v1644_v10 = vpop.f32.mrf.mxu0 }
 0x117   : > { %v1661_v3 = vadd.f32 %v1644_v10, %v1415_v14  ;;  %v1274_v56 = vpop.f32.mrf.mxu2 }
 0x118   : > { %v1408_v6 = vpop.f32.mrf.mxu3 }
 0x119   : > { %v1102_v5 = vpop.f32.mrf.mxu1 }
 0x11a   : > { %v1103_v48 = vadd.f32 %v1102_v5, %v4136_v57 }
 0x11c   : > { %v1284_v55 = vadd.f32 %v1271_v40, %v1103_v48 }
 0x11e   : > { %v4156_v62 = vadd.f32 %v1405_v43, %v1284_v55  ;;  %v1646_v51 = vpop.f32.mrf.mxu0 }
 0x11f   : > { %v1276_v58 = vpop.f32.mrf.mxu2  ;;  %v1662_v7 = vadd.f32 %v1646_v51, %v1416_v32 }
 0x120   : > { %v4158_v63 = vpop.f32.mrf.mxu3 }
 0x121   : > { %v1105_v2 = vpop.f32.mrf.mxu1 }
 0x122   : > { %v1106_v4 = vadd.f32 %v1105_v2, %v1004_v15 }
 0x124   : > { %v1285_v42 = vadd.f32 %v1274_v56, %v1106_v4 }
 0x126   : > { %v1419_v27 = vadd.f32 %v1408_v6, %v1285_v42  ;;  %v1649_v0 = vpop.f32.mrf.mxu0 }
 0x127   : > { %v1948_v24 = vpop.f32.mrf.mxu2  ;;  %v1663_v56 = vadd.f32 %v1649_v0, %v4153_v52 }
 0x128   : > { %v2194_v50 = vpop.f32.mrf.mxu3 }
 0x129   : > { %v1107_v59 = vpop.f32.mrf.mxu1 }
 0x12a   : > { %v1108_v34 = vadd.f32 %v1107_v59, %v1006_v8 }
 0x12c   : > { %v4160_v29 = vadd.f32 %v1276_v58, %v1108_v34 }
 0x12e   : > { %v1651_v20 = vpop.f32.mrf.mxu0  ;;  %v1420_v52 = vadd.f32 %v4158_v63, %v4160_v29 }
 0x12f   : > { %v1950_v57 = vpop.f32.mrf.mxu2  ;;  %v1664_v59 = vadd.f32 %v1651_v20, %v4156_v62 }
 0x130   : > { %v2196_v61 = vpop.f32.mrf.mxu3 }
 0x131   : > { %v1813_v28 = vpop.f32.mrf.mxu1 }
 0x132   : > { %v1833_v16 = vadd.f32 %v1813_v28, %v1659_v31 }
 0x134   : > { %v1968_v8 = vadd.f32 %v1948_v24, %v1833_v16 }
 0x136   : > { %v1654_v60 = vpop.f32.mrf.mxu0  ;;  %v2214_v39 = vadd.f32 %v2194_v50, %v1968_v8 }
 0x137   : > { %v1953_v13 = vpop.f32.mrf.mxu2  ;;  %v1665_v2 = vadd.f32 %v1654_v60, %v1419_v27 }
 0x138   : > { %v2199_v54 = vpop.f32.mrf.mxu3 }
 0x139   : > { %v1815_v35 = vpop.f32.mrf.mxu1 }
 0x13a   : > { %v1834_v37 = vadd.f32 %v1815_v35, %v1660_v9 }
 0x13c   : > { %v1969_v38 = vadd.f32 %v1950_v57, %v1834_v37 }
 0x13e   : > { %v4162_v46 = vpop.f32.mrf.mxu0  ;;  %v2215_v23 = vadd.f32 %v2196_v61, %v1969_v38 }
 0x13f   : > { %v1955_v15 = vpop.f32.mrf.mxu2  ;;  %v1666_v60 = vadd.f32 %v4162_v46, %v1420_v52 }
 0x140   : > { %v2201_v25 = vpop.f32.mrf.mxu3 }
 0x141   : > { %v1818_v12 = vpop.f32.mrf.mxu1 }
 0x142   : > { %v1835_v33 = vadd.f32 %v1818_v12, %v1661_v3 }
 0x144   : > { %v1970_v22 = vadd.f32 %v1953_v13, %v1835_v33 }
 0x146   : > { %v2368_v18 = vpop.f32.mrf.mxu0  ;;  %v2216_v40 = vadd.f32 %v2199_v54, %v1970_v22 }
 0x147   : > { %v1958_v41 = vpop.f32.mrf.mxu2  ;;  %v2388_v19 = vadd.f32 %v2368_v18, %v2214_v39 }
 0x148   : > { %v2204_v21 = vpop.f32.mrf.mxu3 }
 0x149   : > { %v1820_v53 = vpop.f32.mrf.mxu1  ;;  %v2425_v31 = vmul.f32 %v2388_v19, %v2388_v19 }
 0x14a   : > { %v1836_v43 = vadd.f32 %v1820_v53, %v1662_v7 }
 0x14c   : > { %v1971_v47 = vadd.f32 %v1955_v15, %v1836_v43 }
 0x14e   : > { %v2370_v17 = vpop.f32.mrf.mxu0  ;;  %v2217_v55 = vadd.f32 %v2201_v25, %v1971_v47 }
 0x14f   : > { %v2389_v14 = vadd.f32 %v2370_v17, %v2215_v23  ;;  %v1960_v26 = vpop.f32.mrf.mxu2 }
 0x150   : > { %v2206_v10 = vpop.f32.mrf.mxu3 }
 0x151   : > { %v1823_v36 = vpop.f32.mrf.mxu1  ;;  %v3195_v11 = vpack.c.bf16 %v2389_v14, %v2388_v19  ;;  %v2412_v49 = vadd.f32 %v2389_v14, %v2388_v19  ;;  %v2426_v30 = vmul.f32 %v2389_v14, %v2389_v14 }
 0x152   : > { %v1837_v51 = vadd.f32 %v1823_v36, %v1663_v56 }
 0x153   : > { %3196 = vst [vmem:[%s4169_s11] sm:$0xff] %v3195_v11   ;;  %v2433_v1 = vadd.f32 %v2426_v30, %v2425_v31 }
 0x154   : > { %v1972_v42 = vadd.f32 %v1958_v41, %v1837_v51 }
 0x156   : > { %v2373_v45 = vpop.f32.mrf.mxu0  ;;  %v2218_v35 = vadd.f32 %v2204_v21, %v1972_v42 }
 0x157   : > { %v2390_v44 = vadd.f32 %v2373_v45, %v2216_v40  ;;  %v1963_v32 = vpop.f32.mrf.mxu2 }
 0x158   : > { %v2209_v13 = vpop.f32.mrf.mxu3 }
 0x159   : > { %v1825_v3 = vpop.f32.mrf.mxu1  ;;  %v2413_v5 = vadd.f32 %v2412_v49, %v2390_v44  ;;  %v2427_v6 = vmul.f32 %v2390_v44, %v2390_v44 }
 0x15a   : > { %v1838_v54 = vadd.f32 %v1825_v3, %v1664_v59 }
 0x15b   : > { %v2434_v48 = vadd.f32 %v2433_v1, %v2427_v6 }
 0x15c   : > { %v1973_v9 = vadd.f32 %v1960_v26, %v1838_v54 }
 0x15e   : > { %v2375_v58 = vpop.f32.mrf.mxu0  ;;  %v2219_v38 = vadd.f32 %v2206_v10, %v1973_v9 }
 0x15f   : > { %v2391_v4 = vadd.f32 %v2375_v58, %v2217_v55  ;;  %v1965_v24 = vpop.f32.mrf.mxu2 }
 0x160   : > { %v2211_v29 = vpop.f32.mrf.mxu3 }
 0x161   : > { %v1828_v50 = vpop.f32.mrf.mxu1  ;;  %v3200_v34 = vpack.c.bf16 %v2391_v4, %v2390_v44  ;;  %v2414_v57 = vadd.f32 %v2413_v5, %v2391_v4  ;;  %v2428_v28 = vmul.f32 %v2391_v4, %v2391_v4 }
 0x162   : > { %v1839_v61 = vadd.f32 %v1828_v50, %v1665_v2 }
 0x163   : > { %3215 = vst [vmem:[%s4169_s11 + $0x8] sm:$0xff] %v3200_v34   ;;  %v2435_v0 = vadd.f32 %v2434_v48, %v2428_v28 }
 0x164   : > { %v1974_v15 = vadd.f32 %v1963_v32, %v1839_v61 }
 0x166   : > { %v2378_v27 = vpop.f32.mrf.mxu0  ;;  %v2220_v25 = vadd.f32 %v2209_v13, %v1974_v15 }
 0x167   : > { %v2392_v12 = vadd.f32 %v2378_v27, %v2218_v35  ;;  %v2383_v62 = vpop.f32.mrf.mxu2 }
 0x168   : > { %v2394_v41 = vadd.f32 %v2383_v62, %v2220_v25 }
 0x169   : > { %v1830_v20 = vpop.f32.mrf.mxu1  ;;  %v2415_v16 = vadd.f32 %v2414_v57, %v2392_v12  ;;  %v2429_v37 = vmul.f32 %v2392_v12, %v2392_v12 }
 0x16a   : > { %v1840_v8 = vadd.f32 %v1830_v20, %v1666_v60  ;;  %v2431_v14 = vmul.f32 %v2394_v41, %v2394_v41 }
 0x16b   : > { %v2436_v18 = vadd.f32 %v2435_v0, %v2429_v37 }
 0x16c   : > { %v1975_v63 = vadd.f32 %v1965_v24, %v1840_v8 }
 0x16e   : > { %v2221_v53 = vadd.f32 %v2211_v29, %v1975_v63  ;;  %v2380_v39 = vpop.f32.mrf.mxu0 }
 0x16f   : > { %v2393_v23 = vadd.f32 %v2380_v39, %v2219_v38  ;;  %v2385_v33 = vpop.f32.mrf.mxu2 }
 0x170   : > { %v2395_v46 = vadd.f32 %v2385_v33, %v2221_v53 }
 0x171   : > { %v3205_v19 = vpack.c.bf16 %v2393_v23, %v2392_v12  ;;  %v2416_v17 = vadd.f32 %v2415_v16, %v2393_v23  ;;  %v2430_v21 = vmul.f32 %v2393_v23, %v2393_v23 }
 0x172   : > { %v3210_v22 = vpack.c.bf16 %v2395_v46, %v2394_v41  ;;  %v2432_v36 = vmul.f32 %v2395_v46, %v2395_v46 }
 0x173   : > { %3216 = vst [vmem:[%s4169_s11 + $0x10] sm:$0xff] %v3205_v19   ;;  %v2437_v26 = vadd.f32 %v2436_v18, %v2430_v21  ;;  %v2417_v7 = vadd.f32 %v2416_v17, %v2394_v41 }
 0x174   : > { %3217 = vst [vmem:[%s4169_s11 + $0x18] sm:$0xff] %v3210_v22  }
 0x175   : > { %v2438_v31 = vadd.f32 %v2437_v26, %v2431_v14  ;;  %v2418_v11 = vadd.f32 %v2417_v7, %v2395_v46 }
 0x177   : > { %v2419_v49 = vrot.slane %v2418_v11, 4  ;;  %v2439_v30 = vadd.f32 %v2438_v31, %v2432_v36 }
 0x179   : > { %v2420_v1 = vadd.f32 %v2419_v49, %v2418_v11  ;;  %v2440_v40 = vrot.slane %v2439_v30, 4 }
 0x17b   : > { %v2421_v43 = vrot.slane %v2420_v1, 2  ;;  %v2441_v45 = vadd.f32 %v2440_v40, %v2439_v30 }
 0x17d   : > { %v2422_v44 = vadd.f32 %v2421_v43, %v2420_v1  ;;  %v2442_v47 = vrot.slane %v2441_v45, 2 }
 0x17f   : > { %v2423_v32 = vrot.slane %v2422_v44, 1  ;;  %v2443_v10 = vadd.f32 %v2442_v47, %v2441_v45 }
 0x181   : > { %v2444_v3 = vrot.slane %v2443_v10, 1  ;;  %v2424_v56 = vadd.f32 %v2423_v32, %v2422_v44 }
 0x183   : > { %v2445_v5 = vadd.f32 %v2444_v3, %v2443_v10 }
 0x185   : > { %v2447_v6 = vsel %vm590_vm13, %v2424_v56, %v2445_v5 }
 0x186   : > { %2448 = vst [vmem:[%s266_s14] sm:$0x3] %v2447_v6 }
 0x187 PF: > { %s16_s20 = sadd.s32 1, %s3315_s20   ;;  %s4236_s18 = smov %s3311_s19 }
 0x188   : > { %p13_p5 = scmp.ge.s32.totalorder %s16_s20, 4   ;;  %s4237_s19 = smov %s4239_s21 }
 0x18a   :  { %15 = sbr.rel (!%p13_p5) target bundleno = 2 (0x2), region = 104 }

</bundles_post_ra>
